<compile_context>
chip_gen: v6e
topology: v6e:2x2x1
jax: 0.10.0
libtpu: 0.0.40
codegen_flags: <defaults>
</compile_context>

<pallas_src>
import jax
import jax.numpy as jnp
from jax.experimental import pallas as pl
from jax.experimental.pallas import tpu as pltpu

NODE_DIM = 32                      # per-node embedding dim (source / target)
EDGE_DIM = 16                      # edge attribute dim
HIDDEN   = 64                      # edge_mlp hidden width
OUT_DIM  = 16                      # updated edge embedding dim
IN_DIM   = 2 * NODE_DIM + EDGE_DIM # 80

GROUP = 8                          # edges folded into the lane axis
S_IN  = GROUP * NODE_DIM           # 256  lane width of packed source / target
E_IN  = GROUP * EDGE_DIM           # 128  lane width of packed edge_attr
W_HID = GROUP * HIDDEN             # 512
W_OUT = GROUP * OUT_DIM            # 128

MAX_TILE_G = 512                   # group-rows / grid step (512 * 8 = 4096 edges)


def _round_up(x, m):
    return (x + m - 1) // m * m


def edge_model_kernel(s_ref, t_ref, e_ref,
                      w1s_ref, w1t_ref, w1e_ref, b1_ref, w2_ref, b2_ref,
                      o_ref):
    """One grid step: tile_g "edge groups" (tile_g * 8 edges) through the 2-layer MLP.

    s_ref  : (tile_g, 256) f32   8 edges' source embeddings packed along lanes
    t_ref  : (tile_g, 256) f32   8 edges' target embeddings packed along lanes
    e_ref  : (tile_g, 128) f32   8 edges' edge attributes packed along lanes
    w1*_ref: bf16 block-diagonal kron(I8, W1[rows, :]) pieces (256/256/128 x 512)
    b1_ref : (1, 512) f32;  w2_ref: (512, 128) bf16;  b2_ref: (1, 128) f32
    o_ref  : (tile_g, 128) bf16  8 edges' outputs packed along lanes
    """
    # Layer 1:  cat([s, t, e]) @ W1  ==  s @ W1[:32] + t @ W1[32:64] + e @ W1[64:]
    # (block-diagonalized per 8-edge group).  Casts to bf16 happen here, on the
    # VPU, overlapped with the input DMA; MXU accumulates in f32.
    h = jnp.dot(s_ref[...].astype(jnp.bfloat16), w1s_ref[...],
                preferred_element_type=jnp.float32)
    h = h + jnp.dot(t_ref[...].astype(jnp.bfloat16), w1t_ref[...],
                    preferred_element_type=jnp.float32)
    h = h + jnp.dot(e_ref[...].astype(jnp.bfloat16), w1e_ref[...],
                    preferred_element_type=jnp.float32)
    h = jnp.maximum(h + b1_ref[...], 0.0)                      # bias + ReLU in f32
    # Layer 2.
    o = jnp.dot(h.astype(jnp.bfloat16), w2_ref[...],
                preferred_element_type=jnp.float32)
    o_ref[...] = jnp.maximum(o + b2_ref[...], 0.0).astype(o_ref.dtype)


def pack_params(dense_params):
    """Pack dense f32 edge_mlp params into the lane-dense block-diagonal form (once).

    The kron(I8, .) zero blocks contribute exactly 0, so the math is identical to
    applying (W1, W2) per edge.
    """
    w1, b1, w2, b2 = dense_params            # (80,64) (1,64) (64,16) (1,16), f32
    eye = jnp.eye(GROUP, dtype=jnp.float32)
    w1s = jnp.kron(eye, w1[:NODE_DIM]).astype(jnp.bfloat16)               # (256,512)
    w1t = jnp.kron(eye, w1[NODE_DIM:2 * NODE_DIM]).astype(jnp.bfloat16)   # (256,512)
    w1e = jnp.kron(eye, w1[2 * NODE_DIM:]).astype(jnp.bfloat16)           # (128,512)
    w2b = jnp.kron(eye, w2).astype(jnp.bfloat16)                          # (512,128)
    b1w = jnp.tile(b1.astype(jnp.float32), (1, GROUP))                    # (1,512)
    b2w = jnp.tile(b2.astype(jnp.float32), (1, GROUP))                    # (1,128)
    return w1s, w1t, w1e, b1w, w2b, b2w


def edge_model_forward(source, target, edge_attr, packed_params):
    """EdgeModel forward.  source/target: [E, 32] f32, edge_attr: [E, 16] f32.

    Returns the updated edge embeddings, [E, 16] bf16.
    """
    E = source.shape[0]
    w1s, w1t, w1e, b1w, w2b, b2w = packed_params

    # Lane packing (fold 8 consecutive edges into lanes).  For E % 8 == 0 the
    # reshapes below are free bitcasts -- no concat/cast/pad intermediate is
    # materialized in HBM; the kernel reads the caller's f32 buffers directly.
    r = E % GROUP
    if r:
        # Ragged tail: the free reshape needs row-divisibility by 8, so pad.
        # (This costs one extra pass over the inputs; feed E % 8 == 0 to avoid.)
        pad = GROUP - r
        source    = jnp.pad(source,    ((0, pad), (0, 0)))
        target    = jnp.pad(target,    ((0, pad), (0, 0)))
        edge_attr = jnp.pad(edge_attr, ((0, pad), (0, 0)))
    Ep = E + (GROUP - r if r else 0)
    Eg = Ep // GROUP

    sw = source.reshape(Eg, S_IN)        # [Eg, 256]
    tw = target.reshape(Eg, S_IN)        # [Eg, 256]
    ew = edge_attr.reshape(Eg, E_IN)     # [Eg, 128]

    # Tile: up to 4096 edges / step, but keep >= 4 grid steps when E allows it
    # (v7x megacore sharding + room for the DMA pipeline to overlap).
    tile_g = max(16, min(MAX_TILE_G, _round_up(pl.cdiv(Eg, 4), 16)))
    grid = (pl.cdiv(Eg, tile_g),)        # partial last block: reads of OOB rows are
                                         # unspecified, their writes are discarded.

    const = lambda i: (0, 0)             # weights / biases: same resident block

    out_wide = pl.pallas_call(
        edge_model_kernel,
        out_shape=jax.ShapeDtypeStruct((Eg, W_OUT), jnp.bfloat16),
        grid=grid,
        in_specs=[
            pl.BlockSpec((tile_g, S_IN), lambda i: (i, 0)),   # packed source (f32)
            pl.BlockSpec((tile_g, S_IN), lambda i: (i, 0)),   # packed target (f32)
            pl.BlockSpec((tile_g, E_IN), lambda i: (i, 0)),   # packed edge_attr (f32)
            pl.BlockSpec((S_IN, W_HID), const),               # kron(I8, W1[:32])
            pl.BlockSpec((S_IN, W_HID), const),               # kron(I8, W1[32:64])
            pl.BlockSpec((E_IN, W_HID), const),               # kron(I8, W1[64:80])
            pl.BlockSpec((1, W_HID), const),                  # b1 (tiled, f32)
            pl.BlockSpec((W_HID, W_OUT), const),              # kron(I8, W2)
            pl.BlockSpec((1, W_OUT), const),                  # b2 (tiled, f32)
        ],
        out_specs=pl.BlockSpec((tile_g, W_OUT), lambda i: (i, 0)),
        compiler_params=pltpu.CompilerParams(
            dimension_semantics=("parallel",),
            # ~8 MiB worst-case at tile_g=512 incl. double buffers; 32 MiB keeps
            # headroom and is portable to every generation (v7x physical: 64 MiB).
            vmem_limit_bytes=32 * 1024 * 1024,
        ),
    )(sw, tw, ew, w1s, w1t, w1e, b1w, w2b, b2w)

    # Unfold lanes -> rows ([Eg,128] -> [Ep,16]).  For E % 8 == 0 the reshape is a
    # bitcast and the slice is a no-op, so no extra output pass is materialized.
    return out_wide.reshape(Ep, OUT_DIM)[:E]


def init_params(key):
    """Deterministic synthetic parameters matching the edge_mlp shapes (f32, dense)."""
    k1, k2, k3, k4 = jax.random.split(key, 4)
    w1 = jax.random.normal(k1, (IN_DIM, HIDDEN), jnp.float32) * 0.1
    b1 = jax.random.normal(k2, (1, HIDDEN), jnp.float32) * 0.1
    w2 = jax.random.normal(k3, (HIDDEN, OUT_DIM), jnp.float32) * 0.1
    b2 = jax.random.normal(k4, (1, OUT_DIM), jnp.float32) * 0.1
    return (w1, b1, w2, b2)


def reference_forward(source, target, edge_attr, dense_params):
    """Pure-JAX reference mirroring the PyTorch EdgeModel forward at the kernel's
    precision (bf16 inputs/weights, f32 accumulation, f32 biases, f32 output)."""
    w1, b1, w2, b2 = dense_params
    x = jnp.concatenate([source, target, edge_attr], axis=1).astype(jnp.bfloat16)
    h = jnp.dot(x, w1.astype(jnp.bfloat16), preferred_element_type=jnp.float32) + b1
    h = jnp.maximum(h, 0.0)
    o = jnp.dot(h.astype(jnp.bfloat16), w2.astype(jnp.bfloat16),
                preferred_element_type=jnp.float32) + b2
    return jnp.maximum(o, 0.0)


if __name__ == "__main__":
    key = jax.random.PRNGKey(0)
    kp, kdata = jax.random.split(key)

    dense_params  = init_params(kp)
    packed_params = pack_params(dense_params)
    fwd = jax.jit(lambda s, t, e: edge_model_forward(s, t, e, packed_params))

    # E = 8195 : ragged (pad fallback), 4-step grid, partial tail block.
    # E = 20000: zero-copy lane-packing path, tile cap (4096 edges/step), 5-step grid.
    for E in (8195, 20000):
        ks, kt, ke = jax.random.split(jax.random.fold_in(kdata, E), 3)
        source    = jax.random.normal(ks, (E, NODE_DIM), jnp.float32)
        target    = jax.random.normal(kt, (E, NODE_DIM), jnp.float32)
        edge_attr = jax.random.normal(ke, (E, EDGE_DIM), jnp.float32)

        out = jax.block_until_ready(fwd(source, target, edge_attr))
        ref = reference_forward(source, target, edge_attr, dense_params)

        assert out.shape == (E, OUT_DIM) and out.dtype == jnp.bfloat16
        # Both sides use bf16 inputs/weights with f32 accumulation; the kernel
        # additionally rounds the output to bf16, hence the modest tolerance.
        assert jnp.allclose(out.astype(jnp.float32), ref, atol=5e-2, rtol=5e-2), \
            f"mismatch vs reference at E={E}"

    print("KERNEL_OK")
</pallas_src>

<mosaic_0001>
module attributes {stable_mosaic.version = 11 : i64} {
  func.func @edge_model_kernel(%arg0: i32, %arg1: memref<272x256xf32, #tpu.memory_space<vmem>>, %arg2: memref<272x256xf32, #tpu.memory_space<vmem>>, %arg3: memref<272x128xf32, #tpu.memory_space<vmem>>, %arg4: memref<256x512xbf16, #tpu.memory_space<vmem>>, %arg5: memref<256x512xbf16, #tpu.memory_space<vmem>>, %arg6: memref<128x512xbf16, #tpu.memory_space<vmem>>, %arg7: memref<1x512xf32, #tpu.memory_space<vmem>>, %arg8: memref<512x128xbf16, #tpu.memory_space<vmem>>, %arg9: memref<1x128xf32, #tpu.memory_space<vmem>>, %arg10: memref<272x128xbf16, #tpu.memory_space<vmem>>) attributes {dimension_semantics = [#tpu.dimension_semantics<parallel>], iteration_bounds = array<i64: 4>, scalar_prefetch = 0 : i64, scratch_operands = 0 : i64, tpu.core_type = #tpu.core_type<tc>, window_params = [{transform_indices = @transform_0, window_bounds = array<i64: 272, 256>}, {transform_indices = @transform_1, window_bounds = array<i64: 272, 256>}, {transform_indices = @transform_2, window_bounds = array<i64: 272, 128>}, {pipeline_mode = #tpu.pipeline_mode<synchronous>, transform_indices = @transform_3, window_bounds = array<i64: 256, 512>}, {pipeline_mode = #tpu.pipeline_mode<synchronous>, transform_indices = @transform_4, window_bounds = array<i64: 256, 512>}, {pipeline_mode = #tpu.pipeline_mode<synchronous>, transform_indices = @transform_5, window_bounds = array<i64: 128, 512>}, {pipeline_mode = #tpu.pipeline_mode<synchronous>, transform_indices = @transform_6, window_bounds = array<i64: 1, 512>}, {pipeline_mode = #tpu.pipeline_mode<synchronous>, transform_indices = @transform_7, window_bounds = array<i64: 512, 128>}, {pipeline_mode = #tpu.pipeline_mode<synchronous>, transform_indices = @transform_8, window_bounds = array<i64: 1, 128>}, {transform_indices = @transform_9, window_bounds = array<i64: 272, 128>}]} {
    %c0 = arith.constant 0 : index
    %c0_0 = arith.constant 0 : index
    %0 = vector.load %arg1[%c0, %c0_0] : memref<272x256xf32, #tpu.memory_space<vmem>>, vector<272x256xf32>
    %1 = arith.truncf %0 : vector<272x256xf32> to vector<272x256xbf16>
    %c0_1 = arith.constant 0 : index
    %c0_2 = arith.constant 0 : index
    %2 = vector.load %arg4[%c0_1, %c0_2] : memref<256x512xbf16, #tpu.memory_space<vmem>>, vector<256x512xbf16>
    %cst = arith.constant dense<0.000000e+00> : vector<272x512xf32>
    %3 = tpu.matmul %1, %2, %cst {dimension_numbers = #tpu.dot_dimension_numbers<[1], [0], [0], [1], [0, 0, 1, 1], [], []>} : vector<272x256xbf16>, vector<256x512xbf16>, vector<272x512xf32> -> vector<272x512xf32>
    %c0_3 = arith.constant 0 : index
    %c0_4 = arith.constant 0 : index
    %4 = vector.load %arg2[%c0_3, %c0_4] : memref<272x256xf32, #tpu.memory_space<vmem>>, vector<272x256xf32>
    %5 = arith.truncf %4 : vector<272x256xf32> to vector<272x256xbf16>
    %c0_5 = arith.constant 0 : index
    %c0_6 = arith.constant 0 : index
    %6 = vector.load %arg5[%c0_5, %c0_6] : memref<256x512xbf16, #tpu.memory_space<vmem>>, vector<256x512xbf16>
    %cst_7 = arith.constant dense<0.000000e+00> : vector<272x512xf32>
    %7 = tpu.matmul %5, %6, %cst_7 {dimension_numbers = #tpu.dot_dimension_numbers<[1], [0], [0], [1], [0, 0, 1, 1], [], []>} : vector<272x256xbf16>, vector<256x512xbf16>, vector<272x512xf32> -> vector<272x512xf32>
    %8 = arith.addf %3, %7 : vector<272x512xf32>
    %c0_8 = arith.constant 0 : index
    %c0_9 = arith.constant 0 : index
    %9 = vector.load %arg3[%c0_8, %c0_9] : memref<272x128xf32, #tpu.memory_space<vmem>>, vector<272x128xf32>
    %10 = arith.truncf %9 : vector<272x128xf32> to vector<272x128xbf16>
    %c0_10 = arith.constant 0 : index
    %c0_11 = arith.constant 0 : index
    %11 = vector.load %arg6[%c0_10, %c0_11] : memref<128x512xbf16, #tpu.memory_space<vmem>>, vector<128x512xbf16>
    %cst_12 = arith.constant dense<0.000000e+00> : vector<272x512xf32>
    %12 = tpu.matmul %10, %11, %cst_12 {dimension_numbers = #tpu.dot_dimension_numbers<[1], [0], [0], [1], [0, 0, 1, 1], [], []>} : vector<272x128xbf16>, vector<128x512xbf16>, vector<272x512xf32> -> vector<272x512xf32>
    %13 = arith.addf %8, %12 : vector<272x512xf32>
    %c0_13 = arith.constant 0 : index
    %c0_14 = arith.constant 0 : index
    %14 = vector.load %arg7[%c0_13, %c0_14] : memref<1x512xf32, #tpu.memory_space<vmem>>, vector<1x512xf32>
    %15 = vector.broadcast %14 : vector<1x512xf32> to vector<272x512xf32>
    %16 = arith.addf %13, %15 : vector<272x512xf32>
    %cst_15 = arith.constant 0.000000e+00 : f32
    %17 = vector.broadcast %cst_15 : f32 to vector<272x512xf32>
    %18 = arith.maximumf %16, %17 : vector<272x512xf32>
    %19 = arith.truncf %18 : vector<272x512xf32> to vector<272x512xbf16>
    %c0_16 = arith.constant 0 : index
    %c0_17 = arith.constant 0 : index
    %20 = vector.load %arg8[%c0_16, %c0_17] : memref<512x128xbf16, #tpu.memory_space<vmem>>, vector<512x128xbf16>
    %cst_18 = arith.constant dense<0.000000e+00> : vector<272x128xf32>
    %21 = tpu.matmul %19, %20, %cst_18 {dimension_numbers = #tpu.dot_dimension_numbers<[1], [0], [0], [1], [0, 0, 1, 1], [], []>} : vector<272x512xbf16>, vector<512x128xbf16>, vector<272x128xf32> -> vector<272x128xf32>
    %c0_19 = arith.constant 0 : index
    %c0_20 = arith.constant 0 : index
    %22 = vector.load %arg9[%c0_19, %c0_20] : memref<1x128xf32, #tpu.memory_space<vmem>>, vector<1x128xf32>
    %23 = vector.broadcast %22 : vector<1x128xf32> to vector<272x128xf32>
    %24 = arith.addf %21, %23 : vector<272x128xf32>
    %cst_21 = arith.constant 0.000000e+00 : f32
    %25 = vector.broadcast %cst_21 : f32 to vector<272x128xf32>
    %26 = arith.maximumf %24, %25 : vector<272x128xf32>
    %27 = arith.truncf %26 : vector<272x128xf32> to vector<272x128xbf16>
    %c0_22 = arith.constant 0 : index
    %c0_23 = arith.constant 0 : index
    %28 = vector.load %arg10[%c0_22, %c0_23] : memref<272x128xbf16, #tpu.memory_space<vmem>>, vector<272x128xbf16>
    tpu.vector_store %arg10[%c0_22, %c0_23], %27 {strides = array<i32>} : memref<272x128xbf16, #tpu.memory_space<vmem>>, vector<272x128xbf16>,
    return
  }
  func.func @transform_0(%arg0: i32) -> (i32, i32) {
    %c0_i32 = arith.constant 0 : i32
    %c0_i32_0 = arith.constant 0 : i32
    return %arg0, %c0_i32 : i32, i32
  }
  func.func @transform_1(%arg0: i32) -> (i32, i32) {
    %c0_i32 = arith.constant 0 : i32
    %c0_i32_0 = arith.constant 0 : i32
    return %arg0, %c0_i32 : i32, i32
  }
  func.func @transform_2(%arg0: i32) -> (i32, i32) {
    %c0_i32 = arith.constant 0 : i32
    %c0_i32_0 = arith.constant 0 : i32
    return %arg0, %c0_i32 : i32, i32
  }
  func.func @transform_3(%arg0: i32) -> (i32, i32) {
    %c0_i32 = arith.constant 0 : i32
    %c0_i32_0 = arith.constant 0 : i32
    %c0_i32_1 = arith.constant 0 : i32
    return %c0_i32, %c0_i32_0 : i32, i32
  }
  func.func @transform_4(%arg0: i32) -> (i32, i32) {
    %c0_i32 = arith.constant 0 : i32
    %c0_i32_0 = arith.constant 0 : i32
    %c0_i32_1 = arith.constant 0 : i32
    return %c0_i32, %c0_i32_0 : i32, i32
  }
  func.func @transform_5(%arg0: i32) -> (i32, i32) {
    %c0_i32 = arith.constant 0 : i32
    %c0_i32_0 = arith.constant 0 : i32
    %c0_i32_1 = arith.constant 0 : i32
    return %c0_i32, %c0_i32_0 : i32, i32
  }
  func.func @transform_6(%arg0: i32) -> (i32, i32) {
    %c0_i32 = arith.constant 0 : i32
    %c0_i32_0 = arith.constant 0 : i32
    %c0_i32_1 = arith.constant 0 : i32
    return %c0_i32, %c0_i32_0 : i32, i32
  }
  func.func @transform_7(%arg0: i32) -> (i32, i32) {
    %c0_i32 = arith.constant 0 : i32
    %c0_i32_0 = arith.constant 0 : i32
    %c0_i32_1 = arith.constant 0 : i32
    return %c0_i32, %c0_i32_0 : i32, i32
  }
  func.func @transform_8(%arg0: i32) -> (i32, i32) {
    %c0_i32 = arith.constant 0 : i32
    %c0_i32_0 = arith.constant 0 : i32
    %c0_i32_1 = arith.constant 0 : i32
    return %c0_i32, %c0_i32_0 : i32, i32
  }
  func.func @transform_9(%arg0: i32) -> (i32, i32) {
    %c0_i32 = arith.constant 0 : i32
    %c0_i32_0 = arith.constant 0 : i32
    return %arg0, %c0_i32 : i32, i32
  }
}

</mosaic_0001>

<bundles_post_ra>
// kernel: _lambda_.1
= control target key start
LH: loop header
LB: loop body
LE: loop exit
PB: predicated region body
PF: predicated region fallthrough
CT: control target
= control target key end

     0   :  { %s5457_s30 = smov 0   ;;  %s5459_s10 = smov 0   ;;  %s7878_s0 = inlined_call_operand.vmem [shape: f32[1025,256], index: 0, kind: input, shape index: {}]   ;;  %s7879_s1 = inlined_call_operand.vmem [shape: f32[1025,256], index: 1, kind: input, shape index: {}]   ;;  %s7880_s2 = inlined_call_operand.vmem [shape: f32[1025,128], index: 2, kind: input, shape index: {}]   ;;  %s7881_s3 = inlined_call_operand.vmem [shape: bf16[256,512], index: 3, kind: input, shape index: {}]   ;;  %s7882_s4 = inlined_call_operand.vmem [shape: bf16[256,512], index: 4, kind: input, shape index: {}]   ;;  %s7883_s5 = inlined_call_operand.vmem [shape: bf16[128,512], index: 5, kind: input, shape index: {}]   ;;  %s7884_s6 = inlined_call_operand.vmem [shape: f32[1,512], index: 6, kind: input, shape index: {}]   ;;  %s7885_s7 = inlined_call_operand.vmem [shape: bf16[512,128], index: 7, kind: input, shape index: {}]   ;;  %s7886_s8 = inlined_call_operand.vmem [shape: f32[1,128], index: 8, kind: input, shape index: {}]   ;;  %s7887_s9 = inlined_call_operand.vmem [shape: bf16[1025,128], index: 9, kind: output, shape index: {}]  }
   0x1   :  { %s5461_s11 = smov 0  }
   0x2 LB: > { %s5470_s12 = sadd.s32 4294967295, %s5372_s11   ;;  %s5472_s13 = sadd.s32 1, %s5372_s11   ;;  %s5372_s11 = sphi %s5461_s11, %s8405_s11   ;;  %s5368_s10 = sphi %s5459_s10, %s8404_s10   ;;  %s5364_s30 = sphi %s5457_s30, %s8403_s30  }
   0x3   : > { %s227_s14 = ssub.s32 %s5372_s11, %s5472_s13  ;;  %s230_s15 = sadd.s32 1, %s5368_s10 }
   0x4   : > { %p228_p0 = scmp.eq.s32.totalorder %s227_s14, 0  ;;  %p240_p1 = scmp.ne.s32.totalorder %s5368_s10, %s5364_s30 }
   0x5   : > { %p241_p2 = scmp.eq.s32.totalorder %s5470_s12, 3  ;;  %p4568_p3 = scmp.ge.s32.totalorder %s5372_s11, 1 }
   0x6   : > { %s5480_s16 = scalar_select %p228_p0, %s5368_s10, %s230_s15  }
   0x7   : > { %p5482_p4 = por %p241_p2, %p240_p1  ;;  %p340_p5 = scmp.lt.s32.totalorder %s5372_s11, 5 }
   0x9   : > { %p341_p6 = pnand %p4568_p3, %p340_p5 }
   0xb   : > { %344 = sbr.rel (%p341_p6) target bundleno = 985 (0x3d9), region = 56 }
  0x10   : > { %v5042_v0 = vld [vmem:[%s7882_s4 + $0xe4] ss:$16 sps:$4 sm:$0xff]   ;;  %v5044_v1 = vld [vmem:[%s7882_s4 + $0xec] ss:$16 sps:$4 sm:$0xff]   ;;  %v5046_v2 = vld [vmem:[%s7882_s4 + $0xe0] ss:$16 sps:$4 sm:$0xff]  }
  0x11   : > { %1107 = vmatprep.subr.bf16.mxu0 %v5042_v0  ;;  %v5047_v3 = vld [vmem:[%s7882_s4 + $0xe8] ss:$16 sps:$4 sm:$0xff]   ;;  %1310 = vmatprep.subr.bf16.mxu1 %v5044_v1  ;;  %v5048_v4 = vld [vmem:[%s7882_s4 + $0xc4] ss:$16 sps:$4 sm:$0xff]   ;;  %v5050_v5 = vld [vmem:[%s7882_s4 + $0xcc] ss:$16 sps:$4 sm:$0xff]  }
  0x12   : > { %1108 = vmatpush1.bf16.msra.mxu0 %v5046_v2  ;;  %1311 = vmatpush1.bf16.msra.mxu1 %v5047_v3  ;;  %v5052_v6 = vld [vmem:[%s7882_s4 + $0xc0] ss:$16 sps:$4 sm:$0xff]   ;;  %v5053_v7 = vld [vmem:[%s7882_s4 + $0xc8] ss:$16 sps:$4 sm:$0xff]   ;;  %v5054_v8 = vld [vmem:[%s7882_s4 + $0xa4] ss:$16 sps:$4 sm:$0xff]  }
  0x13   : > { %1109 = vmatprep.subr.bf16.mxu0 %v5048_v4  ;;  %1312 = vmatprep.subr.bf16.mxu1 %v5050_v5  ;;  %v5056_v9 = vld [vmem:[%s7882_s4 + $0xac] ss:$16 sps:$4 sm:$0xff]   ;;  %v5058_v10 = vld [vmem:[%s7882_s4 + $0xa0] ss:$16 sps:$4 sm:$0xff]   ;;  %v5059_v11 = vld [vmem:[%s7882_s4 + $0xa8] ss:$16 sps:$4 sm:$0xff]  }
  0x14   : > { %v5060_v12 = vld [vmem:[%s7882_s4 + $0x84] ss:$16 sps:$4 sm:$0xff]   ;;  %v5062_v13 = vld [vmem:[%s7882_s4 + $0x8c] ss:$16 sps:$4 sm:$0xff]   ;;  %v5064_v14 = vld [vmem:[%s7882_s4 + $0x80] ss:$16 sps:$4 sm:$0xff]  }
  0x15   : > { %v5065_v15 = vld [vmem:[%s7882_s4 + $0x88] ss:$16 sps:$4 sm:$0xff]   ;;  %v5066_v16 = vld [vmem:[%s7882_s4 + $0x64] ss:$16 sps:$4 sm:$0xff]   ;;  %v5068_v17 = vld [vmem:[%s7882_s4 + $0x6c] ss:$16 sps:$4 sm:$0xff]  }
  0x16   : > { %1110 = vmatpush1.bf16.msra.mxu0 %v5052_v6  ;;  %1313 = vmatpush1.bf16.msra.mxu1 %v5053_v7  ;;  %v5070_v18 = vld [vmem:[%s7882_s4 + $0x60] ss:$16 sps:$4 sm:$0xff]   ;;  %v5071_v19 = vld [vmem:[%s7882_s4 + $0x68] ss:$16 sps:$4 sm:$0xff]   ;;  %v5072_v20 = vld [vmem:[%s7882_s4 + $0x44] ss:$16 sps:$4 sm:$0xff]  }
  0x17   : > { %1111 = vmatprep.subr.bf16.mxu0 %v5054_v8  ;;  %1314 = vmatprep.subr.bf16.mxu1 %v5056_v9  ;;  %v5074_v21 = vld [vmem:[%s7882_s4 + $0x4c] ss:$16 sps:$4 sm:$0xff]   ;;  %v5076_v22 = vld [vmem:[%s7882_s4 + $0x40] ss:$16 sps:$4 sm:$0xff]   ;;  %v5077_v23 = vld [vmem:[%s7882_s4 + $0x48] ss:$16 sps:$4 sm:$0xff]  }
  0x18   : > { %v5078_v24 = vld [vmem:[%s7882_s4 + $0x24] ss:$16 sps:$4 sm:$0xff]   ;;  %v5080_v25 = vld [vmem:[%s7882_s4 + $0x2c] ss:$16 sps:$4 sm:$0xff]   ;;  %v5082_v26 = vld [vmem:[%s7882_s4 + $0x20] ss:$16 sps:$4 sm:$0xff]  }
  0x19   : > { %v5083_v27 = vld [vmem:[%s7882_s4 + $0x28] ss:$16 sps:$4 sm:$0xff]   ;;  %v5084_v28 = vld [vmem:[%s7882_s4 + $0x4] ss:$16 sps:$4 sm:$0xff]   ;;  %s5574_s14 = smul.u32 34, %s5470_s12  ;;  %s398_s26 = sand.u32 1, %s5364_s30  }
  0x1a   : > { %1112 = vmatpush1.bf16.msra.mxu0 %v5058_v10  ;;  %1315 = vmatpush1.bf16.msra.mxu1 %v5059_v11  ;;  %v5086_v29 = vld [vmem:[%s7882_s4 + $0xc] ss:$16 sps:$4 sm:$0xff]   ;;  %v5088_v30 = vld [vmem:[%s7882_s4] ss:$16 sps:$4 sm:$0xff]   ;;  %v5089_v31 = vld [vmem:[%s7882_s4 + $0x8] ss:$16 sps:$4 sm:$0xff]  }
  0x1b   : > { %1113 = vmatprep.subr.bf16.mxu0 %v5060_v12  ;;  %1316 = vmatprep.subr.bf16.mxu1 %v5062_v13  ;;  %v5090_v32 = vld [vmem:[%s7882_s4 + $0x1e4] ss:$16 sps:$4 sm:$0xff]   ;;  %p407_p7 = scmp.lt.s32.totalorder %s5574_s14, 128  ;;  %v5092_v33 = vld [vmem:[%s7882_s4 + $0x1ec] ss:$16 sps:$4 sm:$0xff]   ;;  %s4951_s27 = smul.u32 136, %s398_s26 }
  0x1c   : > { %v5094_v34 = vld [vmem:[%s7882_s4 + $0x1e0] ss:$16 sps:$4 sm:$0xff]   ;;  %v5095_v35 = vld [vmem:[%s7882_s4 + $0x1e8] ss:$16 sps:$4 sm:$0xff]   ;;  %v5096_v36 = vld [vmem:[%s7882_s4 + $0x1c4] ss:$16 sps:$4 sm:$0xff]  }
  0x1d   : > { %s5602_s19 = scalar_select %p407_p7, %s5574_s14, 128  ;;  %v5098_v37 = vld [vmem:[%s7882_s4 + $0x1cc] ss:$16 sps:$4 sm:$0xff]   ;;  %v5100_v38 = vld [vmem:[%s7882_s4 + $0x1c0] ss:$16 sps:$4 sm:$0xff]  }
  0x1e   : > { %1114 = vmatpush1.bf16.msra.mxu0 %v5064_v14  ;;  %1317 = vmatpush1.bf16.msra.mxu1 %v5065_v15  ;;  %v5101_v39 = vld [vmem:[%s7882_s4 + $0x1c8] ss:$16 sps:$4 sm:$0xff]   ;;  %v5102_v40 = vld [vmem:[%s7882_s4 + $0x1a4] ss:$16 sps:$4 sm:$0xff]   ;;  %v5104_v41 = vld [vmem:[%s7882_s4 + $0x1ac] ss:$16 sps:$4 sm:$0xff]  }
  0x1f   : > { %1115 = vmatprep.subr.bf16.mxu0 %v5066_v16  ;;  %1318 = vmatprep.subr.bf16.mxu1 %v5068_v17  ;;  %s4813_s28 = sshll.u32 %s5602_s19, 4  ;;  %v5106_v42 = vld [vmem:[%s7882_s4 + $0x1a0] ss:$16 sps:$4 sm:$0xff]   ;;  %v5107_v43 = vld [vmem:[%s7882_s4 + $0x1a8] ss:$16 sps:$4 sm:$0xff]   ;;  %s7694_s30 = scalar_lea.vmem [#allocation2], %s4951_s27  }
  0x20   : > { %s5631_s24 = scalar_lea.vmem %s7879_s1, %s4813_s28  ;;  %v5108_v44 = vld [vmem:[%s7882_s4 + $0x184] ss:$16 sps:$4 sm:$0xff]   ;;  %v5110_v45 = vld [vmem:[%s7882_s4 + $0x18c] ss:$16 sps:$4 sm:$0xff]   ;;  %v5112_v47 = vld [vmem:[%s7882_s4 + $0x180] ss:$16 sps:$4 sm:$0xff]   ;;  %s5962_s22 = scalar_lea.vmem %s7878_s0, %s4813_s28 }
  0x21   : > { %v622_v46 = vld [vmem:[%s5631_s24 + $0x8] sm:$0xff]  ;;  %v624_v49 = vld [vmem:[%s5631_s24 + $0x18] sm:$0xff]  ;;  %v5114_v50 = vld [vmem:[%s7882_s4 + $0x164] ss:$16 sps:$4 sm:$0xff]   ;;  %s4573_s28 = sshll.u32 %s5602_s19, 3  ;;  %s4199_s29 = ssub.s32 (%p5482_p4), 129, %s5574_s14 }
  0x22   : > { %1116 = vmatpush1.bf16.msra.mxu0 %v5070_v18  ;;  %1319 = vmatpush1.bf16.msra.mxu1 %v5071_v19  ;;  %v5113_v48 = vld [vmem:[%s7882_s4 + $0x188] ss:$16 sps:$4 sm:$0xff]   ;;  %v690_v51 = vpack.c.bf16 %v624_v49, %v622_v46  ;;  %v5116_v52 = vld [vmem:[%s7882_s4 + $0x16c] ss:$16 sps:$4 sm:$0xff]   ;;  %v5118_v53 = vld [vmem:[%s7882_s4 + $0x160] ss:$16 sps:$4 sm:$0xff]   ;;  %s6274_s25 = scalar_lea.vmem %s7880_s2, %s4573_s28 }
  0x23   : > { %1117 = vmatprep.subr.bf16.mxu0 %v5072_v20  ;;  %1320 = vmatprep.subr.bf16.mxu1 %v5074_v21  ;;  %v5119_v54 = vld [vmem:[%s7882_s4 + $0x168] ss:$16 sps:$4 sm:$0xff]   ;;  %v5120_v55 = vld [vmem:[%s7882_s4 + $0x144] ss:$16 sps:$4 sm:$0xff]   ;;  %v5122_v56 = vld [vmem:[%s7882_s4 + $0x14c] ss:$16 sps:$4 sm:$0xff]  }
  0x24   : > { %1139 = vmatprep.mubr.bf16.mxu0 %v690_v51  ;;  %1342 = vmatprep.mubr.bf16.mxu1 %v690_v51  ;;  %v5124_v57 = vld [vmem:[%s7882_s4 + $0x140] ss:$16 sps:$4 sm:$0xff]   ;;  %v5125_v58 = vld [vmem:[%s7882_s4 + $0x148] ss:$16 sps:$4 sm:$0xff]   ;;  %v5126_v59 = vld [vmem:[%s7882_s4 + $0x124] ss:$16 sps:$4 sm:$0xff]  }
  0x25   : > { %v5128_v60 = vld [vmem:[%s7882_s4 + $0x12c] ss:$16 sps:$4 sm:$0xff]   ;;  %v5130_v61 = vld [vmem:[%s7882_s4 + $0x120] ss:$16 sps:$4 sm:$0xff]   ;;  %v5131_v62 = vld [vmem:[%s7882_s4 + $0x128] ss:$16 sps:$4 sm:$0xff]  }
  0x26   : > { %1118 = vmatpush1.bf16.msra.mxu0 %v5076_v22  ;;  %1321 = vmatpush1.bf16.msra.mxu1 %v5077_v23  ;;  %v5132_v63 = vld [vmem:[%s7882_s4 + $0x104] ss:$16 sps:$4 sm:$0xff]   ;;  %v5134_v0 = vld [vmem:[%s7882_s4 + $0x10c] ss:$16 sps:$4 sm:$0xff]   ;;  %v5136_v1 = vld [vmem:[%s7882_s4 + $0x100] ss:$16 sps:$4 sm:$0xff]  }
  0x27   : > { %1119 = vmatprep.subr.bf16.mxu0 %v5078_v24  ;;  %1322 = vmatprep.subr.bf16.mxu1 %v5080_v25  ;;  %v5137_v2 = vld [vmem:[%s7882_s4 + $0x108] ss:$16 sps:$4 sm:$0xff]   ;;  %v621_v3 = vld [vmem:[%s5631_s24] sm:$0xff]  ;;  %v623_v4 = vld [vmem:[%s5631_s24 + $0x10] sm:$0xff]  ;;  %s4849_s11 = smul.u32 (%p5482_p4), 136, %s5470_s12  ;;  %p4200_p8 = scmp.lt.s32.totalorder (%p5482_p4), %s4199_s29, 34 }
  0x28   : > { %v5140_v5 = vld [vmem:[%s7881_s3 + $0xe4] ss:$16 sps:$4 sm:$0xff]   ;;  %v5143_v6 = vld [vmem:[%s7881_s3 + $0xec] ss:$16 sps:$4 sm:$0xff]   ;;  %v689_v9 = vpack.c.bf16 %v623_v4, %v621_v3  ;;  %v5138_v10 = vld [vmem:[%s7881_s3 + $0xe0] ss:$16 sps:$4 sm:$0xff]  }
  0x29   : > { %v626_v7 = vld [vmem:[%s5631_s24 + $0x28] sm:$0xff]  ;;  %v628_v8 = vld [vmem:[%s5631_s24 + $0x38] sm:$0xff]  ;;  %v625_v13 = vld [vmem:[%s5631_s24 + $0x20] sm:$0xff]  ;;  %s7751_s20 = scalar_lea.vmem (%p5482_p4), %s7887_s9, %s4849_s11  }
  0x2a   : > { %1120 = vmatpush1.bf16.msra.mxu0 %v5082_v26  ;;  %1323 = vmatpush1.bf16.msra.mxu1 %v5083_v27  ;;  %v5141_v11 = vld [vmem:[%s7881_s3 + $0xe8] ss:$16 sps:$4 sm:$0xff]   ;;  %v692_v12 = vpack.c.bf16 %v628_v8, %v626_v7  ;;  %v627_v14 = vld [vmem:[%s5631_s24 + $0x30] sm:$0xff]  ;;  %v5149_v17 = vld [vmem:[%s7881_s3 + $0xcc] ss:$16 sps:$4 sm:$0xff]  }
  0x2b   : > { %1121 = vmatprep.subr.bf16.mxu0 %v5084_v28  ;;  %1324 = vmatprep.subr.bf16.mxu1 %v5086_v29  ;;  %v5144_v15 = vld [vmem:[%s7881_s3 + $0xc0] ss:$16 sps:$4 sm:$0xff]   ;;  %v5146_v16 = vld [vmem:[%s7881_s3 + $0xc4] ss:$16 sps:$4 sm:$0xff]   ;;  %v5147_v18 = vld [vmem:[%s7881_s3 + $0xc8] ss:$16 sps:$4 sm:$0xff]   ;;  %v691_v23 = vpack.c.bf16 %v627_v14, %v625_v13 }
  0x2c   : > { %v630_v19 = vld [vmem:[%s5631_s24 + $0x48] sm:$0xff]  ;;  %v632_v20 = vld [vmem:[%s5631_s24 + $0x58] sm:$0xff]  ;;  %v5152_v21 = vld [vmem:[%s7881_s3 + $0xa4] ss:$16 sps:$4 sm:$0xff]  }
  0x2d   : > { %v5155_v22 = vld [vmem:[%s7881_s3 + $0xac] ss:$16 sps:$4 sm:$0xff]   ;;  %v694_v24 = vpack.c.bf16 %v632_v20, %v630_v19  ;;  %v5150_v25 = vld [vmem:[%s7881_s3 + $0xa0] ss:$16 sps:$4 sm:$0xff]   ;;  %v5153_v26 = vld [vmem:[%s7881_s3 + $0xa8] ss:$16 sps:$4 sm:$0xff]  }
  0x2e   : > { %1122 = vmatpush1.bf16.msra.mxu0 %v5088_v30  ;;  %1325 = vmatpush1.bf16.msra.mxu1 %v5089_v31  ;;  %v629_v27 = vld [vmem:[%s5631_s24 + $0x40] sm:$0xff]  ;;  %v5161_v29 = vld [vmem:[%s7881_s3 + $0x8c] ss:$16 sps:$4 sm:$0xff]   ;;  %v631_v30 = vld [vmem:[%s5631_s24 + $0x50] sm:$0xff] }
  0x2f   : > { %1123 = vmatprep.subr.bf16.mxu0 %v5090_v32  ;;  %1326 = vmatprep.subr.bf16.mxu1 %v5092_v33  ;;  %v5158_v28 = vld [vmem:[%s7881_s3 + $0x84] ss:$16 sps:$4 sm:$0xff]   ;;  %v634_v31 = vld [vmem:[%s5631_s24 + $0x68] sm:$0xff]  ;;  %v636_v32 = vld [vmem:[%s5631_s24 + $0x78] sm:$0xff] }
  0x30   : > { %v5156_v33 = vld [vmem:[%s7881_s3 + $0x80] ss:$16 sps:$4 sm:$0xff]   ;;  %v640_v46 = vld [vmem:[%s5631_s24 + $0x98] sm:$0xff]  ;;  %v5176_v49 = vld [vmem:[%s7881_s3 + $0x24] ss:$16 sps:$4 sm:$0xff]  }
  0x31   : > { %v5186_v3 = vld [vmem:[%s7881_s3 + $0x1e0] ss:$16 sps:$4 sm:$0xff]   ;;  %v5189_v4 = vld [vmem:[%s7881_s3 + $0x1e8] ss:$16 sps:$4 sm:$0xff]   ;;  %v5200_v13 = vld [vmem:[%s7881_s3 + $0x1a4] ss:$16 sps:$4 sm:$0xff]  }
  0x32   : > { %1124 = vmatpush2.bf16.msra.mxu0 %v5094_v34  ;;  %1327 = vmatpush2.bf16.msra.mxu1 %v5095_v35  ;;  %v5159_v34 = vld [vmem:[%s7881_s3 + $0x88] ss:$16 sps:$4 sm:$0xff]   ;;  %v5164_v35 = vld [vmem:[%s7881_s3 + $0x64] ss:$16 sps:$4 sm:$0xff]   ;;  %v5203_v14 = vld [vmem:[%s7881_s3 + $0x1ac] ss:$16 sps:$4 sm:$0xff]  }
  0x33   : > { %1125 = vmatprep.subr.bf16.mxu0 %v5096_v36  ;;  %1328 = vmatprep.subr.bf16.mxu1 %v5098_v37  ;;  %v5167_v36 = vld [vmem:[%s7881_s3 + $0x6c] ss:$16 sps:$4 sm:$0xff]   ;;  %v693_v37 = vpack.c.bf16 %v631_v30, %v629_v27  ;;  %v641_v7 = vld [vmem:[%s5631_s24 + $0xa0] sm:$0xff]  ;;  %v643_v8 = vld [vmem:[%s5631_s24 + $0xb0] sm:$0xff] }
  0x34   : > { %v5206_v19 = vld [vmem:[%s7881_s3 + $0x184] ss:$16 sps:$4 sm:$0xff]   ;;  %v5209_v20 = vld [vmem:[%s7881_s3 + $0x18c] ss:$16 sps:$4 sm:$0xff]  }
  0x35   : > { %v5212_v27 = vld [vmem:[%s7881_s3 + $0x164] ss:$16 sps:$4 sm:$0xff]  }
  0x36   : > { %1126 = vmatpush2.bf16.msra.mxu0 %v5100_v38  ;;  %1329 = vmatpush2.bf16.msra.mxu1 %v5101_v39  ;;  %v696_v38 = vpack.c.bf16 %v636_v32, %v634_v31  ;;  %v5162_v39 = vld [vmem:[%s7881_s3 + $0x60] ss:$16 sps:$4 sm:$0xff]   ;;  %v5213_v32 = vld [vmem:[%s7881_s3 + $0x168] ss:$16 sps:$4 sm:$0xff]  }
  0x37   : > { %1127 = vmatprep.subr.bf16.mxu0 %v5102_v40  ;;  %1330 = vmatprep.subr.bf16.mxu1 %v5104_v41  ;;  %v5165_v40 = vld [vmem:[%s7881_s3 + $0x68] ss:$16 sps:$4 sm:$0xff]   ;;  %v5170_v41 = vld [vmem:[%s7881_s3 + $0x44] ss:$16 sps:$4 sm:$0xff]   ;;  %v5210_v31 = vld [vmem:[%s7881_s3 + $0x160] ss:$16 sps:$4 sm:$0xff]  }
  0x3a   : > { %1128 = vmatpush2.bf16.msra.mxu0 %v5106_v42  ;;  %1331 = vmatpush2.bf16.msra.mxu1 %v5107_v43  ;;  %v5173_v42 = vld [vmem:[%s7881_s3 + $0x4c] ss:$16 sps:$4 sm:$0xff]   ;;  %v633_v43 = vld [vmem:[%s5631_s24 + $0x60] sm:$0xff] }
  0x3b   : > { %1129 = vmatprep.subr.bf16.mxu0 %v5108_v44  ;;  %1332 = vmatprep.subr.bf16.mxu1 %v5110_v45  ;;  %v635_v44 = vld [vmem:[%s5631_s24 + $0x70] sm:$0xff]  ;;  %v638_v45 = vld [vmem:[%s5631_s24 + $0x88] sm:$0xff] }
  0x3c   : > { %v695_v51 = vpack.c.bf16 %v635_v44, %v633_v43 }
  0x3e   : > { %1130 = vmatpush2.bf16.msra.mxu0 %v5112_v47  ;;  %1333 = vmatpush2.bf16.msra.mxu1 %v5113_v48  ;;  %v5168_v47 = vld [vmem:[%s7881_s3 + $0x40] ss:$16 sps:$4 sm:$0xff]   ;;  %v5171_v48 = vld [vmem:[%s7881_s3 + $0x48] ss:$16 sps:$4 sm:$0xff]  }
  0x3f   : > { %1131 = vmatprep.subr.bf16.mxu0 %v5114_v50  ;;  %1334 = vmatprep.subr.bf16.mxu1 %v5116_v52  ;;  %v5179_v50 = vld [vmem:[%s7881_s3 + $0x2c] ss:$16 sps:$4 sm:$0xff]   ;;  %v698_v52 = vpack.c.bf16 %v640_v46, %v638_v45  ;;  %v5222_v45 = vld [vmem:[%s7881_s3 + $0x120] ss:$16 sps:$4 sm:$0xff]   ;;  %v5225_v46 = vld [vmem:[%s7881_s3 + $0x128] ss:$16 sps:$4 sm:$0xff]  }
  0x42   : > { %1132 = vmatpush2.bf16.msra.mxu0 %v5118_v53  ;;  %1335 = vmatpush2.bf16.msra.mxu1 %v5119_v54  ;;  %v5174_v53 = vld [vmem:[%s7881_s3 + $0x20] ss:$16 sps:$4 sm:$0xff]   ;;  %v5177_v54 = vld [vmem:[%s7881_s3 + $0x28] ss:$16 sps:$4 sm:$0xff]  }
  0x43   : > { %1133 = vmatprep.subr.bf16.mxu0 %v5120_v55  ;;  %1336 = vmatprep.subr.bf16.mxu1 %v5122_v56  ;;  %v5182_v55 = vld [vmem:[%s7881_s3 + $0x4] ss:$16 sps:$4 sm:$0xff]   ;;  %v5185_v56 = vld [vmem:[%s7881_s3 + $0xc] ss:$16 sps:$4 sm:$0xff]  }
  0x46   : > { %1134 = vmatpush2.bf16.msra.mxu0 %v5124_v57  ;;  %1337 = vmatpush2.bf16.msra.mxu1 %v5125_v58  ;;  %v637_v57 = vld [vmem:[%s5631_s24 + $0x80] sm:$0xff]  ;;  %v639_v58 = vld [vmem:[%s5631_s24 + $0x90] sm:$0xff] }
  0x47   : > { %1135 = vmatprep.subr.bf16.mxu0 %v5126_v59  ;;  %1338 = vmatprep.subr.bf16.mxu1 %v5128_v60  ;;  %v642_v59 = vld [vmem:[%s5631_s24 + $0xa8] sm:$0xff]  ;;  %v644_v60 = vld [vmem:[%s5631_s24 + $0xb8] sm:$0xff] }
  0x4a   : > { %1136 = vmatpush2.bf16.msra.mxu0 %v5130_v61  ;;  %1339 = vmatpush2.bf16.msra.mxu1 %v5131_v62  ;;  %v5180_v61 = vld [vmem:[%s7881_s3] ss:$16 sps:$4 sm:$0xff]   ;;  %v5183_v62 = vld [vmem:[%s7881_s3 + $0x8] ss:$16 sps:$4 sm:$0xff]  }
  0x4b   : > { %1137 = vmatprep.subr.bf16.mxu0 %v5132_v63  ;;  %1340 = vmatprep.subr.bf16.mxu1 %v5134_v0  ;;  %v5188_v63 = vld [vmem:[%s7881_s3 + $0x1e4] ss:$16 sps:$4 sm:$0xff]   ;;  %v5191_v0 = vld [vmem:[%s7881_s3 + $0x1ec] ss:$16 sps:$4 sm:$0xff]  }
  0x4e   : > { %1138 = vmatpush2.bf16.msra.mxu0 %v5136_v1  ;;  %1341 = vmatpush2.bf16.msra.mxu1 %v5137_v2  ;;  %v697_v1 = vpack.c.bf16 %v639_v58, %v637_v57  ;;  %v700_v2 = vpack.c.bf16 %v644_v60, %v642_v59  ;;  %v657_v59 = vld [vmem:[%s5631_s24 + $0x120] sm:$0xff]  ;;  %v659_v60 = vld [vmem:[%s5631_s24 + $0x130] sm:$0xff] }
  0x4f   : > { %1833 = vmatprep.subr.bf16.mxu0 %v5140_v5  ;;  %2036 = vmatprep.subr.bf16.mxu1 %v5143_v6  ;;  %v5194_v5 = vld [vmem:[%s7881_s3 + $0x1c4] ss:$16 sps:$4 sm:$0xff]   ;;  %v5197_v6 = vld [vmem:[%s7881_s3 + $0x1cc] ss:$16 sps:$4 sm:$0xff]  }
  0x51   : > { %1140 = vmatmul.mubr.bf16.vlgmr.msra.gmra.mxu0 %v689_v9  ;;  %1343 = vmatmul.mubr.bf16.vlgmr.msra.gmra.mxu1 %v689_v9  ;;  %v646_v9 = vld [vmem:[%s5631_s24 + $0xc8] sm:$0xff] }
  0x52   : > { %1834 = vmatpush1.bf16.msra.mxu0 %v5138_v10  ;;  %2037 = vmatpush1.bf16.msra.mxu1 %v5141_v11  ;;  %v648_v10 = vld [vmem:[%s5631_s24 + $0xd8] sm:$0xff]  ;;  %v5192_v11 = vld [vmem:[%s7881_s3 + $0x1c0] ss:$16 sps:$4 sm:$0xff]  }
  0x53   : > { %1149 = vmatprep.mubr.bf16.mxu0 %v692_v12  ;;  %1352 = vmatprep.mubr.bf16.mxu1 %v692_v12  ;;  %v5195_v12 = vld [vmem:[%s7881_s3 + $0x1c8] ss:$16 sps:$4 sm:$0xff]  }
  0x54   : > { %1835 = vmatprep.subr.bf16.mxu0 %v5146_v16  ;;  %2038 = vmatprep.subr.bf16.mxu1 %v5149_v17  ;;  %v702_v16 = vpack.c.bf16 %v648_v10, %v646_v9  ;;  %v5198_v17 = vld [vmem:[%s7881_s3 + $0x1a0] ss:$16 sps:$4 sm:$0xff]   ;;  %v670_v9 = vld [vmem:[%s5631_s24 + $0x188] sm:$0xff]  ;;  %v672_v10 = vld [vmem:[%s5631_s24 + $0x198] sm:$0xff] }
  0x56   : > { %1836 = vmatpush1.bf16.msra.mxu0 %v5144_v15  ;;  %2039 = vmatpush1.bf16.msra.mxu1 %v5147_v18  ;;  %v699_v15 = vpack.c.bf16 %v643_v8, %v641_v7  ;;  %v5201_v18 = vld [vmem:[%s7881_s3 + $0x1a8] ss:$16 sps:$4 sm:$0xff]   ;;  %v665_v7 = vld [vmem:[%s5631_s24 + $0x160] sm:$0xff]  ;;  %v667_v8 = vld [vmem:[%s5631_s24 + $0x170] sm:$0xff] }
  0x57   : > { %1837 = vmatprep.subr.bf16.mxu0 %v5152_v21  ;;  %2040 = vmatprep.subr.bf16.mxu1 %v5155_v22  ;;  %v645_v21 = vld [vmem:[%s5631_s24 + $0xc0] sm:$0xff]  ;;  %v647_v22 = vld [vmem:[%s5631_s24 + $0xd0] sm:$0xff] }
  0x59   : > { %1150 = vmatmul.mubr.bf16.gmra.mxu0 %v691_v23  ;;  %1353 = vmatmul.mubr.bf16.gmra.mxu1 %v691_v23  ;;  %v650_v23 = vld [vmem:[%s5631_s24 + $0xe8] sm:$0xff] }
  0x5a   : > { %1159 = vmatprep.mubr.bf16.mxu0 %v694_v24  ;;  %1362 = vmatprep.mubr.bf16.mxu1 %v694_v24  ;;  %v652_v24 = vld [vmem:[%s5631_s24 + $0xf8] sm:$0xff] }
  0x5b   : > { %1838 = vmatpush1.bf16.msra.mxu0 %v5150_v25  ;;  %2041 = vmatpush1.bf16.msra.mxu1 %v5153_v26  ;;  %v5204_v25 = vld [vmem:[%s7881_s3 + $0x180] ss:$16 sps:$4 sm:$0xff]   ;;  %v5207_v26 = vld [vmem:[%s7881_s3 + $0x188] ss:$16 sps:$4 sm:$0xff]   ;;  %v704_v30 = vpack.c.bf16 %v652_v24, %v650_v23 }
  0x5c   : > { %1839 = vmatprep.subr.bf16.mxu0 %v5158_v28  ;;  %2042 = vmatprep.subr.bf16.mxu1 %v5161_v29  ;;  %v5215_v28 = vld [vmem:[%s7881_s3 + $0x16c] ss:$16 sps:$4 sm:$0xff]   ;;  %v701_v29 = vpack.c.bf16 %v647_v22, %v645_v21 }
  0x5d   : > { %v678_v21 = vld [vmem:[%s5631_s24 + $0x1c8] sm:$0xff]  ;;  %v680_v22 = vld [vmem:[%s5631_s24 + $0x1d8] sm:$0xff] }
  0x5e   : > { %v718_v24 = vpack.c.bf16 %v680_v22, %v678_v21  ;;  %v5264_v21 = vld [vmem:[%s7883_s5 + $0x40] ss:$16 sps:$4 sm:$0xff]   ;;  %v5267_v22 = vld [vmem:[%s7883_s5 + $0x48] ss:$16 sps:$4 sm:$0xff]  }
  0x5f   : > { %1840 = vmatpush1.bf16.msra.mxu0 %v5156_v33  ;;  %2043 = vmatpush1.bf16.msra.mxu1 %v5159_v34  ;;  %v5218_v33 = vld [vmem:[%s7881_s3 + $0x144] ss:$16 sps:$4 sm:$0xff]   ;;  %v5221_v34 = vld [vmem:[%s7881_s3 + $0x14c] ss:$16 sps:$4 sm:$0xff]  }
  0x60   : > { %1841 = vmatprep.subr.bf16.mxu0 %v5164_v35  ;;  %2044 = vmatprep.subr.bf16.mxu1 %v5167_v36  ;;  %v649_v35 = vld [vmem:[%s5631_s24 + $0xe0] sm:$0xff]  ;;  %v651_v36 = vld [vmem:[%s5631_s24 + $0xf0] sm:$0xff] }
  0x61   : > { %1160 = vmatmul.mubr.bf16.gmra.mxu0 %v693_v37  ;;  %1363 = vmatmul.mubr.bf16.gmra.mxu1 %v693_v37  ;;  %v654_v37 = vld [vmem:[%s5631_s24 + $0x108] sm:$0xff]  ;;  %v703_v43 = vpack.c.bf16 %v651_v36, %v649_v35 }
  0x62   : > { %1169 = vmatprep.mubr.bf16.mxu0 %v696_v38  ;;  %1372 = vmatprep.mubr.bf16.mxu1 %v696_v38  ;;  %v656_v38 = vld [vmem:[%s5631_s24 + $0x118] sm:$0xff] }
  0x63   : > { %1842 = vmatpush1.bf16.msra.mxu0 %v5162_v39  ;;  %2045 = vmatpush1.bf16.msra.mxu1 %v5165_v40  ;;  %v5216_v39 = vld [vmem:[%s7881_s3 + $0x140] ss:$16 sps:$4 sm:$0xff]   ;;  %v5219_v40 = vld [vmem:[%s7881_s3 + $0x148] ss:$16 sps:$4 sm:$0xff]   ;;  %v706_v44 = vpack.c.bf16 %v656_v38, %v654_v37 }
  0x64   : > { %1843 = vmatprep.subr.bf16.mxu0 %v5170_v41  ;;  %2046 = vmatprep.subr.bf16.mxu1 %v5173_v42  ;;  %v5224_v41 = vld [vmem:[%s7881_s3 + $0x124] ss:$16 sps:$4 sm:$0xff]   ;;  %v5227_v42 = vld [vmem:[%s7881_s3 + $0x12c] ss:$16 sps:$4 sm:$0xff]  }
  0x65   : > { %v685_v37 = vld [vmem:[%s5631_s24 + $0x200] sm:$0xff]  ;;  %v687_v38 = vld [vmem:[%s5631_s24 + $0x210] sm:$0xff] }
  0x67   : > { %1844 = vmatpush1.bf16.msra.mxu0 %v5168_v47  ;;  %2047 = vmatpush1.bf16.msra.mxu1 %v5171_v48  ;;  %v5230_v47 = vld [vmem:[%s7881_s3 + $0x104] ss:$16 sps:$4 sm:$0xff]   ;;  %v5233_v48 = vld [vmem:[%s7881_s3 + $0x10c] ss:$16 sps:$4 sm:$0xff]  }
  0x68   : > { %1845 = vmatprep.subr.bf16.mxu0 %v5176_v49  ;;  %2048 = vmatprep.subr.bf16.mxu1 %v5179_v50  ;;  %v653_v49 = vld [vmem:[%s5631_s24 + $0x100] sm:$0xff]  ;;  %v655_v50 = vld [vmem:[%s5631_s24 + $0x110] sm:$0xff] }
  0x69   : > { %1170 = vmatmul.mubr.bf16.gmra.mxu0 %v695_v51  ;;  %1373 = vmatmul.mubr.bf16.gmra.mxu1 %v695_v51  ;;  %v658_v51 = vld [vmem:[%s5631_s24 + $0x128] sm:$0xff]  ;;  %v705_v57 = vpack.c.bf16 %v655_v50, %v653_v49 }
  0x6a   : > { %1179 = vmatprep.mubr.bf16.mxu0 %v698_v52  ;;  %1382 = vmatprep.mubr.bf16.mxu1 %v698_v52  ;;  %v660_v52 = vld [vmem:[%s5631_s24 + $0x138] sm:$0xff] }
  0x6b   : > { %1846 = vmatpush1.bf16.msra.mxu0 %v5174_v53  ;;  %2049 = vmatpush1.bf16.msra.mxu1 %v5177_v54  ;;  %v5228_v53 = vld [vmem:[%s7881_s3 + $0x100] ss:$16 sps:$4 sm:$0xff]   ;;  %v5231_v54 = vld [vmem:[%s7881_s3 + $0x108] ss:$16 sps:$4 sm:$0xff]   ;;  %v708_v58 = vpack.c.bf16 %v660_v52, %v658_v51  ;;  %v5242_v51 = vld [vmem:[%s7883_s5 + $0xc4] ss:$16 sps:$4 sm:$0xff]  }
  0x6c   : > { %1847 = vmatprep.subr.bf16.mxu0 %v5182_v55  ;;  %2050 = vmatprep.subr.bf16.mxu1 %v5185_v56  ;;  %v5236_v55 = vld [vmem:[%s7883_s5 + $0xe4] ss:$16 sps:$4 sm:$0xff]   ;;  %v5239_v56 = vld [vmem:[%s7883_s5 + $0xec] ss:$16 sps:$4 sm:$0xff]   ;;  %v5237_v49 = vld [vmem:[%s7883_s5 + $0xe8] ss:$16 sps:$4 sm:$0xff]  }
  0x6d   : > { %v5245_v52 = vld [vmem:[%s7883_s5 + $0xcc] ss:$16 sps:$4 sm:$0xff]  }
  0x6f   : > { %1848 = vmatpush1.bf16.msra.mxu0 %v5180_v61  ;;  %2051 = vmatpush1.bf16.msra.mxu1 %v5183_v62  ;;  %v662_v61 = vld [vmem:[%s5631_s24 + $0x148] sm:$0xff]  ;;  %v664_v62 = vld [vmem:[%s5631_s24 + $0x158] sm:$0xff] }
  0x70   : > { %1849 = vmatprep.subr.bf16.mxu0 %v5188_v63  ;;  %2052 = vmatprep.subr.bf16.mxu1 %v5191_v0  ;;  %v707_v63 = vpack.c.bf16 %v659_v60, %v657_v59  ;;  %v710_v0 = vpack.c.bf16 %v664_v62, %v662_v61  ;;  %v5248_v59 = vld [vmem:[%s7883_s5 + $0xa4] ss:$16 sps:$4 sm:$0xff]   ;;  %v5251_v60 = vld [vmem:[%s7883_s5 + $0xac] ss:$16 sps:$4 sm:$0xff]  }
  0x71   : > { %1180 = vmatmul.mubr.bf16.gmra.mxu0 %v697_v1  ;;  %1383 = vmatmul.mubr.bf16.gmra.mxu1 %v697_v1  ;;  %v661_v1 = vld [vmem:[%s5631_s24 + $0x140] sm:$0xff] }
  0x72   : > { %1189 = vmatprep.mubr.bf16.mxu0 %v700_v2  ;;  %1392 = vmatprep.mubr.bf16.mxu1 %v700_v2  ;;  %v663_v2 = vld [vmem:[%s5631_s24 + $0x150] sm:$0xff] }
  0x73   : > { %1850 = vmatpush2.bf16.msra.mxu0 %v5186_v3  ;;  %2053 = vmatpush2.bf16.msra.mxu1 %v5189_v4  ;;  %v666_v3 = vld [vmem:[%s5631_s24 + $0x168] sm:$0xff]  ;;  %v668_v4 = vld [vmem:[%s5631_s24 + $0x178] sm:$0xff] }
  0x74   : > { %1851 = vmatprep.subr.bf16.mxu0 %v5194_v5  ;;  %2054 = vmatprep.subr.bf16.mxu1 %v5197_v6  ;;  %v709_v5 = vpack.c.bf16 %v663_v2, %v661_v1  ;;  %v712_v6 = vpack.c.bf16 %v668_v4, %v666_v3  ;;  %v5254_v1 = vld [vmem:[%s7883_s5 + $0x84] ss:$16 sps:$4 sm:$0xff]   ;;  %v5257_v2 = vld [vmem:[%s7883_s5 + $0x8c] ss:$16 sps:$4 sm:$0xff]  }
  0x75   : > { %v463_v3 = vld [vmem:[%s5962_s22 + $0x40] sm:$0xff]  ;;  %v465_v4 = vld [vmem:[%s5962_s22 + $0x50] sm:$0xff] }
  0x77   : > { %1852 = vmatpush2.bf16.msra.mxu0 %v5192_v11  ;;  %2055 = vmatpush2.bf16.msra.mxu1 %v5195_v12  ;;  %v711_v11 = vpack.c.bf16 %v667_v8, %v665_v7  ;;  %v714_v12 = vpack.c.bf16 %v672_v10, %v670_v9  ;;  %v5252_v7 = vld [vmem:[%s7883_s5 + $0x80] ss:$16 sps:$4 sm:$0xff]   ;;  %v5255_v8 = vld [vmem:[%s7883_s5 + $0x88] ss:$16 sps:$4 sm:$0xff]   ;;  %v5260_v9 = vld [vmem:[%s7883_s5 + $0x64] ss:$16 sps:$4 sm:$0xff]  }
  0x78   : > { %1853 = vmatprep.subr.bf16.mxu0 %v5200_v13  ;;  %2056 = vmatprep.subr.bf16.mxu1 %v5203_v14  ;;  %v669_v13 = vld [vmem:[%s5631_s24 + $0x180] sm:$0xff]  ;;  %v671_v14 = vld [vmem:[%s5631_s24 + $0x190] sm:$0xff]  ;;  %v5263_v10 = vld [vmem:[%s7883_s5 + $0x6c] ss:$16 sps:$4 sm:$0xff]  }
  0x79   : > { %1190 = vmatmul.mubr.bf16.gmra.mxu0 %v699_v15  ;;  %1393 = vmatmul.mubr.bf16.gmra.mxu1 %v699_v15  ;;  %v674_v15 = vld [vmem:[%s5631_s24 + $0x1a8] sm:$0xff] }
  0x7a   : > { %1199 = vmatprep.mubr.bf16.mxu0 %v702_v16  ;;  %1402 = vmatprep.mubr.bf16.mxu1 %v702_v16  ;;  %v676_v16 = vld [vmem:[%s5631_s24 + $0x1b8] sm:$0xff] }
  0x7b   : > { %1854 = vmatpush2.bf16.msra.mxu0 %v5198_v17  ;;  %2057 = vmatpush2.bf16.msra.mxu1 %v5201_v18  ;;  %v713_v17 = vpack.c.bf16 %v671_v14, %v669_v13  ;;  %v716_v18 = vpack.c.bf16 %v676_v16, %v674_v15  ;;  %v5258_v13 = vld [vmem:[%s7883_s5 + $0x60] ss:$16 sps:$4 sm:$0xff]   ;;  %v5261_v14 = vld [vmem:[%s7883_s5 + $0x68] ss:$16 sps:$4 sm:$0xff]   ;;  %v5266_v15 = vld [vmem:[%s7883_s5 + $0x44] ss:$16 sps:$4 sm:$0xff]  }
  0x7c   : > { %1855 = vmatprep.subr.bf16.mxu0 %v5206_v19  ;;  %2058 = vmatprep.subr.bf16.mxu1 %v5209_v20  ;;  %v673_v19 = vld [vmem:[%s5631_s24 + $0x1a0] sm:$0xff]  ;;  %v675_v20 = vld [vmem:[%s5631_s24 + $0x1b0] sm:$0xff]  ;;  %v5269_v16 = vld [vmem:[%s7883_s5 + $0x4c] ss:$16 sps:$4 sm:$0xff]  }
  0x7d   : > { %v715_v23 = vpack.c.bf16 %v675_v20, %v673_v19  ;;  %v472_v19 = vld [vmem:[%s5962_s22 + $0x88] sm:$0xff]  ;;  %v474_v20 = vld [vmem:[%s5962_s22 + $0x98] sm:$0xff] }
  0x7f   : > { %1856 = vmatpush2.bf16.msra.mxu0 %v5204_v25  ;;  %2059 = vmatpush2.bf16.msra.mxu1 %v5207_v26  ;;  %v677_v25 = vld [vmem:[%s5631_s24 + $0x1c0] sm:$0xff]  ;;  %v679_v26 = vld [vmem:[%s5631_s24 + $0x1d0] sm:$0xff] }
  0x80   : > { %1857 = vmatprep.subr.bf16.mxu0 %v5212_v27  ;;  %2060 = vmatprep.subr.bf16.mxu1 %v5215_v28  ;;  %v682_v27 = vld [vmem:[%s5631_s24 + $0x1e8] sm:$0xff]  ;;  %v684_v28 = vld [vmem:[%s5631_s24 + $0x1f8] sm:$0xff] }
  0x81   : > { %1200 = vmatmul.mubr.bf16.gmra.mxu0 %v701_v29  ;;  %1403 = vmatmul.mubr.bf16.gmra.mxu1 %v701_v29  ;;  %v717_v29 = vpack.c.bf16 %v679_v26, %v677_v25  ;;  %v532_v26 = vpack.c.bf16 %v474_v20, %v472_v19 }
  0x82   : > { %1209 = vmatprep.mubr.bf16.mxu0 %v704_v30  ;;  %1412 = vmatprep.mubr.bf16.mxu1 %v704_v30  ;;  %v720_v30 = vpack.c.bf16 %v684_v28, %v682_v27  ;;  %v5270_v27 = vld [vmem:[%s7883_s5 + $0x20] ss:$16 sps:$4 sm:$0xff]   ;;  %v5273_v28 = vld [vmem:[%s7883_s5 + $0x28] ss:$16 sps:$4 sm:$0xff]  }
  0x83   : > { %1858 = vmatpush2.bf16.msra.mxu0 %v5210_v31  ;;  %2061 = vmatpush2.bf16.msra.mxu1 %v5213_v32  ;;  %v681_v31 = vld [vmem:[%s5631_s24 + $0x1e0] sm:$0xff]  ;;  %v683_v32 = vld [vmem:[%s5631_s24 + $0x1f0] sm:$0xff] }
  0x84   : > { %1859 = vmatprep.subr.bf16.mxu0 %v5218_v33  ;;  %2062 = vmatprep.subr.bf16.mxu1 %v5221_v34  ;;  %v686_v33 = vld [vmem:[%s5631_s24 + $0x208] sm:$0xff]  ;;  %v688_v34 = vld [vmem:[%s5631_s24 + $0x218] sm:$0xff]  ;;  %v719_v35 = vpack.c.bf16 %v683_v32, %v681_v31  ;;  %v471_v31 = vld [vmem:[%s5962_s22 + $0x80] sm:$0xff] }
  0x85   : > { %v722_v36 = vpack.c.bf16 %v688_v34, %v686_v33  ;;  %v473_v32 = vld [vmem:[%s5962_s22 + $0x90] sm:$0xff]  ;;  %v476_v33 = vld [vmem:[%s5962_s22 + $0xa8] sm:$0xff]  ;;  %v478_v34 = vld [vmem:[%s5962_s22 + $0xb8] sm:$0xff] }
  0x87   : > { %1860 = vmatpush2.bf16.msra.mxu0 %v5216_v39  ;;  %2063 = vmatpush2.bf16.msra.mxu1 %v5219_v40  ;;  %v456_v39 = vld [vmem:[%s5962_s22 + $0x8] sm:$0xff]  ;;  %v458_v40 = vld [vmem:[%s5962_s22 + $0x18] sm:$0xff] }
  0x88   : > { %1861 = vmatprep.subr.bf16.mxu0 %v5224_v41  ;;  %2064 = vmatprep.subr.bf16.mxu1 %v5227_v42  ;;  %v721_v41 = vpack.c.bf16 %v687_v38, %v685_v37  ;;  %v524_v42 = vpack.c.bf16 %v458_v40, %v456_v39  ;;  %v531_v37 = vpack.c.bf16 %v473_v32, %v471_v31  ;;  %v7888_v39 = vmov 0   ;;  %v475_v40 = vld [vmem:[%s5962_s22 + $0xa0] sm:$0xff] }
  0x89   : > { %1210 = vmatmul.mubr.bf16.gmra.mxu0 %v703_v43  ;;  %1413 = vmatmul.mubr.bf16.gmra.mxu1 %v703_v43  ;;  %v455_v43 = vld [vmem:[%s5962_s22] sm:$0xff]  ;;  %v534_v38 = vpack.c.bf16 %v478_v34, %v476_v33 }
  0x8a   : > { %1219 = vmatprep.mubr.bf16.mxu0 %v706_v44  ;;  %1422 = vmatprep.mubr.bf16.mxu1 %v706_v44  ;;  %v457_v44 = vld [vmem:[%s5962_s22 + $0x10] sm:$0xff] }
  0x8b   : > { %1862 = vmatpush2.bf16.msra.mxu0 %v5222_v45  ;;  %2065 = vmatpush2.bf16.msra.mxu1 %v5225_v46  ;;  %v460_v45 = vld [vmem:[%s5962_s22 + $0x28] sm:$0xff]  ;;  %v462_v46 = vld [vmem:[%s5962_s22 + $0x38] sm:$0xff] }
  0x8c   : > { %1863 = vmatprep.subr.bf16.mxu0 %v5230_v47  ;;  %2066 = vmatprep.subr.bf16.mxu1 %v5233_v48  ;;  %v523_v47 = vpack.c.bf16 %v457_v44, %v455_v43  ;;  %v5234_v48 = vld [vmem:[%s7883_s5 + $0xe0] ss:$16 sps:$4 sm:$0xff]   ;;  %v526_v50 = vpack.c.bf16 %v462_v46, %v460_v45  ;;  %v482_v43 = vld [vmem:[%s5962_s22 + $0xd8] sm:$0xff] }
  0x8d   : > { %v479_v46 = vld [vmem:[%s5962_s22 + $0xc0] sm:$0xff] }
  0x8f   : > { %1864 = vmatpush2.bf16.msra.mxu0 %v5228_v53  ;;  %2067 = vmatpush2.bf16.msra.mxu1 %v5231_v54  ;;  %v459_v53 = vld [vmem:[%s5962_s22 + $0x20] sm:$0xff]  ;;  %v461_v54 = vld [vmem:[%s5962_s22 + $0x30] sm:$0xff] }
  0x90   : > { %2482 = vmatprep.subr.bf16.mxu0 %v5236_v55  ;;  %2685 = vmatprep.subr.bf16.mxu1 %v5239_v56  ;;  %v464_v55 = vld [vmem:[%s5962_s22 + $0x48] sm:$0xff]  ;;  %v5240_v56 = vld [vmem:[%s7883_s5 + $0xc0] ss:$16 sps:$4 sm:$0xff]   ;;  %v525_v61 = vpack.c.bf16 %v461_v54, %v459_v53 }
  0x91   : > { %1220 = vmatmul.mubr.bf16.gmra.mxu0 %v705_v57  ;;  %1423 = vmatmul.mubr.bf16.gmra.mxu1 %v705_v57  ;;  %v5243_v57 = vld [vmem:[%s7883_s5 + $0xc8] ss:$16 sps:$4 sm:$0xff]   ;;  %v485_v53 = vld [vmem:[%s5962_s22 + $0xf0] sm:$0xff] }
  0x92   : > { %1229 = vmatprep.mubr.bf16.mxu0 %v708_v58  ;;  %1432 = vmatprep.mubr.bf16.mxu1 %v708_v58  ;;  %v466_v58 = vld [vmem:[%s5962_s22 + $0x58] sm:$0xff]  ;;  %v488_v54 = vld [vmem:[%s5962_s22 + $0x108] sm:$0xff] }
  0x93   : > { %v528_v62 = vpack.c.bf16 %v466_v58, %v464_v55  ;;  %v490_v55 = vld [vmem:[%s5962_s22 + $0x118] sm:$0xff] }
  0x99   : > { %1230 = vmatmul.mubr.bf16.gmra.mxu0 %v707_v63  ;;  %1433 = vmatmul.mubr.bf16.gmra.mxu1 %v707_v63  ;;  %v5246_v63 = vld [vmem:[%s7883_s5 + $0xa0] ss:$16 sps:$4 sm:$0xff]  }
  0x9a   : > { %1239 = vmatprep.mubr.bf16.mxu0 %v710_v0  ;;  %1442 = vmatprep.mubr.bf16.mxu1 %v710_v0  ;;  %v5249_v0 = vld [vmem:[%s7883_s5 + $0xa8] ss:$16 sps:$4 sm:$0xff]  }
  0xa1   : > { %1240 = vmatmul.mubr.bf16.gmra.mxu0 %v709_v5  ;;  %1443 = vmatmul.mubr.bf16.gmra.mxu1 %v709_v5  ;;  %v468_v5 = vld [vmem:[%s5962_s22 + $0x68] sm:$0xff] }
  0xa2   : > { %1249 = vmatprep.mubr.bf16.mxu0 %v712_v6  ;;  %1452 = vmatprep.mubr.bf16.mxu1 %v712_v6  ;;  %v470_v6 = vld [vmem:[%s5962_s22 + $0x78] sm:$0xff] }
  0xa9   : > { %1250 = vmatmul.mubr.bf16.gmra.mxu0 %v711_v11  ;;  %1453 = vmatmul.mubr.bf16.gmra.mxu1 %v711_v11  ;;  %v527_v11 = vpack.c.bf16 %v465_v4, %v463_v3 }
  0xaa   : > { %1259 = vmatprep.mubr.bf16.mxu0 %v714_v12  ;;  %1462 = vmatprep.mubr.bf16.mxu1 %v714_v12  ;;  %v530_v12 = vpack.c.bf16 %v470_v6, %v468_v5 }
  0xb1   : > { %1260 = vmatmul.mubr.bf16.gmra.mxu0 %v713_v17  ;;  %1463 = vmatmul.mubr.bf16.gmra.mxu1 %v713_v17  ;;  %v467_v17 = vld [vmem:[%s5962_s22 + $0x60] sm:$0xff] }
  0xb2   : > { %1269 = vmatprep.mubr.bf16.mxu0 %v716_v18  ;;  %1472 = vmatprep.mubr.bf16.mxu1 %v716_v18  ;;  %v469_v18 = vld [vmem:[%s5962_s22 + $0x70] sm:$0xff] }
  0xb3   : > { %v529_v25 = vpack.c.bf16 %v469_v18, %v467_v17 }
  0xb9   : > { %1270 = vmatmul.mubr.bf16.gmra.mxu0 %v715_v23  ;;  %1473 = vmatmul.mubr.bf16.gmra.mxu1 %v715_v23  ;;  %v5272_v23 = vld [vmem:[%s7883_s5 + $0x24] ss:$16 sps:$4 sm:$0xff]  }
  0xba   : > { %1279 = vmatprep.mubr.bf16.mxu0 %v718_v24  ;;  %1482 = vmatprep.mubr.bf16.mxu1 %v718_v24  ;;  %v5275_v24 = vld [vmem:[%s7883_s5 + $0x2c] ss:$16 sps:$4 sm:$0xff]  }
  0xc1   : > { %1280 = vmatmul.mubr.bf16.gmra.mxu0 %v717_v29  ;;  %1483 = vmatmul.mubr.bf16.gmra.mxu1 %v717_v29  ;;  %v5278_v29 = vld [vmem:[%s7883_s5 + $0x4] ss:$16 sps:$4 sm:$0xff]  }
  0xc2   : > { %1289 = vmatprep.mubr.bf16.mxu0 %v720_v30  ;;  %1492 = vmatprep.mubr.bf16.mxu1 %v720_v30  ;;  %v5281_v30 = vld [vmem:[%s7883_s5 + $0xc] ss:$16 sps:$4 sm:$0xff]  }
  0xc9   : > { %1290 = vmatmul.mubr.bf16.gmra.mxu0 %v719_v35  ;;  %1493 = vmatmul.mubr.bf16.gmra.mxu1 %v719_v35  ;;  %v5276_v35 = vld [vmem:[%s7883_s5] ss:$16 sps:$4 sm:$0xff]  }
  0xca   : > { %1299 = vmatprep.mubr.bf16.mxu0 %v722_v36  ;;  %1502 = vmatprep.mubr.bf16.mxu1 %v722_v36  ;;  %v5279_v36 = vld [vmem:[%s7883_s5 + $0x8] ss:$16 sps:$4 sm:$0xff]  }
  0xd1   : > { %1300 = vmatmul.mubr.bf16.gmra.mxu0 %v721_v41  ;;  %1503 = vmatmul.mubr.bf16.gmra.mxu1 %v721_v41  ;;  %v477_v41 = vld [vmem:[%s5962_s22 + $0xb0] sm:$0xff] }
  0xd2   : > { %1865 = vmatprep.mubr.bf16.mxu0 %v524_v42  ;;  %2068 = vmatprep.mubr.bf16.mxu1 %v524_v42  ;;  %v480_v42 = vld [vmem:[%s5962_s22 + $0xc8] sm:$0xff]  ;;  %v533_v44 = vpack.c.bf16 %v477_v41, %v475_v40  ;;  %v501_v40 = vld [vmem:[%s5962_s22 + $0x170] sm:$0xff] }
  0xd3   : > { %v536_v45 = vpack.c.bf16 %v482_v43, %v480_v42  ;;  %v504_v43 = vld [vmem:[%s5962_s22 + $0x188] sm:$0xff] }
  0xd9   : > { %1866 = vmatmul.mubr.bf16.vlgmr.msra.gmra.mxu0 %v523_v47  ;;  %2069 = vmatmul.mubr.bf16.vlgmr.msra.gmra.mxu1 %v523_v47  ;;  %v481_v47 = vld [vmem:[%s5962_s22 + $0xd0] sm:$0xff] }
  0xda   : > { %2483 = vmatpush1.bf16.msra.mxu0 %v5234_v48  ;;  %2686 = vmatpush1.bf16.msra.mxu1 %v5237_v49  ;;  %v484_v48 = vld [vmem:[%s5962_s22 + $0xe8] sm:$0xff]  ;;  %v486_v49 = vld [vmem:[%s5962_s22 + $0xf8] sm:$0xff] }
  0xdb   : > { %1875 = vmatprep.mubr.bf16.mxu0 %v526_v50  ;;  %2078 = vmatprep.mubr.bf16.mxu1 %v526_v50  ;;  %v535_v50 = vpack.c.bf16 %v481_v47, %v479_v46 }
  0xdc   : > { %2484 = vmatprep.subr.bf16.mxu0 %v5242_v51  ;;  %2687 = vmatprep.subr.bf16.mxu1 %v5245_v52  ;;  %v538_v51 = vpack.c.bf16 %v486_v49, %v484_v48  ;;  %v483_v52 = vld [vmem:[%s5962_s22 + $0xe0] sm:$0xff] }
  0xde   : > { %2485 = vmatpush1.bf16.msra.mxu0 %v5240_v56  ;;  %2688 = vmatpush1.bf16.msra.mxu1 %v5243_v57  ;;  %v537_v56 = vpack.c.bf16 %v485_v53, %v483_v52  ;;  %v540_v57 = vpack.c.bf16 %v490_v55, %v488_v54  ;;  %v503_v53 = vld [vmem:[%s5962_s22 + $0x180] sm:$0xff]  ;;  %v505_v54 = vld [vmem:[%s5962_s22 + $0x190] sm:$0xff] }
  0xdf   : > { %2486 = vmatprep.subr.bf16.mxu0 %v5248_v59  ;;  %2689 = vmatprep.subr.bf16.mxu1 %v5251_v60  ;;  %v487_v60 = vld [vmem:[%s5962_s22 + $0x100] sm:$0xff] }
  0xe1   : > { %1876 = vmatmul.mubr.bf16.gmra.mxu0 %v525_v61  ;;  %2079 = vmatmul.mubr.bf16.gmra.mxu1 %v525_v61  ;;  %v489_v61 = vld [vmem:[%s5962_s22 + $0x110] sm:$0xff] }
  0xe2   : > { %1885 = vmatprep.mubr.bf16.mxu0 %v528_v62  ;;  %2088 = vmatprep.mubr.bf16.mxu1 %v528_v62  ;;  %v539_v4 = vpack.c.bf16 %v489_v61, %v487_v60  ;;  %v510_v60 = vld [vmem:[%s5962_s22 + $0x1b8] sm:$0xff] }
  0xe3   : > { %2487 = vmatpush1.bf16.msra.mxu0 %v5246_v63  ;;  %2690 = vmatpush1.bf16.msra.mxu1 %v5249_v0  ;;  %v492_v0 = vld [vmem:[%s5962_s22 + $0x128] sm:$0xff] }
  0xe4   : > { %2488 = vmatprep.subr.bf16.mxu0 %v5254_v1  ;;  %2691 = vmatprep.subr.bf16.mxu1 %v5257_v2  ;;  %v494_v1 = vld [vmem:[%s5962_s22 + $0x138] sm:$0xff] }
  0xe5   : > { %v542_v5 = vpack.c.bf16 %v494_v1, %v492_v0  ;;  %v547_v1 = vpack.c.bf16 %v505_v54, %v503_v53  ;;  %v513_v53 = vld [vmem:[%s5962_s22 + $0x1d0] sm:$0xff] }
  0xe7   : > { %2489 = vmatpush1.bf16.msra.mxu0 %v5252_v7  ;;  %2692 = vmatpush1.bf16.msra.mxu1 %v5255_v8 }
  0xe8   : > { %2490 = vmatprep.subr.bf16.mxu0 %v5260_v9  ;;  %2693 = vmatprep.subr.bf16.mxu1 %v5263_v10  ;;  %v491_v10 = vld [vmem:[%s5962_s22 + $0x120] sm:$0xff] }
  0xe9   : > { %1886 = vmatmul.mubr.bf16.gmra.mxu0 %v527_v11  ;;  %2089 = vmatmul.mubr.bf16.gmra.mxu1 %v527_v11  ;;  %v493_v11 = vld [vmem:[%s5962_s22 + $0x130] sm:$0xff] }
  0xea   : > { %1895 = vmatprep.mubr.bf16.mxu0 %v530_v12  ;;  %2098 = vmatprep.mubr.bf16.mxu1 %v530_v12  ;;  %v541_v18 = vpack.c.bf16 %v493_v11, %v491_v10 }
  0xeb   : > { %2491 = vmatpush1.bf16.msra.mxu0 %v5258_v13  ;;  %2694 = vmatpush1.bf16.msra.mxu1 %v5261_v14  ;;  %v496_v14 = vld [vmem:[%s5962_s22 + $0x148] sm:$0xff] }
  0xec   : > { %2492 = vmatprep.subr.bf16.mxu0 %v5266_v15  ;;  %2695 = vmatprep.subr.bf16.mxu1 %v5269_v16  ;;  %v498_v15 = vld [vmem:[%s5962_s22 + $0x158] sm:$0xff] }
  0xed   : > { %v544_v19 = vpack.c.bf16 %v498_v15, %v496_v14  ;;  %v507_v15 = vld [vmem:[%s5962_s22 + $0x1a0] sm:$0xff] }
  0xef   : > { %2493 = vmatpush1.bf16.msra.mxu0 %v5264_v21  ;;  %2696 = vmatpush1.bf16.msra.mxu1 %v5267_v22 }
  0xf0   : > { %2494 = vmatprep.subr.bf16.mxu0 %v5272_v23  ;;  %2697 = vmatprep.subr.bf16.mxu1 %v5275_v24  ;;  %v495_v24 = vld [vmem:[%s5962_s22 + $0x140] sm:$0xff] }
  0xf1   : > { %1896 = vmatmul.mubr.bf16.gmra.mxu0 %v529_v25  ;;  %2099 = vmatmul.mubr.bf16.gmra.mxu1 %v529_v25  ;;  %v497_v25 = vld [vmem:[%s5962_s22 + $0x150] sm:$0xff] }
  0xf2   : > { %1905 = vmatprep.mubr.bf16.mxu0 %v532_v26  ;;  %2108 = vmatprep.mubr.bf16.mxu1 %v532_v26  ;;  %v543_v32 = vpack.c.bf16 %v497_v25, %v495_v24  ;;  %v512_v25 = vld [vmem:[%s5962_s22 + $0x1c8] sm:$0xff] }
  0xf3   : > { %2495 = vmatpush1.bf16.msra.mxu0 %v5270_v27  ;;  %2698 = vmatpush1.bf16.msra.mxu1 %v5273_v28  ;;  %v500_v28 = vld [vmem:[%s5962_s22 + $0x168] sm:$0xff] }
  0xf4   : > { %2496 = vmatprep.subr.bf16.mxu0 %v5278_v29  ;;  %2699 = vmatprep.subr.bf16.mxu1 %v5281_v30  ;;  %v502_v29 = vld [vmem:[%s5962_s22 + $0x178] sm:$0xff] }
  0xf5   : > { %v546_v33 = vpack.c.bf16 %v502_v29, %v500_v28  ;;  %v514_v28 = vld [vmem:[%s5962_s22 + $0x1d8] sm:$0xff] }
  0xf7   : > { %2497 = vmatpush1.bf16.msra.mxu0 %v5276_v35  ;;  %2700 = vmatpush1.bf16.msra.mxu1 %v5279_v36 }
  0xf8   : > { %3649 = vmatprep.subr.bf16.mxu0 %v7888_v39  ;;  %3818 = vmatprep.subr.bf16.mxu1 %v7888_v39 }
  0xf9   : > { %1906 = vmatmul.mubr.bf16.gmra.mxu0 %v531_v37  ;;  %2109 = vmatmul.mubr.bf16.gmra.mxu1 %v531_v37 }
  0xfa   : > { %1915 = vmatprep.mubr.bf16.mxu0 %v534_v38  ;;  %2118 = vmatprep.mubr.bf16.mxu1 %v534_v38  ;;  %v499_v38 = vld [vmem:[%s5962_s22 + $0x160] sm:$0xff] }
  0xfb   : > { %v545_v47 = vpack.c.bf16 %v501_v40, %v499_v38  ;;  %v552_v38 = vpack.c.bf16 %v514_v28, %v512_v25 }
 0x101   : > { %1916 = vmatmul.mubr.bf16.gmra.mxu0 %v533_v44  ;;  %2119 = vmatmul.mubr.bf16.gmra.mxu1 %v533_v44  ;;  %v506_v44 = vld [vmem:[%s5962_s22 + $0x198] sm:$0xff] }
 0x102   : > { %1925 = vmatprep.mubr.bf16.mxu0 %v536_v45  ;;  %2128 = vmatprep.mubr.bf16.mxu1 %v536_v45  ;;  %v548_v48 = vpack.c.bf16 %v506_v44, %v504_v43 }
 0x109   : > { %1926 = vmatmul.mubr.bf16.gmra.mxu0 %v535_v50  ;;  %2129 = vmatmul.mubr.bf16.gmra.mxu1 %v535_v50 }
 0x10a   : > { %1935 = vmatprep.mubr.bf16.mxu0 %v538_v51  ;;  %2138 = vmatprep.mubr.bf16.mxu1 %v538_v51 }
 0x111   : > { %v6092_v58 = vpop.f32.mrf.mxu0  ;;  %v6094_v59 = vpop.f32.mrf.mxu1  ;;  %1936 = vmatmul.mubr.bf16.gmra.mxu0 %v537_v56  ;;  %2139 = vmatmul.mubr.bf16.gmra.mxu1 %v537_v56 }
 0x112   : > { %1945 = vmatprep.mubr.bf16.mxu0 %v540_v57  ;;  %2148 = vmatprep.mubr.bf16.mxu1 %v540_v57  ;;  %v508_v57 = vld [vmem:[%s5962_s22 + $0x1a8] sm:$0xff] }
 0x113   : > { %v6098_v62 = vpop.f32.mrf.mxu0  ;;  %v6100_v63 = vpop.f32.mrf.mxu1 }
 0x115   : > { %v6104_v2 = vpop.f32.mrf.mxu0  ;;  %v6106_v3 = vpop.f32.mrf.mxu1 }
 0x117   : > { %v6108_v6 = vpop.f32.mrf.mxu0  ;;  %v6110_v7 = vpop.f32.mrf.mxu1 }
 0x119   : > { %v6112_v8 = vpop.f32.mrf.mxu0  ;;  %v6114_v9 = vpop.f32.mrf.mxu1  ;;  %1946 = vmatmul.mubr.bf16.gmra.mxu0 %v539_v4  ;;  %2149 = vmatmul.mubr.bf16.gmra.mxu1 %v539_v4  ;;  %v550_v4 = vpack.c.bf16 %v510_v60, %v508_v57  ;;  %v516_v60 = vld [vmem:[%s5962_s22 + $0x1e8] sm:$0xff] }
 0x11a   : > { %1955 = vmatprep.mubr.bf16.mxu0 %v542_v5  ;;  %2158 = vmatprep.mubr.bf16.mxu1 %v542_v5 }
 0x11b   : > { %v6118_v12 = vpop.f32.mrf.mxu0  ;;  %v6120_v13 = vpop.f32.mrf.mxu1 }
 0x11d   : > { %v6124_v16 = vpop.f32.mrf.mxu0  ;;  %v6126_v17 = vpop.f32.mrf.mxu1 }
 0x11f   : > { %v6128_v20 = vpop.f32.mrf.mxu0  ;;  %v6130_v21 = vpop.f32.mrf.mxu1 }
 0x121   : > { %v6132_v22 = vpop.f32.mrf.mxu0  ;;  %v6134_v23 = vpop.f32.mrf.mxu1  ;;  %1956 = vmatmul.mubr.bf16.gmra.mxu0 %v541_v18  ;;  %2159 = vmatmul.mubr.bf16.gmra.mxu1 %v541_v18  ;;  %v509_v18 = vld [vmem:[%s5962_s22 + $0x1b0] sm:$0xff] }
 0x122   : > { %1965 = vmatprep.mubr.bf16.mxu0 %v544_v19  ;;  %2168 = vmatprep.mubr.bf16.mxu1 %v544_v19 }
 0x123   : > { %v6138_v26 = vpop.f32.mrf.mxu0  ;;  %v6140_v27 = vpop.f32.mrf.mxu1 }
 0x125   : > { %v6144_v30 = vpop.f32.mrf.mxu0  ;;  %v6146_v31 = vpop.f32.mrf.mxu1 }
 0x127   : > { %v6148_v34 = vpop.f32.mrf.mxu0  ;;  %v6150_v35 = vpop.f32.mrf.mxu1 }
 0x129   : > { %v6152_v36 = vpop.f32.mrf.mxu0  ;;  %v6154_v37 = vpop.f32.mrf.mxu1  ;;  %1966 = vmatmul.mubr.bf16.gmra.mxu0 %v543_v32  ;;  %2169 = vmatmul.mubr.bf16.gmra.mxu1 %v543_v32 }
 0x12a   : > { %1975 = vmatprep.mubr.bf16.mxu0 %v546_v33  ;;  %2178 = vmatprep.mubr.bf16.mxu1 %v546_v33  ;;  %v549_v33 = vpack.c.bf16 %v509_v18, %v507_v15 }
 0x12b   : > { %v6158_v41 = vpop.f32.mrf.mxu0  ;;  %v6160_v42 = vpop.f32.mrf.mxu1 }
 0x12c   : > { %7891 = vst [vmem:[#allocation3_spill] sm:$0xff] %v6158_v41  ;;  %7892 = vst [vmem:[#allocation4_spill] sm:$0xff] %v6160_v42 }
 0x12d   : > { %v6164_v45 = vpop.f32.mrf.mxu0  ;;  %v6166_v46 = vpop.f32.mrf.mxu1 }
 0x12e   : > { %7893 = vst [vmem:[#allocation5_spill] sm:$0xff] %v6164_v45  ;;  %7894 = vst [vmem:[#allocation6_spill] sm:$0xff] %v6166_v46 }
 0x12f   : > { %v6168_v49 = vpop.f32.mrf.mxu0  ;;  %v6170_v50 = vpop.f32.mrf.mxu1 }
 0x130   : > { %7895 = vst [vmem:[#allocation7_spill] sm:$0xff] %v6168_v49  ;;  %7896 = vst [vmem:[#allocation8_spill] sm:$0xff] %v6170_v50 }
 0x131   : > { %v6172_v51 = vpop.f32.mrf.mxu0  ;;  %v6174_v52 = vpop.f32.mrf.mxu1  ;;  %1976 = vmatmul.mubr.bf16.gmra.mxu0 %v545_v47  ;;  %2179 = vmatmul.mubr.bf16.gmra.mxu1 %v545_v47 }
 0x132   : > { %7897 = vst [vmem:[#allocation9_spill] sm:$0xff] %v6172_v51  ;;  %7898 = vst [vmem:[#allocation10_spill] sm:$0xff] %v6174_v52  ;;  %1985 = vmatprep.mubr.bf16.mxu0 %v548_v48  ;;  %2188 = vmatprep.mubr.bf16.mxu1 %v548_v48  ;;  %v511_v48 = vld [vmem:[%s5962_s22 + $0x1c0] sm:$0xff] }
 0x133   : > { %v6178_v55 = vpop.f32.mrf.mxu0  ;;  %v6180_v56 = vpop.f32.mrf.mxu1  ;;  %v551_v18 = vpack.c.bf16 %v513_v53, %v511_v48  ;;  %v520_v48 = vld [vmem:[%s5962_s22 + $0x208] sm:$0xff]  ;;  %v522_v53 = vld [vmem:[%s5962_s22 + $0x218] sm:$0xff] }
 0x134   : > { %7899 = vst [vmem:[#allocation11_spill] sm:$0xff] %v6178_v55  ;;  %7900 = vst [vmem:[#allocation12_spill] sm:$0xff] %v6180_v56  ;;  %v5313_v56 = vld [vmem:[%s7885_s7 + $0xc0] sm:$0xff]  }
 0x135   : > { %v6184_v61 = vpop.f32.mrf.mxu0  ;;  %v6186_v0 = vpop.f32.mrf.mxu1 }
 0x136   : > { %7901 = vst [vmem:[#allocation13_spill] sm:$0xff] %v6184_v61  ;;  %7902 = vst [vmem:[#allocation14_spill] sm:$0xff] %v6186_v0  ;;  %v5312_v61 = vld [vmem:[%s7885_s7 + $0x40] sm:$0xff]  }
 0x137   : > { %v6188_v5 = vpop.f32.mrf.mxu0  ;;  %v6190_v10 = vpop.f32.mrf.mxu1 }
 0x138   : > { %7903 = vst [vmem:[#allocation15_spill] sm:$0xff] %v6188_v5  ;;  %7904 = vst [vmem:[#allocation16_spill] sm:$0xff] %v6190_v10 }
 0x139   : > { %v6192_v11 = vpop.f32.mrf.mxu0  ;;  %v6194_v14 = vpop.f32.mrf.mxu1  ;;  %1986 = vmatmul.mubr.bf16.gmra.mxu0 %v547_v1  ;;  %2189 = vmatmul.mubr.bf16.gmra.mxu1 %v547_v1  ;;  %v518_v1 = vld [vmem:[%s5962_s22 + $0x1f8] sm:$0xff] }
 0x13a   : > { %7905 = vst [vmem:[#allocation17_spill] sm:$0xff] %v6192_v11  ;;  %7906 = vst [vmem:[#allocation18_spill] sm:$0xff] %v6194_v14  ;;  %1995 = vmatprep.mubr.bf16.mxu0 %v550_v4  ;;  %2198 = vmatprep.mubr.bf16.mxu1 %v550_v4  ;;  %v554_v25 = vpack.c.bf16 %v518_v1, %v516_v60 }
 0x13b   : > { %v6198_v19 = vpop.f32.mrf.mxu0  ;;  %v6200_v24 = vpop.f32.mrf.mxu1 }
 0x13c   : > { %7907 = vst [vmem:[#allocation19_spill] sm:$0xff] %v6198_v19  ;;  %7908 = vst [vmem:[#allocation20_spill] sm:$0xff] %v6200_v24  ;;  %v5311_v19 = vld [vmem:[%s7885_s7 + $0xc8] sm:$0xff]  }
 0x13d   : > { %v6204_v29 = vpop.f32.mrf.mxu0  ;;  %v6206_v32 = vpop.f32.mrf.mxu1 }
 0x13e   : > { %7909 = vst [vmem:[#allocation21_spill] sm:$0xff] %v6204_v29  ;;  %7910 = vst [vmem:[#allocation22_spill] sm:$0xff] %v6206_v32 }
 0x13f   : > { %v6208_v40 = vpop.f32.mrf.mxu0  ;;  %v6210_v43 = vpop.f32.mrf.mxu1 }
 0x140   : > { %7911 = vst [vmem:[#allocation23_spill] sm:$0xff] %v6208_v40  ;;  %7912 = vst [vmem:[#allocation24_spill] sm:$0xff] %v6210_v43 }
 0x141   : > { %v6212_v44 = vpop.f32.mrf.mxu0  ;;  %v6214_v47 = vpop.f32.mrf.mxu1  ;;  %1996 = vmatmul.mubr.bf16.gmra.mxu0 %v549_v33  ;;  %2199 = vmatmul.mubr.bf16.gmra.mxu1 %v549_v33 }
 0x142   : > { %7913 = vst [vmem:[#allocation25_spill] sm:$0xff] %v6212_v44  ;;  %7914 = vst [vmem:[#allocation26_spill] sm:$0xff] %v6214_v47  ;;  %2005 = vmatprep.mubr.bf16.mxu0 %v552_v38  ;;  %2208 = vmatprep.mubr.bf16.mxu1 %v552_v38 }
 0x143   : > { %v6218_v54 = vpop.f32.mrf.mxu0  ;;  %v6220_v57 = vpop.f32.mrf.mxu1 }
 0x144   : > { %7915 = vst [vmem:[#allocation27_spill] sm:$0xff] %v6218_v54  ;;  %7916 = vst [vmem:[#allocation28_spill] sm:$0xff] %v6220_v57  ;;  %v515_v57 = vld [vmem:[%s5962_s22 + $0x1e0] sm:$0xff] }
 0x145   : > { %v6224_v4 = vpop.f32.mrf.mxu0  ;;  %v6226_v15 = vpop.f32.mrf.mxu1 }
 0x146   : > { %7917 = vst [vmem:[#allocation29_spill] sm:$0xff] %v6224_v4  ;;  %7918 = vst [vmem:[#allocation30_spill] sm:$0xff] %v6226_v15  ;;  %v517_v4 = vld [vmem:[%s5962_s22 + $0x1f0] sm:$0xff] }
 0x147   : > { %v6228_v28 = vpop.f32.mrf.mxu0  ;;  %v6230_v33 = vpop.f32.mrf.mxu1 }
 0x148   : > { %7919 = vst [vmem:[#allocation31_spill] sm:$0xff] %v6228_v28  ;;  %7920 = vst [vmem:[#allocation32_spill] sm:$0xff] %v6230_v33  ;;  %v521_v28 = vld [vmem:[%s5962_s22 + $0x210] sm:$0xff] }
 0x149   : > { %v6232_v38 = vpop.f32.mrf.mxu0  ;;  %v6234_v39 = vpop.f32.mrf.mxu1  ;;  %2006 = vmatmul.mubr.bf16.gmra.mxu0 %v551_v18  ;;  %2209 = vmatmul.mubr.bf16.gmra.mxu1 %v551_v18 }
 0x14a   : > { %7921 = vst [vmem:[#allocation33_spill] sm:$0xff] %v6232_v38  ;;  %7922 = vst [vmem:[#allocation34_spill] sm:$0xff] %v6234_v39  ;;  %2015 = vmatprep.mubr.bf16.mxu0 %v554_v25  ;;  %2218 = vmatprep.mubr.bf16.mxu1 %v554_v25  ;;  %v553_v39 = vpack.c.bf16 %v517_v4, %v515_v57  ;;  %v556_v38 = vpack.c.bf16 %v522_v53, %v520_v48 }
 0x14b   : > { %v6238_v54 = vpop.f32.mrf.mxu0  ;;  %v6240_v15 = vpop.f32.mrf.mxu1 }
 0x14c   : > { %7923 = vst [vmem:[#allocation35_spill] sm:$0xff] %v6238_v54  ;;  %7924 = vst [vmem:[#allocation36_spill] sm:$0xff] %v6240_v15  ;;  %v519_v15 = vld [vmem:[%s5962_s22 + $0x200] sm:$0xff] }
 0x14d   : > { %v6244_v60 = vpop.f32.mrf.mxu0  ;;  %v6246_v1 = vpop.f32.mrf.mxu1  ;;  %v555_v48 = vpack.c.bf16 %v521_v28, %v519_v15  ;;  %v2239_v15 = vld [vmem:[%s6274_s25] sm:$0xff]  ;;  %v2240_v28 = vld [vmem:[%s6274_s25 + $0x8] sm:$0xff] }
 0x14e   : > { %7925 = vst [vmem:[#allocation37_spill] sm:$0xff] %v6244_v60  ;;  %7926 = vst [vmem:[#allocation38_spill] sm:$0xff] %v6246_v1 }
 0x14f   : > { %v6248_v18 = vpop.f32.mrf.mxu0  ;;  %v6250_v25 = vpop.f32.mrf.mxu1 }
 0x150   : > { %7927 = vst [vmem:[#allocation39_spill] sm:$0xff] %v6248_v18  ;;  %7928 = vst [vmem:[#allocation40_spill] sm:$0xff] %v6250_v25 }
 0x151   : > { %v6252_v33 = vpop.f32.mrf.mxu0  ;;  %v6254_v54 = vpop.f32.mrf.mxu1  ;;  %2016 = vmatmul.mubr.bf16.gmra.mxu0 %v553_v39  ;;  %2219 = vmatmul.mubr.bf16.gmra.mxu1 %v553_v39 }
 0x152   : > { %7929 = vst [vmem:[#allocation41_spill] sm:$0xff] %v6252_v33  ;;  %7930 = vst [vmem:[#allocation42_spill] sm:$0xff] %v6254_v54  ;;  %2025 = vmatprep.mubr.bf16.mxu0 %v556_v38  ;;  %2228 = vmatprep.mubr.bf16.mxu1 %v556_v38 }
 0x153   : > { %v6258_v60 = vpop.f32.mrf.mxu0  ;;  %v6260_v47 = vpop.f32.mrf.mxu1 }
 0x154   : > { %7931 = vst [vmem:[#allocation43_spill] sm:$0xff] %v6258_v60  ;;  %7932 = vst [vmem:[#allocation44_spill] sm:$0xff] %v6260_v47  ;;  %v5282_v60 = vld [vmem:[%s7885_s7 + $0x38] sm:$0xff]  }
 0x155   : > { %v6263_v57 = vpop.f32.mrf.mxu0  ;;  %v6265_v4 = vpop.f32.mrf.mxu1 }
 0x156   : > { %7933 = vst [vmem:[#allocation45_spill] sm:$0xff] %v6263_v57  ;;  %7934 = vst [vmem:[#allocation46_spill] sm:$0xff] %v6265_v4  ;;  %v7939_v57 = vmov 0  }
 0x157   : > { %v6267_v53 = vpop.f32.mrf.mxu0  ;;  %v6269_v33 = vpop.f32.mrf.mxu1 }
 0x158   : > { %7935 = vst [vmem:[#allocation47_spill] sm:$0xff] %v6267_v53  ;;  %7936 = vst [vmem:[#allocation48_spill] sm:$0xff] %v6269_v33 }
 0x159   : > { %v6276_v39 = vpop.f32.mrf.mxu0  ;;  %v6278_v38 = vpop.f32.mrf.mxu1  ;;  %2026 = vmatmul.mubr.bf16.gmra.mxu0 %v555_v48  ;;  %2229 = vmatmul.mubr.bf16.gmra.mxu1 %v555_v48 }
 0x15a   : > { %7937 = vst [vmem:[#allocation49_spill] sm:$0xff] %v6276_v39  ;;  %7938 = vst [vmem:[#allocation50_spill] sm:$0xff] %v6278_v38  ;;  %2514 = vmatprep.mubr.bf16.mxu0 %v7939_v57  ;;  %2717 = vmatprep.mubr.bf16.mxu1 %v7939_v57  ;;  %v2273_v39 = vpack.c.bf16 %v2240_v28, %v2239_v15  ;;  %v2241_v15 = vld [vmem:[%s6274_s25 + $0x10] sm:$0xff]  ;;  %v2242_v28 = vld [vmem:[%s6274_s25 + $0x18] sm:$0xff] }
 0x15b   : > { %v6284_v33 = vpop.f32.mrf.mxu0  ;;  %v6286_v53 = vpop.f32.mrf.mxu1 }
 0x15c   : > { %7940 = vst [vmem:[#allocation51_spill] sm:$0xff] %v6284_v33  ;;  %7941 = vst [vmem:[#allocation52_spill] sm:$0xff] %v6286_v53  ;;  %v5283_v33 = vld [vmem:[%s7885_s7 + $0xb8] sm:$0xff]  }
 0x15d   : > { %v6288_v4 = vpop.f32.mrf.mxu0  ;;  %v6290_v47 = vpop.f32.mrf.mxu1 }
 0x15e   : > { %7942 = vst [vmem:[#allocation53_spill] sm:$0xff] %v6288_v4  ;;  %7943 = vst [vmem:[#allocation54_spill] sm:$0xff] %v6290_v47  ;;  %v5287_v4 = vld [vmem:[%s7885_s7 + $0xa8] sm:$0xff]  }
 0x15f   : > { %v6292_v38 = vpop.f32.mrf.mxu0  ;;  %v6294_v48 = vpop.f32.mrf.mxu1 }
 0x160   : > { %7944 = vst [vmem:[#allocation55_spill] sm:$0xff] %v6292_v38  ;;  %7945 = vst [vmem:[#allocation56_spill] sm:$0xff] %v6294_v48 }
 0x161   : > { %v6302_v54 = vpop.f32.mrf.mxu0  ;;  %v6304_v53 = vpop.f32.mrf.mxu1  ;;  %2515 = vmatmul.mubr.bf16.vlgmr.msra.gmra.mxu0 %v2273_v39  ;;  %2718 = vmatmul.mubr.bf16.vlgmr.msra.gmra.mxu1 %v2273_v39  ;;  %v5285_v39 = vld [vmem:[%s7885_s7 + $0xb0] sm:$0xff]  }
 0x162   : > { %7946 = vst [vmem:[#allocation57_spill] sm:$0xff] %v6302_v54  ;;  %7947 = vst [vmem:[#allocation58_spill] sm:$0xff] %v6304_v53  ;;  %2524 = vmatprep.mubr.bf16.mxu0 %v7939_v57  ;;  %2727 = vmatprep.mubr.bf16.mxu1 %v7939_v57  ;;  %v5284_v54 = vld [vmem:[%s7885_s7 + $0x30] sm:$0xff]  }
 0x163   : > { %v6310_v48 = vpop.f32.mrf.mxu0  ;;  %v6312_v38 = vpop.f32.mrf.mxu1  ;;  %3650 = vmatpush1.bf16.msra.mxu0 %v5282_v60  ;;  %3819 = vmatpush1.bf16.msra.mxu1 %v5283_v33 }
 0x164   : > { %7948 = vst [vmem:[#allocation59_spill] sm:$0xff] %v6310_v48  ;;  %7949 = vst [vmem:[#allocation60_spill] sm:$0xff] %v6312_v38  ;;  %3651 = vmatprep.subr.bf16.mxu0 %v7939_v57  ;;  %3820 = vmatprep.subr.bf16.mxu1 %v7939_v57  ;;  %v2274_v38 = vpack.c.bf16 %v2242_v28, %v2241_v15  ;;  %v5286_v48 = vld [vmem:[%s7885_s7 + $0x28] sm:$0xff]  }
 0x165   : > { %v6322_v53 = vpop.f32.mrf.mxu0  ;;  %v6324_v47 = vpop.f32.mrf.mxu1 }
 0x166   : > { %7950 = vst [vmem:[#allocation61_spill] sm:$0xff] %v6322_v53  ;;  %7951 = vst [vmem:[#allocation62_spill] sm:$0xff] %v6324_v47  ;;  %v5291_v53 = vld [vmem:[%s7885_s7 + $0x98] sm:$0xff]  }
 0x167   : > { %v6326_v33 = vpop.f32.mrf.mxu0  ;;  %v6328_v60 = vpop.f32.mrf.mxu1  ;;  %3652 = vmatpush1.bf16.msra.mxu0 %v5284_v54  ;;  %3821 = vmatpush1.bf16.msra.mxu1 %v5285_v39  ;;  %v2243_v54 = vld [vmem:[%s6274_s25 + $0x20] sm:$0xff]  ;;  %v2244_v39 = vld [vmem:[%s6274_s25 + $0x28] sm:$0xff] }
 0x168   : > { %7952 = vst [vmem:[#allocation63_spill] sm:$0xff] %v6326_v33  ;;  %7953 = vst [vmem:[#allocation64_spill] sm:$0xff] %v6328_v60  ;;  %3653 = vmatprep.subr.bf16.mxu0 %v7939_v57  ;;  %3822 = vmatprep.subr.bf16.mxu1 %v7939_v57 }
 0x169   : > { %v6338_v15 = vpop.f32.mrf.mxu0  ;;  %v6340_v28 = vpop.f32.mrf.mxu1  ;;  %2525 = vmatmul.mubr.bf16.gmra.mxu0 %v2274_v38  ;;  %2728 = vmatmul.mubr.bf16.gmra.mxu1 %v2274_v38  ;;  %v5289_v38 = vld [vmem:[%s7885_s7 + $0xa0] sm:$0xff]  }
 0x16a   : > { %7954 = vst [vmem:[#allocation65_spill] sm:$0xff] %v6338_v15  ;;  %7955 = vst [vmem:[#allocation66_spill] sm:$0xff] %v6340_v28  ;;  %2534 = vmatprep.mubr.bf16.mxu0 %v7939_v57  ;;  %2737 = vmatprep.mubr.bf16.mxu1 %v7939_v57  ;;  %v5288_v15 = vld [vmem:[%s7885_s7 + $0x20] sm:$0xff]  }
 0x16b   : > { %v6346_v60 = vpop.f32.mrf.mxu0  ;;  %v6348_v33 = vpop.f32.mrf.mxu1  ;;  %3654 = vmatpush1.bf16.msra.mxu0 %v5286_v48  ;;  %3823 = vmatpush1.bf16.msra.mxu1 %v5287_v4 }
 0x16c   : > { %7956 = vst [vmem:[#allocation67_spill] sm:$0xff] %v6346_v60  ;;  %7957 = vst [vmem:[#allocation68_spill] sm:$0xff] %v6348_v33  ;;  %3655 = vmatprep.subr.bf16.mxu0 %v7939_v57  ;;  %3824 = vmatprep.subr.bf16.mxu1 %v7939_v57  ;;  %v2275_v33 = vpack.c.bf16 %v2244_v39, %v2243_v54  ;;  %v5290_v60 = vld [vmem:[%s7885_s7 + $0x18] sm:$0xff]  }
 0x16d   : > { %v6358_v28 = vpop.f32.mrf.mxu0  ;;  %v6360_v47 = vpop.f32.mrf.mxu1 }
 0x16e   : > { %7958 = vst [vmem:[#allocation69_spill] sm:$0xff] %v6358_v28  ;;  %7959 = vst [vmem:[#allocation70_spill] sm:$0xff] %v6360_v47  ;;  %v5295_v28 = vld [vmem:[%s7885_s7 + $0x88] sm:$0xff]  }
 0x16f   : > { %v6362_v4 = vpop.f32.mrf.mxu0  ;;  %v6364_v48 = vpop.f32.mrf.mxu1  ;;  %3656 = vmatpush1.bf16.msra.mxu0 %v5288_v15  ;;  %3825 = vmatpush1.bf16.msra.mxu1 %v5289_v38  ;;  %v2245_v15 = vld [vmem:[%s6274_s25 + $0x30] sm:$0xff]  ;;  %v2246_v38 = vld [vmem:[%s6274_s25 + $0x38] sm:$0xff] }
 0x170   : > { %7960 = vst [vmem:[#allocation71_spill] sm:$0xff] %v6362_v4  ;;  %7961 = vst [vmem:[#allocation72_spill] sm:$0xff] %v6364_v48  ;;  %3657 = vmatprep.subr.bf16.mxu0 %v7939_v57  ;;  %3826 = vmatprep.subr.bf16.mxu1 %v7939_v57 }
 0x171   : > { %v6374_v54 = vpop.f32.mrf.mxu0  ;;  %v6376_v39 = vpop.f32.mrf.mxu1  ;;  %2535 = vmatmul.mubr.bf16.gmra.mxu0 %v2275_v33  ;;  %2738 = vmatmul.mubr.bf16.gmra.mxu1 %v2275_v33  ;;  %v5293_v33 = vld [vmem:[%s7885_s7 + $0x90] sm:$0xff]  }
 0x172   : > { %7962 = vst [vmem:[#allocation73_spill] sm:$0xff] %v6374_v54  ;;  %7963 = vst [vmem:[#allocation74_spill] sm:$0xff] %v6376_v39  ;;  %2544 = vmatprep.mubr.bf16.mxu0 %v7939_v57  ;;  %2747 = vmatprep.mubr.bf16.mxu1 %v7939_v57  ;;  %v5292_v54 = vld [vmem:[%s7885_s7 + $0x10] sm:$0xff]  }
 0x173   : > { %v6382_v48 = vpop.f32.mrf.mxu0  ;;  %v6384_v4 = vpop.f32.mrf.mxu1  ;;  %3658 = vmatpush1.bf16.msra.mxu0 %v5290_v60  ;;  %3827 = vmatpush1.bf16.msra.mxu1 %v5291_v53 }
 0x174   : > { %7964 = vst [vmem:[#allocation75_spill] sm:$0xff] %v6382_v48  ;;  %7965 = vst [vmem:[#allocation76_spill] sm:$0xff] %v6384_v4  ;;  %3659 = vmatprep.subr.bf16.mxu0 %v7939_v57  ;;  %3828 = vmatprep.subr.bf16.mxu1 %v7939_v57  ;;  %v2276_v4 = vpack.c.bf16 %v2246_v38, %v2245_v15  ;;  %v5294_v48 = vld [vmem:[%s7885_s7 + $0x8] sm:$0xff]  }
 0x175   : > { %v6394_v39 = vpop.f32.mrf.mxu0  ;;  %v6396_v47 = vpop.f32.mrf.mxu1 }
 0x176   : > { %7966 = vst [vmem:[#allocation77_spill] sm:$0xff] %v6394_v39  ;;  %7967 = vst [vmem:[#allocation78_spill] sm:$0xff] %v6396_v47  ;;  %v5299_v39 = vld [vmem:[%s7885_s7 + $0xf8] sm:$0xff]  }
 0x177   : > { %v6398_v53 = vpop.f32.mrf.mxu0  ;;  %v6400_v60 = vpop.f32.mrf.mxu1  ;;  %3660 = vmatpush1.bf16.msra.mxu0 %v5292_v54  ;;  %3829 = vmatpush1.bf16.msra.mxu1 %v5293_v33  ;;  %v2247_v54 = vld [vmem:[%s6274_s25 + $0x40] sm:$0xff]  ;;  %v2248_v33 = vld [vmem:[%s6274_s25 + $0x48] sm:$0xff] }
 0x178   : > { %7968 = vst [vmem:[#allocation79_spill] sm:$0xff] %v6398_v53  ;;  %7969 = vst [vmem:[#allocation80_spill] sm:$0xff] %v6400_v60  ;;  %3661 = vmatprep.subr.bf16.mxu0 %v7939_v57  ;;  %3830 = vmatprep.subr.bf16.mxu1 %v7939_v57 }
 0x179   : > { %v6410_v15 = vpop.f32.mrf.mxu0  ;;  %v6412_v38 = vpop.f32.mrf.mxu1  ;;  %2545 = vmatmul.mubr.bf16.gmra.mxu0 %v2276_v4  ;;  %2748 = vmatmul.mubr.bf16.gmra.mxu1 %v2276_v4  ;;  %v5297_v4 = vld [vmem:[%s7885_s7 + $0x80] sm:$0xff]  }
 0x17a   : > { %7970 = vst [vmem:[#allocation81_spill] sm:$0xff] %v6410_v15  ;;  %7971 = vst [vmem:[#allocation82_spill] sm:$0xff] %v6412_v38  ;;  %2554 = vmatprep.mubr.bf16.mxu0 %v7939_v57  ;;  %2757 = vmatprep.mubr.bf16.mxu1 %v7939_v57  ;;  %v5296_v15 = vld [vmem:[%s7885_s7] sm:$0xff]  }
 0x17b   : > { %v6418_v60 = vpop.f32.mrf.mxu0  ;;  %v6420_v53 = vpop.f32.mrf.mxu1  ;;  %3662 = vmatpush1.bf16.msra.mxu0 %v5294_v48  ;;  %3831 = vmatpush1.bf16.msra.mxu1 %v5295_v28 }
 0x17c   : > { %7972 = vst [vmem:[#allocation83_spill] sm:$0xff] %v6418_v60  ;;  %7973 = vst [vmem:[#allocation84_spill] sm:$0xff] %v6420_v53  ;;  %3663 = vmatprep.subr.bf16.mxu0 %v7939_v57  ;;  %3832 = vmatprep.subr.bf16.mxu1 %v7939_v57  ;;  %v2277_v53 = vpack.c.bf16 %v2248_v33, %v2247_v54  ;;  %v5298_v60 = vld [vmem:[%s7885_s7 + $0x78] sm:$0xff]  }
 0x17d   : > { %v6430_v38 = vpop.f32.mrf.mxu0  ;;  %v6432_v47 = vpop.f32.mrf.mxu1 }
 0x17e   : > { %7974 = vst [vmem:[#allocation85_spill] sm:$0xff] %v6430_v38  ;;  %7975 = vst [vmem:[#allocation86_spill] sm:$0xff] %v6432_v47  ;;  %v5303_v38 = vld [vmem:[%s7885_s7 + $0xe8] sm:$0xff]  }
 0x17f   : > { %v6434_v28 = vpop.f32.mrf.mxu0  ;;  %v6436_v48 = vpop.f32.mrf.mxu1  ;;  %3664 = vmatpush1.bf16.msra.mxu0 %v5296_v15  ;;  %3833 = vmatpush1.bf16.msra.mxu1 %v5297_v4  ;;  %v2249_v15 = vld [vmem:[%s6274_s25 + $0x50] sm:$0xff]  ;;  %v2250_v4 = vld [vmem:[%s6274_s25 + $0x58] sm:$0xff] }
 0x180   : > { %7976 = vst [vmem:[#allocation87_spill] sm:$0xff] %v6434_v28  ;;  %7977 = vst [vmem:[#allocation88_spill] sm:$0xff] %v6436_v48  ;;  %3665 = vmatprep.subr.bf16.mxu0 %v7939_v57  ;;  %3834 = vmatprep.subr.bf16.mxu1 %v7939_v57 }
 0x181   : > { %v6446_v54 = vpop.f32.mrf.mxu0  ;;  %v6448_v33 = vpop.f32.mrf.mxu1  ;;  %2555 = vmatmul.mubr.bf16.gmra.mxu0 %v2277_v53  ;;  %2758 = vmatmul.mubr.bf16.gmra.mxu1 %v2277_v53  ;;  %v5301_v53 = vld [vmem:[%s7885_s7 + $0xf0] sm:$0xff]  }
 0x182   : > { %7978 = vst [vmem:[#allocation89_spill] sm:$0xff] %v6446_v54  ;;  %7979 = vst [vmem:[#allocation90_spill] sm:$0xff] %v6448_v33  ;;  %2564 = vmatprep.mubr.bf16.mxu0 %v7939_v57  ;;  %2767 = vmatprep.mubr.bf16.mxu1 %v7939_v57  ;;  %v5300_v54 = vld [vmem:[%s7885_s7 + $0x70] sm:$0xff]  }
 0x183   : > { %v6454_v48 = vpop.f32.mrf.mxu0  ;;  %v6456_v28 = vpop.f32.mrf.mxu1  ;;  %3666 = vmatpush2.bf16.msra.mxu0 %v5298_v60  ;;  %3835 = vmatpush2.bf16.msra.mxu1 %v5299_v39 }
 0x184   : > { %7980 = vst [vmem:[#allocation91_spill] sm:$0xff] %v6454_v48  ;;  %7981 = vst [vmem:[#allocation92_spill] sm:$0xff] %v6456_v28  ;;  %3667 = vmatprep.subr.bf16.mxu0 %v7939_v57  ;;  %3836 = vmatprep.subr.bf16.mxu1 %v7939_v57  ;;  %v2278_v28 = vpack.c.bf16 %v2250_v4, %v2249_v15  ;;  %v5302_v48 = vld [vmem:[%s7885_s7 + $0x68] sm:$0xff]  }
 0x185   : > { %v6466_v33 = vpop.f32.mrf.mxu0  ;;  %v6468_v47 = vpop.f32.mrf.mxu1 }
 0x186   : > { %7982 = vst [vmem:[#allocation93_spill] sm:$0xff] %v6466_v33  ;;  %7983 = vst [vmem:[#allocation94_spill] sm:$0xff] %v6468_v47  ;;  %v5306_v47 = vld [vmem:[%s7885_s7 + $0x58] sm:$0xff]  }
 0x187   : > { %v6470_v39 = vpop.f32.mrf.mxu0  ;;  %v6472_v60 = vpop.f32.mrf.mxu1  ;;  %3668 = vmatpush2.bf16.msra.mxu0 %v5300_v54  ;;  %3837 = vmatpush2.bf16.msra.mxu1 %v5301_v53  ;;  %v2251_v54 = vld [vmem:[%s6274_s25 + $0x60] sm:$0xff]  ;;  %v2252_v53 = vld [vmem:[%s6274_s25 + $0x68] sm:$0xff] }
 0x188   : > { %7984 = vst [vmem:[#allocation95_spill] sm:$0xff] %v6470_v39  ;;  %7985 = vst [vmem:[#allocation96_spill] sm:$0xff] %v6472_v60  ;;  %3669 = vmatprep.subr.bf16.mxu0 %v7939_v57  ;;  %3838 = vmatprep.subr.bf16.mxu1 %v7939_v57 }
 0x189   : > { %v6482_v15 = vpop.f32.mrf.mxu0  ;;  %v6484_v4 = vpop.f32.mrf.mxu1  ;;  %2565 = vmatmul.mubr.bf16.gmra.mxu0 %v2278_v28  ;;  %2768 = vmatmul.mubr.bf16.gmra.mxu1 %v2278_v28  ;;  %v5305_v28 = vld [vmem:[%s7885_s7 + $0xe0] sm:$0xff]  }
 0x18a   : > { %7986 = vst [vmem:[#allocation97_spill] sm:$0xff] %v6482_v15  ;;  %7987 = vst [vmem:[#allocation98_spill] sm:$0xff] %v6484_v4  ;;  %2574 = vmatprep.mubr.bf16.mxu0 %v7939_v57  ;;  %2777 = vmatprep.mubr.bf16.mxu1 %v7939_v57  ;;  %v5304_v15 = vld [vmem:[%s7885_s7 + $0x60] sm:$0xff]  }
 0x18b   : > { %v6490_v60 = vpop.f32.mrf.mxu0  ;;  %v6492_v39 = vpop.f32.mrf.mxu1  ;;  %3670 = vmatpush2.bf16.msra.mxu0 %v5302_v48  ;;  %3839 = vmatpush2.bf16.msra.mxu1 %v5303_v38  ;;  %v2279_v48 = vpack.c.bf16 %v2252_v53, %v2251_v54  ;;  %v2254_v54 = vld [vmem:[%s6274_s25 + $0x78] sm:$0xff] }
 0x18c   : > { %7988 = vst [vmem:[#allocation99_spill] sm:$0xff] %v6490_v60  ;;  %7989 = vst [vmem:[#allocation100_spill] sm:$0xff] %v6492_v39  ;;  %3671 = vmatprep.subr.bf16.mxu0 %v7939_v57  ;;  %3840 = vmatprep.subr.bf16.mxu1 %v7939_v57  ;;  %v5307_v53 = vld [vmem:[%s7885_s7 + $0xd8] sm:$0xff]  }
 0x18d   : > { %v6502_v4 = vpop.f32.mrf.mxu0  ;;  %v6504_v60 = vpop.f32.mrf.mxu1 }
 0x18e   : > { %7990 = vst [vmem:[#allocation101_spill] sm:$0xff] %v6502_v4  ;;  %7991 = vst [vmem:[#allocation102_spill] sm:$0xff] %v6504_v60 }
 0x18f   : > { %v6506_v38 = vpop.f32.mrf.mxu0  ;;  %v6508_v39 = vpop.f32.mrf.mxu1  ;;  %3672 = vmatpush2.bf16.msra.mxu0 %v5304_v15  ;;  %3841 = vmatpush2.bf16.msra.mxu1 %v5305_v28  ;;  %v2253_v15 = vld [vmem:[%s6274_s25 + $0x70] sm:$0xff] }
 0x190   : > { %7992 = vst [vmem:[#allocation103_spill] sm:$0xff] %v6506_v38  ;;  %7993 = vst [vmem:[#allocation104_spill] sm:$0xff] %v6508_v39  ;;  %3673 = vmatprep.subr.bf16.mxu0 %v7939_v57  ;;  %3842 = vmatprep.subr.bf16.mxu1 %v7939_v57 }
 0x191   : > { %v6515_v4 = vpop.f32.mrf.mxu0  ;;  %v6517_v33 = vpop.f32.mrf.mxu1  ;;  %2575 = vmatmul.mubr.bf16.gmra.mxu0 %v2279_v48  ;;  %2778 = vmatmul.mubr.bf16.gmra.mxu1 %v2279_v48 }
 0x192   : > { %7994 = vst [vmem:[#allocation105_spill] sm:$0xff] %v6515_v4  ;;  %7995 = vst [vmem:[#allocation106_spill] sm:$0xff] %v6517_v33  ;;  %2584 = vmatprep.mubr.bf16.mxu0 %v7939_v57  ;;  %2787 = vmatprep.mubr.bf16.mxu1 %v7939_v57  ;;  %v2280_v4 = vpack.c.bf16 %v2254_v54, %v2253_v15  ;;  %v5308_v15 = vld [vmem:[%s7885_s7 + $0x50] sm:$0xff]  }
 0x193   : > { %v6526_v28 = vpop.f32.mrf.mxu0  ;;  %v6528_v39 = vpop.f32.mrf.mxu1  ;;  %3674 = vmatpush2.bf16.msra.mxu0 %v5306_v47  ;;  %3843 = vmatpush2.bf16.msra.mxu1 %v5307_v53  ;;  %v2255_v47 = vld [vmem:[%s6274_s25 + $0x80] sm:$0xff]  ;;  %v2256_v53 = vld [vmem:[%s6274_s25 + $0x88] sm:$0xff] }
 0x194   : > { %7996 = vst [vmem:[#allocation107_spill] sm:$0xff] %v6526_v28  ;;  %7997 = vst [vmem:[#allocation108_spill] sm:$0xff] %v6528_v39  ;;  %3675 = vmatprep.subr.bf16.mxu0 %v7939_v57  ;;  %3844 = vmatprep.subr.bf16.mxu1 %v7939_v57 }
 0x195   : > { %v6531_v48 = vpop.f32.mrf.mxu0  ;;  %v6533_v33 = vpop.f32.mrf.mxu1 }
 0x196   : > { %7998 = vst [vmem:[#allocation109_spill] sm:$0xff] %v6531_v48  ;;  %7999 = vst [vmem:[#allocation110_spill] sm:$0xff] %v6533_v33  ;;  %v2281_v48 = vpack.c.bf16 %v2256_v53, %v2255_v47  ;;  %v2257_v47 = vld [vmem:[%s6274_s25 + $0x90] sm:$0xff]  ;;  %v2258_v53 = vld [vmem:[%s6274_s25 + $0x98] sm:$0xff] }
 0x197   : > { %v6536_v38 = vpop.f32.mrf.mxu0  ;;  %v6538_v60 = vpop.f32.mrf.mxu1  ;;  %3676 = vmatpush2.bf16.msra.mxu0 %v5308_v15  ;;  %v2282_v32 = vpack.c.bf16 %v2258_v53, %v2257_v47  ;;  %v2259_v47 = vld [vmem:[%s6274_s25 + $0xa0] sm:$0xff]  ;;  %v2260_v53 = vld [vmem:[%s6274_s25 + $0xa8] sm:$0xff] }
 0x198   : > { %8000 = vst [vmem:[#allocation111_spill] sm:$0xff] %v6536_v38  ;;  %8001 = vst [vmem:[#allocation112_spill] sm:$0xff] %v6538_v60  ;;  %3677 = vmatprep.subr.bf16.mxu0 %v7939_v57  ;;  %v2283_v0 = vpack.c.bf16 %v2260_v53, %v2259_v47  ;;  %v2261_v47 = vld [vmem:[%s6274_s25 + $0xb0] sm:$0xff]  ;;  %v2262_v53 = vld [vmem:[%s6274_s25 + $0xb8] sm:$0xff] }
 0x199   : > { %v6540_v28 = vpop.f32.mrf.mxu0  ;;  %v6542_v39 = vpop.f32.mrf.mxu1  ;;  %2585 = vmatmul.mubr.bf16.gmra.mxu0 %v2280_v4  ;;  %2788 = vmatmul.mubr.bf16.gmra.mxu1 %v2280_v4  ;;  %v5309_v4 = vld [vmem:[%s7885_s7 + $0xd0] sm:$0xff]   ;;  %v2284_v46 = vpack.c.bf16 %v2262_v53, %v2261_v47 }
 0x19a   : > { %2594 = vmatprep.mubr.bf16.mxu0 %v7939_v57  ;;  %2797 = vmatprep.mubr.bf16.mxu1 %v7939_v57 }
 0x19b   : > { %v6551_v54 = vpop.f32.mrf.mxu0  ;;  %v6553_v38 = vpop.f32.mrf.mxu1  ;;  %3845 = vmatpush2.bf16.msra.mxu1 %v5309_v4 }
 0x19c   : > { %3846 = vmatprep.subr.bf16.mxu1 %v7939_v57 }
 0x19d   : > { %v6558_v60 = vpop.f32.mrf.mxu0  ;;  %v6560_v33 = vpop.f32.mrf.mxu1 }
 0x19f   : > { %v6563_v25 = vpop.f32.mrf.mxu0  ;;  %v6565_v18 = vpop.f32.mrf.mxu1  ;;  %3847 = vmatpush2.bf16.msra.mxu1 %v5311_v19 }
 0x1a0   : > { %3848 = vmatprep.subr.bf16.mxu1 %v7939_v57 }
 0x1a1   : > { %v6568_v15 = vpop.f32.mrf.mxu0  ;;  %v6570_v1 = vpop.f32.mrf.mxu1  ;;  %2595 = vmatmul.mubr.bf16.gmra.mxu0 %v2281_v48  ;;  %2798 = vmatmul.mubr.bf16.gmra.mxu1 %v2281_v48  ;;  %v5310_v48 = vld [vmem:[%s7885_s7 + $0x48] sm:$0xff]  }
 0x1a2   : > { %2604 = vmatprep.mubr.bf16.mxu0 %v7939_v57  ;;  %2807 = vmatprep.mubr.bf16.mxu1 %v7939_v57 }
 0x1a3   : > { %v6576_v44 = vpop.f32.mrf.mxu0  ;;  %v6578_v4 = vpop.f32.mrf.mxu1  ;;  %3678 = vmatpush2.bf16.msra.mxu0 %v5310_v48  ;;  %3849 = vmatpush2.bf16.msra.mxu1 %v5313_v56 }
 0x1a4   : > { %3679 = vmatprep.subr.bf16.mxu0 %v7939_v57 }
 0x1a5   : > { %v6580_v43 = vpop.f32.mrf.mxu0  ;;  %v6582_v40 = vpop.f32.mrf.mxu1 }
 0x1a7   : > { %v6587_v29 = vpop.f32.mrf.mxu0  ;;  %v6589_v24 = vpop.f32.mrf.mxu1  ;;  %3680 = vmatpush2.bf16.msra.mxu0 %v5312_v61 }
 0x1a9   : > { %v6594_v14 = vpop.f32.mrf.mxu0  ;;  %v6596_v11 = vpop.f32.mrf.mxu1  ;;  %2605 = vmatmul.mubr.bf16.gmra.mxu0 %v2282_v32  ;;  %2808 = vmatmul.mubr.bf16.gmra.mxu1 %v2282_v32 }
 0x1aa   : > { %2614 = vmatprep.mubr.bf16.mxu0 %v7939_v57  ;;  %2817 = vmatprep.mubr.bf16.mxu1 %v7939_v57 }
 0x1ab   : > { %v6602_v10 = vpop.f32.mrf.mxu0  ;;  %v6604_v5 = vpop.f32.mrf.mxu1 }
 0x1ad   : > { %v6608_v48 = vpop.f32.mrf.mxu0  ;;  %v6610_v32 = vpop.f32.mrf.mxu1 }
 0x1af   : > { %v6618_v19 = vpop.f32.mrf.mxu0  ;;  %v6620_v55 = vpop.f32.mrf.mxu1 }
 0x1b1   : > { %v6622_v52 = vpop.f32.mrf.mxu0  ;;  %v6624_v51 = vpop.f32.mrf.mxu1  ;;  %2615 = vmatmul.mubr.bf16.gmra.mxu0 %v2283_v0  ;;  %2818 = vmatmul.mubr.bf16.gmra.mxu1 %v2283_v0 }
 0x1b2   : > { %8002 = vst [vmem:[#allocation113_spill] sm:$0xff] %v6624_v51  ;;  %2624 = vmatprep.mubr.bf16.mxu0 %v7939_v57  ;;  %2827 = vmatprep.mubr.bf16.mxu1 %v7939_v57 }
 0x1b3   : > { %v6630_v50 = vpop.f32.mrf.mxu0  ;;  %v6632_v49 = vpop.f32.mrf.mxu1 }
 0x1b4   : > { %8003 = vst [vmem:[#allocation114_spill] sm:$0xff] %v6630_v50  ;;  %8004 = vst [vmem:[#allocation115_spill] sm:$0xff] %v6632_v49  ;;  %v2263_v49 = vld [vmem:[%s6274_s25 + $0xc0] sm:$0xff] }
 0x1b5   : > { %v6634_v61 = vpop.f32.mrf.mxu0  ;;  %v6636_v56 = vpop.f32.mrf.mxu1 }
 0x1b6   : > { %8005 = vst [vmem:[#allocation116_spill] sm:$0xff] %v6634_v61  ;;  %8006 = vst [vmem:[#allocation117_spill] sm:$0xff] %v6636_v56  ;;  %v2264_v61 = vld [vmem:[%s6274_s25 + $0xc8] sm:$0xff] }
 0x1b7   : > { %v6638_v45 = vpop.f32.mrf.mxu0  ;;  %v6640_v0 = vpop.f32.mrf.mxu1 }
 0x1b8   : > { %8007 = vst [vmem:[#allocation118_spill] sm:$0xff] %v6638_v45  ;;  %8008 = vst [vmem:[#allocation119_spill] sm:$0xff] %v6640_v0 }
 0x1b9   : > { %v6642_v42 = vpop.f32.mrf.mxu0  ;;  %v6644_v41 = vpop.f32.mrf.mxu1  ;;  %2625 = vmatmul.mubr.bf16.gmra.mxu0 %v2284_v46  ;;  %2828 = vmatmul.mubr.bf16.gmra.mxu1 %v2284_v46 }
 0x1ba   : > { %8009 = vst [vmem:[#allocation120_spill] sm:$0xff] %v6642_v42  ;;  %8010 = vst [vmem:[#allocation121_spill] sm:$0xff] %v6644_v41  ;;  %2634 = vmatprep.mubr.bf16.mxu0 %v7939_v57  ;;  %2837 = vmatprep.mubr.bf16.mxu1 %v7939_v57  ;;  %v2285_v42 = vpack.c.bf16 %v2264_v61, %v2263_v49 }
 0x1bb   : > { %v6650_v56 = vpop.f32.mrf.mxu0  ;;  %v6652_v47 = vpop.f32.mrf.mxu1 }
 0x1bc   : > { %8011 = vst [vmem:[#allocation122_spill] sm:$0xff] %v6650_v56  ;;  %8012 = vst [vmem:[#allocation123_spill] sm:$0xff] %v6652_v47  ;;  %v2265_v47 = vld [vmem:[%s6274_s25 + $0xd0] sm:$0xff] }
 0x1bd   : > { %v6654_v53 = vpop.f32.mrf.mxu0  ;;  %v6656_v0 = vpop.f32.mrf.mxu1 }
 0x1be   : > { %8013 = vst [vmem:[#allocation124_spill] sm:$0xff] %v6654_v53  ;;  %8014 = vst [vmem:[#allocation125_spill] sm:$0xff] %v6656_v0  ;;  %v2266_v53 = vld [vmem:[%s6274_s25 + $0xd8] sm:$0xff] }
 0x1bf   : > { %v6658_v41 = vpop.f32.mrf.mxu0  ;;  %v6660_v46 = vpop.f32.mrf.mxu1 }
 0x1c0   : > { %8015 = vst [vmem:[#allocation126_spill] sm:$0xff] %v6658_v41  ;;  %8016 = vst [vmem:[#allocation127_spill] sm:$0xff] %v6660_v46 }
 0x1c1   : > { %v6662_v45 = vpop.f32.mrf.mxu0  ;;  %v6664_v50 = vpop.f32.mrf.mxu1  ;;  %2635 = vmatmul.mubr.bf16.gmra.mxu0 %v2285_v42  ;;  %2838 = vmatmul.mubr.bf16.gmra.mxu1 %v2285_v42 }
 0x1c2   : > { %8017 = vst [vmem:[#allocation128_spill] sm:$0xff] %v6662_v45  ;;  %8018 = vst [vmem:[#allocation129_spill] sm:$0xff] %v6664_v50  ;;  %2644 = vmatprep.mubr.bf16.mxu0 %v7939_v57  ;;  %2847 = vmatprep.mubr.bf16.mxu1 %v7939_v57  ;;  %v2286_v45 = vpack.c.bf16 %v2266_v53, %v2265_v47 }
 0x1c3   : > { %v6670_v0 = vpop.f32.mrf.mxu0  ;;  %v6672_v49 = vpop.f32.mrf.mxu1 }
 0x1c4   : > { %8019 = vst [vmem:[#allocation130_spill] sm:$0xff] %v6670_v0  ;;  %8020 = vst [vmem:[#allocation131_spill] sm:$0xff] %v6672_v49  ;;  %v2267_v49 = vld [vmem:[%s6274_s25 + $0xe0] sm:$0xff] }
 0x1c5   : > { %v6674_v61 = vpop.f32.mrf.mxu0  ;;  %v6676_v46 = vpop.f32.mrf.mxu1 }
 0x1c6   : > { %8021 = vst [vmem:[#allocation132_spill] sm:$0xff] %v6674_v61  ;;  %8022 = vst [vmem:[#allocation133_spill] sm:$0xff] %v6676_v46  ;;  %v2268_v61 = vld [vmem:[%s6274_s25 + $0xe8] sm:$0xff] }
 0x1c7   : > { %v6678_v50 = vpop.f32.mrf.mxu0  ;;  %v6680_v42 = vpop.f32.mrf.mxu1 }
 0x1c8   : > { %8023 = vst [vmem:[#allocation134_spill] sm:$0xff] %v6678_v50  ;;  %8024 = vst [vmem:[#allocation135_spill] sm:$0xff] %v6680_v42 }
 0x1c9   : > { %v6682_v41 = vpop.f32.mrf.mxu0  ;;  %v6684_v56 = vpop.f32.mrf.mxu1  ;;  %2645 = vmatmul.mubr.bf16.gmra.mxu0 %v2286_v45  ;;  %2848 = vmatmul.mubr.bf16.gmra.mxu1 %v2286_v45 }
 0x1ca   : > { %8025 = vst [vmem:[#allocation136_spill] sm:$0xff] %v6682_v41  ;;  %8026 = vst [vmem:[#allocation137_spill] sm:$0xff] %v6684_v56  ;;  %2654 = vmatprep.mubr.bf16.mxu0 %v7939_v57  ;;  %2857 = vmatprep.mubr.bf16.mxu1 %v7939_v57  ;;  %v2287_v41 = vpack.c.bf16 %v2268_v61, %v2267_v49 }
 0x1cb   : > { %v6690_v46 = vpop.f32.mrf.mxu0  ;;  %v6692_v47 = vpop.f32.mrf.mxu1 }
 0x1cc   : > { %8027 = vst [vmem:[#allocation138_spill] sm:$0xff] %v6690_v46  ;;  %8028 = vst [vmem:[#allocation139_spill] sm:$0xff] %v6692_v47  ;;  %v2269_v47 = vld [vmem:[%s6274_s25 + $0xf0] sm:$0xff] }
 0x1cd   : > { %v6694_v53 = vpop.f32.mrf.mxu0  ;;  %v6696_v42 = vpop.f32.mrf.mxu1 }
 0x1ce   : > { %8029 = vst [vmem:[#allocation140_spill] sm:$0xff] %v6694_v53  ;;  %8030 = vst [vmem:[#allocation141_spill] sm:$0xff] %v6696_v42  ;;  %v2270_v53 = vld [vmem:[%s6274_s25 + $0xf8] sm:$0xff] }
 0x1cf   : > { %v6698_v56 = vpop.f32.mrf.mxu0  ;;  %v6700_v45 = vpop.f32.mrf.mxu1 }
 0x1d0   : > { %8031 = vst [vmem:[#allocation142_spill] sm:$0xff] %v6698_v56  ;;  %8032 = vst [vmem:[#allocation143_spill] sm:$0xff] %v6700_v45 }
 0x1d1   : > { %v6702_v50 = vpop.f32.mrf.mxu0  ;;  %v6704_v0 = vpop.f32.mrf.mxu1  ;;  %2655 = vmatmul.mubr.bf16.gmra.mxu0 %v2287_v41  ;;  %2858 = vmatmul.mubr.bf16.gmra.mxu1 %v2287_v41 }
 0x1d2   : > { %8033 = vst [vmem:[#allocation144_spill] sm:$0xff] %v6702_v50  ;;  %8034 = vst [vmem:[#allocation145_spill] sm:$0xff] %v6704_v0  ;;  %2664 = vmatprep.mubr.bf16.mxu0 %v7939_v57  ;;  %2867 = vmatprep.mubr.bf16.mxu1 %v7939_v57  ;;  %v2288_v50 = vpack.c.bf16 %v2270_v53, %v2269_v47 }
 0x1d3   : > { %v6710_v42 = vpop.f32.mrf.mxu0  ;;  %v6712_v49 = vpop.f32.mrf.mxu1 }
 0x1d4   : > { %8035 = vst [vmem:[#allocation146_spill] sm:$0xff] %v6710_v42  ;;  %8036 = vst [vmem:[#allocation147_spill] sm:$0xff] %v6712_v49  ;;  %v2271_v49 = vld [vmem:[%s6274_s25 + $0x100] sm:$0xff]  ;;  %v2272_v42 = vld [vmem:[%s6274_s25 + $0x108] sm:$0xff] }
 0x1d5   : > { %v6714_v61 = vpop.f32.mrf.mxu0  ;;  %v6716_v45 = vpop.f32.mrf.mxu1 }
 0x1d6   : > { %8037 = vst [vmem:[#allocation148_spill] sm:$0xff] %v6714_v61  ;;  %8038 = vst [vmem:[#allocation149_spill] sm:$0xff] %v6716_v45 }
 0x1d7   : > { %v6718_v0 = vpop.f32.mrf.mxu0  ;;  %v6720_v41 = vpop.f32.mrf.mxu1 }
 0x1d8   : > { %8039 = vst [vmem:[#allocation150_spill] sm:$0xff] %v6718_v0  ;;  %8040 = vst [vmem:[#allocation151_spill] sm:$0xff] %v6720_v41  ;;  %v2289_v41 = vpack.c.bf16 %v2272_v42, %v2271_v49 }
 0x1d9   : > { %v6722_v56 = vpop.f32.mrf.mxu0  ;;  %v6724_v46 = vpop.f32.mrf.mxu1  ;;  %2665 = vmatmul.mubr.bf16.gmra.mxu0 %v2288_v50  ;;  %2868 = vmatmul.mubr.bf16.gmra.mxu1 %v2288_v50 }
 0x1da   : > { %8041 = vst [vmem:[#allocation152_spill] sm:$0xff] %v6722_v56  ;;  %8042 = vst [vmem:[#allocation153_spill] sm:$0xff] %v6724_v46  ;;  %2674 = vmatprep.mubr.bf16.mxu0 %v7939_v57  ;;  %2877 = vmatprep.mubr.bf16.mxu1 %v7939_v57 }
 0x1db   : > { %v6730_v61 = vpop.f32.mrf.mxu0  ;;  %v6732_v45 = vpop.f32.mrf.mxu1 }
 0x1dc   : > { %8043 = vst [vmem:[#allocation154_spill] sm:$0xff] %v6730_v61  ;;  %8044 = vst [vmem:[#allocation155_spill] sm:$0xff] %v6732_v45 }
 0x1dd   : > { %v6734_v47 = vpop.f32.mrf.mxu0  ;;  %v6736_v53 = vpop.f32.mrf.mxu1 }
 0x1de   : > { %8045 = vst [vmem:[#allocation156_spill] sm:$0xff] %v6734_v47  ;;  %8046 = vst [vmem:[#allocation157_spill] sm:$0xff] %v6736_v53 }
 0x1df   : > { %v6738_v56 = vpop.f32.mrf.mxu0  ;;  %v6740_v46 = vpop.f32.mrf.mxu1 }
 0x1e0   : > { %8047 = vst [vmem:[#allocation158_spill] sm:$0xff] %v6738_v56  ;;  %8048 = vst [vmem:[#allocation159_spill] sm:$0xff] %v6740_v46 }
 0x1e1   : > { %v6742_v50 = vpop.f32.mrf.mxu0  ;;  %v6744_v0 = vpop.f32.mrf.mxu1  ;;  %2675 = vmatmul.mubr.bf16.gmra.mxu0 %v2289_v41  ;;  %2878 = vmatmul.mubr.bf16.gmra.mxu1 %v2289_v41 }
 0x1e2   : > { %8049 = vst [vmem:[#allocation160_spill] sm:$0xff] %v6742_v50  ;;  %8050 = vst [vmem:[#allocation161_spill] sm:$0xff] %v6744_v0 }
 0x1e3   : > { %v6746_v57 = vpop.f32.mrf.mxu0  ;;  %v6748_v61 = vpop.f32.mrf.mxu1 }
 0x1e4   : > { %8051 = vst [vmem:[#allocation162_spill] sm:$0xff] %v6746_v57  ;;  %8052 = vst [vmem:[#allocation163_spill] sm:$0xff] %v6748_v61 }
 0x1e5   : > { %v6750_v45 = vpop.f32.mrf.mxu0  ;;  %v6752_v47 = vpop.f32.mrf.mxu1 }
 0x1e6   : > { %8053 = vst [vmem:[#allocation164_spill] sm:$0xff] %v6750_v45  ;;  %8054 = vst [vmem:[#allocation165_spill] sm:$0xff] %v6752_v47 }
 0x1e7   : > { %v6754_v53 = vpop.f32.mrf.mxu0  ;;  %v6756_v42 = vpop.f32.mrf.mxu1 }
 0x1e8   : > { %8055 = vst [vmem:[#allocation166_spill] sm:$0xff] %v6754_v53  ;;  %8056 = vst [vmem:[#allocation167_spill] sm:$0xff] %v6756_v42 }
 0x1e9   : > { %v6758_v49 = vpop.f32.mrf.mxu0  ;;  %v6760_v46 = vpop.f32.mrf.mxu1 }
 0x1ea   : > { %8057 = vst [vmem:[#allocation168_spill] sm:$0xff] %v6758_v49  ;;  %8058 = vst [vmem:[#allocation169_spill] sm:$0xff] %v6760_v46 }
 0x1eb   : > { %v6762_v50 = vpop.f32.mrf.mxu0  ;;  %v6764_v0 = vpop.f32.mrf.mxu1 }
 0x1ec   : > { %8059 = vst [vmem:[#allocation170_spill] sm:$0xff] %v6762_v50  ;;  %8060 = vst [vmem:[#allocation171_spill] sm:$0xff] %v6764_v0 }
 0x1ed   : > { %v6766_v41 = vpop.f32.mrf.mxu0  ;;  %v6768_v57 = vpop.f32.mrf.mxu1 }
 0x1ee   : > { %8061 = vst [vmem:[#allocation172_spill] sm:$0xff] %v6766_v41  ;;  %8062 = vst [vmem:[#allocation173_spill] sm:$0xff] %v6768_v57 }
 0x1ef   : > { %v6770_v61 = vpop.f32.mrf.mxu0  ;;  %v6772_v45 = vpop.f32.mrf.mxu1 }
 0x1f0   : > { %8063 = vst [vmem:[#allocation174_spill] sm:$0xff] %v6770_v61  ;;  %8064 = vst [vmem:[#allocation175_spill] sm:$0xff] %v6772_v45 }
 0x1f1   : > { %v6774_v47 = vpop.f32.mrf.mxu0  ;;  %v6776_v53 = vpop.f32.mrf.mxu1 }
 0x1f2   : > { %8065 = vst [vmem:[#allocation176_spill] sm:$0xff] %v6774_v47  ;;  %8066 = vst [vmem:[#allocation177_spill] sm:$0xff] %v6776_v53 }
 0x1f3   : > { %v6778_v42 = vpop.f32.mrf.mxu0  ;;  %v6780_v49 = vpop.f32.mrf.mxu1 }
 0x1f4   : > { %8067 = vst [vmem:[#allocation178_spill] sm:$0xff] %v6778_v42  ;;  %8068 = vst [vmem:[#allocation179_spill] sm:$0xff] %v6780_v49 }
 0x1f5   : > { %v6782_v46 = vpop.f32.mrf.mxu0  ;;  %v6784_v50 = vpop.f32.mrf.mxu1 }
 0x1f6   : > { %8069 = vst [vmem:[#allocation180_spill] sm:$0xff] %v6782_v46  ;;  %8070 = vst [vmem:[#allocation181_spill] sm:$0xff] %v6784_v50 }
 0x1f7   : > { %v6786_v0 = vpop.f32.mrf.mxu0  ;;  %v6788_v41 = vpop.f32.mrf.mxu1 }
 0x1f8   : > { %8071 = vst [vmem:[#allocation182_spill] sm:$0xff] %v6786_v0  ;;  %8072 = vst [vmem:[#allocation183_spill] sm:$0xff] %v6788_v41 }
 0x1f9   : > { %v6790_v57 = vpop.f32.mrf.mxu0  ;;  %v6792_v61 = vpop.f32.mrf.mxu1 }
 0x1fa   : > { %8073 = vst [vmem:[#allocation184_spill] sm:$0xff] %v6790_v57  ;;  %8074 = vst [vmem:[#allocation185_spill] sm:$0xff] %v6792_v61 }
 0x1fb   : > { %v6794_v45 = vpop.f32.mrf.mxu0  ;;  %v6796_v47 = vpop.f32.mrf.mxu1 }
 0x1fc   : > { %8075 = vst [vmem:[#allocation186_spill] sm:$0xff] %v6794_v45  ;;  %8076 = vst [vmem:[#allocation187_spill] sm:$0xff] %v6796_v47 }
 0x1fd   : > { %v6798_v53 = vpop.f32.mrf.mxu0  ;;  %v6800_v42 = vpop.f32.mrf.mxu1 }
 0x1fe   : > { %8077 = vst [vmem:[#allocation188_spill] sm:$0xff] %v6798_v53  ;;  %8078 = vst [vmem:[#allocation189_spill] sm:$0xff] %v6800_v42  ;;  %v3026_v42 = vlaneseq }
 0x1ff   : > { %v6802_v49 = vpop.f32.mrf.mxu0  ;;  %v6804_v46 = vpop.f32.mrf.mxu1 }
 0x200   : > { %8079 = vst [vmem:[#allocation190_spill] sm:$0xff] %v6802_v49  ;;  %8080 = vst [vmem:[#allocation191_spill] sm:$0xff] %v6804_v46 }
 0x201   : > { %v6806_v50 = vpop.f32.mrf.mxu0  ;;  %v6808_v0 = vpop.f32.mrf.mxu1 }
 0x202   : > { %8081 = vst [vmem:[#allocation192_spill] sm:$0xff] %v6806_v50  ;;  %8082 = vst [vmem:[#allocation193_spill] sm:$0xff] %v6808_v0 }
 0x203   : > { %v6810_v41 = vpop.f32.mrf.mxu0  ;;  %v6812_v57 = vpop.f32.mrf.mxu1 }
 0x204   : > { %8083 = vst [vmem:[#allocation194_spill] sm:$0xff] %v6810_v41  ;;  %8084 = vst [vmem:[#allocation195_spill] sm:$0xff] %v6812_v57  ;;  %v3027_v41 = vshrl.u32 %v3026_v42, 7 }
 0x205   : > { %v6814_v61 = vpop.f32.mrf.mxu0  ;;  %v6816_v45 = vpop.f32.mrf.mxu1 }
 0x206   : > { %8085 = vst [vmem:[#allocation196_spill] sm:$0xff] %v6814_v61  ;;  %8086 = vst [vmem:[#allocation197_spill] sm:$0xff] %v6816_v45  ;;  %v3040_v42 = vsub.s32 3, %v3027_v41 }
 0x207   : > { %v6818_v47 = vpop.f32.mrf.mxu0  ;;  %v6820_v53 = vpop.f32.mrf.mxu1 }
 0x208   : > { %8087 = vst [vmem:[#allocation198_spill] sm:$0xff] %v6818_v47  ;;  %8088 = vst [vmem:[#allocation199_spill] sm:$0xff] %v6820_v53  ;;  %v3028_v47 = vsub.s32 0, %v3027_v41  ;;  %v3036_v53 = vsub.s32 2, %v3027_v41 }
 0x209   : > { %v6822_v49 = vpop.f32.mrf.mxu0  ;;  %v6824_v46 = vpop.f32.mrf.mxu1 }
 0x20a   : > { %8089 = vst [vmem:[#allocation200_spill] sm:$0xff] %v6822_v49  ;;  %8090 = vst [vmem:[#allocation201_spill] sm:$0xff] %v6824_v46 }
 0x20b   : > { %v6826_v50 = vpop.f32.mrf.mxu0  ;;  %v6828_v0 = vpop.f32.mrf.mxu1 }
 0x20c   : > { %8091 = vst [vmem:[#allocation202_spill] sm:$0xff] %v6826_v50  ;;  %8092 = vst [vmem:[#allocation203_spill] sm:$0xff] %v6828_v0  ;;  %v3024_v50 = vld [vmem:[%s7884_s6] sm:$0xf]  ;;  %v3032_v0 = vsub.s32 1, %v3027_v41  ;;  %v8122_v41 = vld [vmem:[#allocation10_spill] sm:$0xff] }
 0x20d   : > { %v6830_v56 = vpop.f32.mrf.mxu0  ;;  %v6832_v57 = vpop.f32.mrf.mxu1 }
 0x20e   : > { %8093 = vst [vmem:[#allocation204_spill] sm:$0xff] %v6830_v56  ;;  %8094 = vst [vmem:[#allocation205_spill] sm:$0xff] %v6832_v57  ;;  %v6847_v56 = vadd.f32 %v6540_v28, %v6092_v58  ;;  %v6867_v58 = vadd.f32 %v6560_v33, %v6106_v3  ;;  %v6887_v3 = vadd.f32 %v6570_v1, %v6114_v9  ;;  %v8113_v28 = vld [vmem:[#allocation116_spill] sm:$0xff]  ;;  %v8160_v57 = vld [vmem:[#allocation135_spill] sm:$0xff] }
 0x20f   : > { %v6834_v61 = vpop.f32.mrf.mxu0  ;;  %v6836_v45 = vpop.f32.mrf.mxu1  ;;  %v6889_v33 = vrot.slane %v3024_v50, %v3028_v47  ;;  %v6907_v9 = vrot.slane %v3024_v50, %v3040_v42  ;;  %v6911_v1 = vadd.f32 %v6580_v43, %v6124_v16  ;;  %v6931_v16 = vadd.f32 %v6596_v11, %v6134_v23  ;;  %v8106_v11 = vld [vmem:[#allocation3_spill] sm:$0xff]  ;;  %v8120_v47 = vld [vmem:[#allocation9_spill] sm:$0xff] }
 0x210   : > { %8095 = vst [vmem:[#allocation206_spill] sm:$0xff] %v6834_v61  ;;  %8096 = vst [vmem:[#allocation207_spill] sm:$0xff] %v6836_v45  ;;  %v6851_v61 = vadd.f32 %v6542_v39, %v6094_v59  ;;  %v6855_v45 = vadd.f32 %v6551_v54, %v6098_v62  ;;  %v6871_v59 = vadd.f32 %v6563_v25, %v6108_v6  ;;  %v8115_v54 = vld [vmem:[#allocation117_spill] sm:$0xff] }
 0x211   : > { %v6838_v51 = vpop.f32.mrf.mxu0  ;;  %v6840_v49 = vpop.f32.mrf.mxu1  ;;  %v6875_v62 = vadd.f32 %v6565_v18, %v6110_v7  ;;  %v6891_v6 = vrot.slane %v3024_v50, %v3036_v53  ;;  %v6895_v7 = vadd.f32 %v6576_v44, %v6118_v12  ;;  %v6899_v18 = vadd.f32 %v6578_v4, %v6120_v13  ;;  %v8117_v4 = vld [vmem:[#allocation118_spill] sm:$0xff]  ;;  %v8121_v53 = vld [vmem:[#allocation120_spill] sm:$0xff]  ;;  %v8123_v42 = vld [vmem:[#allocation121_spill] sm:$0xff] }
 0x212   : > { %8097 = vst [vmem:[#allocation208_spill] sm:$0xff] %v6838_v51  ;;  %8098 = vst [vmem:[#allocation209_spill] sm:$0xff] %v6840_v49  ;;  %v6859_v49 = vadd.f32 %v6553_v38, %v6100_v63  ;;  %v6863_v51 = vadd.f32 %v6558_v60, %v6104_v2  ;;  %v6883_v2 = vadd.f32 %v6568_v15, %v6112_v8  ;;  %v8116_v15 = vld [vmem:[#allocation7_spill] sm:$0xff] }
 0x213   : > { %v6877_v39 = vpop.f32.mrf.mxu0  ;;  %v6879_v63 = vpop.f32.mrf.mxu1  ;;  %v6905_v60 = vrot.slane %v3024_v50, %v3032_v0  ;;  %v6915_v12 = vadd.f32 %v6582_v40, %v6126_v17  ;;  %v6919_v13 = vadd.f32 %v6587_v29, %v6128_v20  ;;  %v6923_v44 = vadd.f32 %v6589_v24, %v6130_v21  ;;  %v8108_v24 = vld [vmem:[#allocation4_spill] sm:$0xff]  ;;  %v8109_v40 = vld [vmem:[#allocation115_spill] sm:$0xff] }
 0x214   : > { %8099 = vst [vmem:[#allocation210_spill] sm:$0xff] %v6877_v39  ;;  %8100 = vst [vmem:[#allocation211_spill] sm:$0xff] %v6879_v63  ;;  %v6927_v38 = vadd.f32 %v6594_v14, %v6132_v22  ;;  %v6935_v17 = vadd.f32 %v6602_v10, %v6138_v26  ;;  %v6939_v20 = vadd.f32 %v6604_v5, %v6140_v27  ;;  %v8105_v10 = vld [vmem:[#allocation113_spill] sm:$0xff]  ;;  %v8107_v14 = vld [vmem:[#allocation114_spill] sm:$0xff] }
 0x215   : > { %v6901_v25 = vpop.f32.mrf.mxu0  ;;  %v6903_v8 = vpop.f32.mrf.mxu1  ;;  %v6947_v22 = vadd.f32 %v6608_v48, %v6144_v30  ;;  %v6951_v23 = vadd.f32 %v6610_v32, %v6146_v31  ;;  %v6955_v26 = vadd.f32 %v6618_v19, %v6148_v34  ;;  %v6959_v27 = vadd.f32 %v6620_v55, %v6150_v35  ;;  %v8112_v55 = vld [vmem:[#allocation5_spill] sm:$0xff]  ;;  %v8118_v32 = vld [vmem:[#allocation8_spill] sm:$0xff]  ;;  %v8119_v19 = vld [vmem:[#allocation119_spill] sm:$0xff] }
 0x216   : > { %8101 = vst [vmem:[#allocation212_spill] sm:$0xff] %v6901_v25  ;;  %8102 = vst [vmem:[#allocation213_spill] sm:$0xff] %v6903_v8  ;;  %v6963_v5 = vadd.f32 %v6622_v52, %v6152_v36  ;;  %v6967_v30 = vadd.f32 %v8105_v10, %v6154_v37  ;;  %v6971_v31 = vadd.f32 %v8107_v14, %v8106_v11  ;;  %v8114_v52 = vld [vmem:[#allocation6_spill] sm:$0xff]  ;;  %v8124_v11 = vld [vmem:[#allocation11_spill] sm:$0xff] }
 0x217   : > { %v6941_v29 = vpop.f32.mrf.mxu0  ;;  %v6943_v21 = vpop.f32.mrf.mxu1  ;;  %v6975_v34 = vadd.f32 %v8109_v40, %v8108_v24  ;;  %v6983_v36 = vadd.f32 %v8113_v28, %v8112_v55  ;;  %v6987_v37 = vadd.f32 %v8115_v54, %v8114_v52  ;;  %v6991_v48 = vadd.f32 %v8117_v4, %v8116_v15  ;;  %v8125_v14 = vld [vmem:[#allocation122_spill] sm:$0xff]  ;;  %v8126_v40 = vld [vmem:[#allocation12_spill] sm:$0xff]  ;;  %v8127_v55 = vld [vmem:[#allocation123_spill] sm:$0xff] }
 0x218   : > { %8103 = vst [vmem:[#allocation214_spill] sm:$0xff] %v6941_v29  ;;  %8104 = vst [vmem:[#allocation215_spill] sm:$0xff] %v6943_v21  ;;  %v6995_v0 = vadd.f32 %v8119_v19, %v8118_v32  ;;  %v6999_v50 = vadd.f32 %v8121_v53, %v8120_v47  ;;  %v7003_v10 = vadd.f32 %v8123_v42, %v8122_v41  ;;  %v8130_v15 = vld [vmem:[#allocation13_spill] sm:$0xff]  ;;  %v8131_v4 = vld [vmem:[#allocation124_spill] sm:$0xff] }
 0x219   : > { %v6977_v43 = vpop.f32.mrf.mxu0  ;;  %v6979_v35 = vpop.f32.mrf.mxu1  ;;  %v7007_v24 = vadd.f32 %v8125_v14, %v8124_v11  ;;  %v7011_v28 = vadd.f32 %v8127_v55, %v8126_v40  ;;  %v7019_v32 = vadd.f32 %v8131_v4, %v8130_v15  ;;  %v8132_v19 = vld [vmem:[#allocation14_spill] sm:$0xff]  ;;  %v8133_v47 = vld [vmem:[#allocation125_spill] sm:$0xff]  ;;  %v8134_v41 = vld [vmem:[#allocation15_spill] sm:$0xff] }
 0x21a   : > { %8110 = vst [vmem:[#allocation113_spill] sm:$0xff] %v6977_v43  ;;  %8111 = vst [vmem:[#allocation3_spill] sm:$0xff] %v6979_v35  ;;  %v7023_v53 = vadd.f32 %v8133_v47, %v8132_v19  ;;  %v8135_v42 = vld [vmem:[#allocation126_spill] sm:$0xff]  ;;  %v8136_v14 = vld [vmem:[#allocation16_spill] sm:$0xff] }
 0x21b   : > { %v7013_v52 = vpop.f32.mrf.mxu0  ;;  %v7015_v54 = vpop.f32.mrf.mxu1  ;;  %v7027_v11 = vadd.f32 %v8135_v42, %v8134_v41  ;;  %v8137_v35 = vld [vmem:[#allocation127_spill] sm:$0xff]  ;;  %v8138_v55 = vld [vmem:[#allocation17_spill] sm:$0xff]  ;;  %v8143_v29 = vld [vmem:[#allocation130_spill] sm:$0xff] }
 0x21c   : > { %8128 = vst [vmem:[#allocation114_spill] sm:$0xff] %v7013_v52  ;;  %8129 = vst [vmem:[#allocation4_spill] sm:$0xff] %v7015_v54  ;;  %v7031_v40 = vadd.f32 %v8137_v35, %v8136_v14  ;;  %v8139_v52 = vld [vmem:[#allocation128_spill] sm:$0xff]  ;;  %v8140_v54 = vld [vmem:[#allocation18_spill] sm:$0xff] }
 0x21d   : > { %v7035_v43 = vadd.f32 %v8139_v52, %v8138_v55  ;;  %v8141_v21 = vld [vmem:[#allocation129_spill] sm:$0xff]  ;;  %v8142_v4 = vld [vmem:[#allocation19_spill] sm:$0xff]  ;;  %v8145_v47 = vld [vmem:[#allocation20_spill] sm:$0xff]  ;;  %v7049_v42 = vpop.f32.mrf.mxu0  ;;  %v7051_v35 = vpop.f32.mrf.mxu1 }
 0x21e   : > { %v7039_v15 = vadd.f32 %v8141_v21, %v8140_v54  ;;  %v7043_v19 = vadd.f32 %v8143_v29, %v8142_v4  ;;  %v8146_v8 = vld [vmem:[#allocation131_spill] sm:$0xff]  ;;  %8148 = vst [vmem:[#allocation116_spill] sm:$0xff] %v7049_v42  ;;  %8149 = vst [vmem:[#allocation6_spill] sm:$0xff] %v7051_v35  ;;  %v8150_v14 = vld [vmem:[#allocation21_spill] sm:$0xff] }
 0x21f   : > { %v7047_v41 = vadd.f32 %v8146_v8, %v8145_v47  ;;  %v8151_v25 = vld [vmem:[#allocation132_spill] sm:$0xff]  ;;  %v8153_v55 = vld [vmem:[#allocation22_spill] sm:$0xff]  ;;  %v8154_v63 = vld [vmem:[#allocation133_spill] sm:$0xff] }
 0x220   : > { %8144 = vst [vmem:[#allocation115_spill] sm:$0xff] %v7043_v19  ;;  %v7055_v52 = vadd.f32 %v8151_v25, %v8150_v14  ;;  %v7059_v21 = vadd.f32 %v8154_v63, %v8153_v55  ;;  %v8156_v54 = vld [vmem:[#allocation23_spill] sm:$0xff]  ;;  %v8157_v39 = vld [vmem:[#allocation134_spill] sm:$0xff]  ;;  %v8159_v4 = vld [vmem:[#allocation24_spill] sm:$0xff] }
 0x221   : > { %8147 = vst [vmem:[#allocation5_spill] sm:$0xff] %v7047_v41  ;;  %v7063_v29 = vadd.f32 %v8157_v39, %v8156_v54  ;;  %v7067_v8 = vadd.f32 %v8160_v57, %v8159_v4  ;;  %v8162_v47 = vld [vmem:[#allocation25_spill] sm:$0xff]  ;;  %v8163_v42 = vld [vmem:[#allocation136_spill] sm:$0xff]  ;;  %v8165_v35 = vld [vmem:[#allocation26_spill] sm:$0xff]  ;;  %v7085_v54 = vpop.f32.mrf.mxu0  ;;  %v7087_v57 = vpop.f32.mrf.mxu1 }
 0x222   : > { %8152 = vst [vmem:[#allocation117_spill] sm:$0xff] %v7055_v52  ;;  %8155 = vst [vmem:[#allocation7_spill] sm:$0xff] %v7059_v21  ;;  %v7071_v46 = vadd.f32 %v8163_v42, %v8162_v47  ;;  %v8166_v41 = vld [vmem:[#allocation137_spill] sm:$0xff]  ;;  %v8168_v14 = vld [vmem:[#allocation27_spill] sm:$0xff] }
 0x223   : > { %8158 = vst [vmem:[#allocation118_spill] sm:$0xff] %v7063_v29  ;;  %8161 = vst [vmem:[#allocation8_spill] sm:$0xff] %v7067_v8  ;;  %v7075_v25 = vadd.f32 %v8166_v41, %v8165_v35  ;;  %v8169_v52 = vld [vmem:[#allocation138_spill] sm:$0xff]  ;;  %v8171_v55 = vld [vmem:[#allocation28_spill] sm:$0xff] }
 0x224   : > { %8164 = vst [vmem:[#allocation119_spill] sm:$0xff] %v7071_v46  ;;  %v7079_v63 = vadd.f32 %v8169_v52, %v8168_v14  ;;  %v8172_v21 = vld [vmem:[#allocation139_spill] sm:$0xff]  ;;  %8174 = vst [vmem:[#allocation121_spill] sm:$0xff] %v7085_v54  ;;  %v8176_v4 = vld [vmem:[#allocation29_spill] sm:$0xff] }
 0x225   : > { %8167 = vst [vmem:[#allocation9_spill] sm:$0xff] %v7075_v25  ;;  %v7083_v39 = vadd.f32 %v8172_v21, %v8171_v55  ;;  %8175 = vst [vmem:[#allocation11_spill] sm:$0xff] %v7087_v57  ;;  %v8177_v8 = vld [vmem:[#allocation140_spill] sm:$0xff]  ;;  %v8179_v47 = vld [vmem:[#allocation30_spill] sm:$0xff] }
 0x226   : > { %8170 = vst [vmem:[#allocation120_spill] sm:$0xff] %v7079_v63  ;;  %v7091_v42 = vadd.f32 %v8177_v8, %v8176_v4  ;;  %v8180_v46 = vld [vmem:[#allocation141_spill] sm:$0xff]  ;;  %v8182_v35 = vld [vmem:[#allocation31_spill] sm:$0xff]  ;;  %v8183_v25 = vld [vmem:[#allocation142_spill] sm:$0xff] }
 0x227   : > { %8173 = vst [vmem:[#allocation10_spill] sm:$0xff] %v7083_v39  ;;  %v7095_v41 = vadd.f32 %v8180_v46, %v8179_v47  ;;  %v7099_v52 = vadd.f32 %v8183_v25, %v8182_v35  ;;  %v8185_v14 = vld [vmem:[#allocation32_spill] sm:$0xff]  ;;  %v8186_v63 = vld [vmem:[#allocation143_spill] sm:$0xff]  ;;  %v8188_v55 = vld [vmem:[#allocation33_spill] sm:$0xff]  ;;  %v2516_v35 = vpop.f32.mrf.mxu0 }
 0x228   : > { %8178 = vst [vmem:[#allocation122_spill] sm:$0xff] %v7091_v42  ;;  %v7103_v21 = vadd.f32 %v8186_v63, %v8185_v14  ;;  %v8189_v54 = vld [vmem:[#allocation144_spill] sm:$0xff]  ;;  %v8191_v57 = vld [vmem:[#allocation34_spill] sm:$0xff]  ;;  %v8192_v29 = vld [vmem:[#allocation145_spill] sm:$0xff] }
 0x229   : > { %8181 = vst [vmem:[#allocation12_spill] sm:$0xff] %v7095_v41  ;;  %8184 = vst [vmem:[#allocation123_spill] sm:$0xff] %v7099_v52  ;;  %v7107_v39 = vadd.f32 %v8189_v54, %v8188_v55  ;;  %v7111_v8 = vadd.f32 %v8192_v29, %v8191_v57  ;;  %v8194_v4 = vld [vmem:[#allocation35_spill] sm:$0xff]  ;;  %v8195_v42 = vld [vmem:[#allocation146_spill] sm:$0xff]  ;;  %v2719_v52 = vpop.f32.mrf.mxu1  ;;  %v2888_v29 = vadd.f32 %v2516_v35, %v6847_v56 }
 0x22a   : > { %8187 = vst [vmem:[#allocation13_spill] sm:$0xff] %v7103_v21  ;;  %v7115_v46 = vadd.f32 %v8195_v42, %v8194_v4  ;;  %v8197_v47 = vld [vmem:[#allocation36_spill] sm:$0xff]  ;;  %v8198_v41 = vld [vmem:[#allocation147_spill] sm:$0xff]  ;;  %v8200_v63 = vld [vmem:[#allocation37_spill] sm:$0xff]  ;;  %v2890_v57 = vadd.f32 %v2719_v52, %v6851_v61 }
 0x22b   : > { %8190 = vst [vmem:[#allocation124_spill] sm:$0xff] %v7107_v39  ;;  %8193 = vst [vmem:[#allocation14_spill] sm:$0xff] %v7111_v8  ;;  %v7119_v25 = vadd.f32 %v8198_v41, %v8197_v47  ;;  %v8201_v14 = vld [vmem:[#allocation148_spill] sm:$0xff]  ;;  %v8203_v54 = vld [vmem:[#allocation38_spill] sm:$0xff]  ;;  %v2721_v56 = vpop.f32.mrf.mxu1 }
 0x22c   : > { %8196 = vst [vmem:[#allocation125_spill] sm:$0xff] %v7115_v46  ;;  %v7123_v21 = vadd.f32 %v8201_v14, %v8200_v63  ;;  %v8204_v55 = vld [vmem:[#allocation149_spill] sm:$0xff]  ;;  %v8205_v42 = vld [vmem:[#allocation39_spill] sm:$0xff]  ;;  %v8206_v4 = vld [vmem:[#allocation150_spill] sm:$0xff] }
 0x22d   : > { %8199 = vst [vmem:[#allocation15_spill] sm:$0xff] %v7119_v25  ;;  %v7127_v39 = vadd.f32 %v8204_v55, %v8203_v54  ;;  %v7133_v46 = vadd.f32 %v8206_v4, %v8205_v42  ;;  %v8208_v41 = vld [vmem:[#allocation40_spill] sm:$0xff]  ;;  %v8209_v47 = vld [vmem:[#allocation151_spill] sm:$0xff]  ;;  %v8211_v8 = vld [vmem:[#allocation41_spill] sm:$0xff]  ;;  %v2518_v55 = vpop.f32.mrf.mxu0 }
 0x22e   : > { %8202 = vst [vmem:[#allocation126_spill] sm:$0xff] %v7123_v21  ;;  %v7137_v25 = vadd.f32 %v8209_v47, %v8208_v41  ;;  %v8212_v19 = vld [vmem:[#allocation152_spill] sm:$0xff]  ;;  %v8214_v14 = vld [vmem:[#allocation42_spill] sm:$0xff]  ;;  %v8215_v21 = vld [vmem:[#allocation153_spill] sm:$0xff]  ;;  %v2889_v41 = vadd.f32 %v2518_v55, %v6855_v45  ;;  %v2891_v47 = vadd.f32 %v2721_v56, %v6859_v49 }
 0x22f   : > { %8207 = vst [vmem:[#allocation16_spill] sm:$0xff] %v7133_v46  ;;  %v7141_v63 = vadd.f32 %v8212_v19, %v8211_v8  ;;  %v7145_v54 = vadd.f32 %v8215_v21, %v8214_v14  ;;  %v8217_v35 = vld [vmem:[#allocation43_spill] sm:$0xff]  ;;  %v8218_v61 = vld [vmem:[#allocation154_spill] sm:$0xff]  ;;  %v8220_v42 = vld [vmem:[#allocation44_spill] sm:$0xff] }
 0x230   : > { %8210 = vst [vmem:[#allocation127_spill] sm:$0xff] %v7137_v25  ;;  %v7149_v52 = vadd.f32 %v8218_v61, %v8217_v35  ;;  %v8221_v4 = vld [vmem:[#allocation155_spill] sm:$0xff]  ;;  %v8223_v19 = vld [vmem:[#allocation45_spill] sm:$0xff]  ;;  %v8224_v8 = vld [vmem:[#allocation156_spill] sm:$0xff]  ;;  %v3046_v25 = vadd.f32 %v6889_v33, %v2888_v29  ;;  %v3048_v35 = vadd.f32 %v6891_v6, %v2890_v57  ;;  %v2520_v61 = vpop.f32.mrf.mxu0  ;;  %v3047_v29 = vadd.f32 %v6905_v60, %v2889_v41 }
 0x231   : > { %8213 = vst [vmem:[#allocation17_spill] sm:$0xff] %v7141_v63  ;;  %8216 = vst [vmem:[#allocation128_spill] sm:$0xff] %v7145_v54  ;;  %v7153_v46 = vadd.f32 %v8221_v4, %v8220_v42  ;;  %v7159_v63 = vadd.f32 %v8224_v8, %v8223_v19  ;;  %v8226_v21 = vld [vmem:[#allocation46_spill] sm:$0xff]  ;;  %v8227_v14 = vld [vmem:[#allocation157_spill] sm:$0xff]  ;;  %v3049_v57 = vadd.f32 %v6907_v9, %v2891_v47 }
 0x232   : > { %8219 = vst [vmem:[#allocation18_spill] sm:$0xff] %v7149_v52  ;;  %v7163_v54 = vadd.f32 %v8227_v14, %v8226_v21  ;;  %v2723_v52 = vpop.f32.mrf.mxu1  ;;  %v8229_v42 = vld [vmem:[#allocation47_spill] sm:$0xff]  ;;  %v8230_v4 = vld [vmem:[#allocation158_spill] sm:$0xff]  ;;  %v8232_v45 = vld [vmem:[#allocation48_spill] sm:$0xff]  ;;  %v3184_v47 = vmax.f32 %v3048_v35, 0.0 }
 0x233   : > { %8222 = vst [vmem:[#allocation129_spill] sm:$0xff] %v7153_v46  ;;  %8225 = vst [vmem:[#allocation19_spill] sm:$0xff] %v7159_v63  ;;  %v7169_v46 = vadd.f32 %v8230_v4, %v8229_v42  ;;  %v8233_v49 = vld [vmem:[#allocation159_spill] sm:$0xff]  ;;  %v8235_v56 = vld [vmem:[#allocation49_spill] sm:$0xff]  ;;  %v2892_v63 = vadd.f32 %v2520_v61, %v6863_v51  ;;  %v2894_v42 = vadd.f32 %v2723_v52, %v6867_v58  ;;  %v2522_v4 = vpop.f32.mrf.mxu0 }
 0x234   : > { %8228 = vst [vmem:[#allocation130_spill] sm:$0xff] %v7163_v54  ;;  %v7173_v55 = vadd.f32 %v8233_v49, %v8232_v45  ;;  %v8236_v19 = vld [vmem:[#allocation160_spill] sm:$0xff]  ;;  %v8238_v21 = vld [vmem:[#allocation50_spill] sm:$0xff]  ;;  %v8239_v14 = vld [vmem:[#allocation161_spill] sm:$0xff] }
 0x235   : > { %8231 = vst [vmem:[#allocation20_spill] sm:$0xff] %v7169_v46  ;;  %v7177_v8 = vadd.f32 %v8236_v19, %v8235_v56  ;;  %v7181_v54 = vadd.f32 %v8239_v14, %v8238_v21  ;;  %v2725_v46 = vpop.f32.mrf.mxu1  ;;  %v8241_v45 = vld [vmem:[#allocation51_spill] sm:$0xff]  ;;  %v8242_v49 = vld [vmem:[#allocation162_spill] sm:$0xff]  ;;  %v8244_v56 = vld [vmem:[#allocation52_spill] sm:$0xff]  ;;  %v2893_v21 = vadd.f32 %v2522_v4, %v6871_v59  ;;  %v3182_v14 = vmax.f32 %v3046_v25, 0.0  ;;  %v2526_v52 = vpop.f32.mrf.mxu0 }
 0x236   : > { %8234 = vst [vmem:[#allocation131_spill] sm:$0xff] %v7173_v55  ;;  %v7189_v55 = vadd.f32 %v8242_v49, %v8241_v45  ;;  %v8245_v19 = vld [vmem:[#allocation163_spill] sm:$0xff]  ;;  %v2895_v41 = vadd.f32 %v2725_v46, %v6875_v62  ;;  %v3050_v51 = vadd.f32 %v6889_v33, %v2892_v63  ;;  %v3052_v58 = vadd.f32 %v6891_v6, %v2894_v42 }
 0x237   : > { %8237 = vst [vmem:[#allocation21_spill] sm:$0xff] %v7177_v8  ;;  %8240 = vst [vmem:[#allocation132_spill] sm:$0xff] %v7181_v54  ;;  %v7193_v8 = vadd.f32 %v8245_v19, %v8244_v56  ;;  %v2729_v61 = vpop.f32.mrf.mxu1  ;;  %v3051_v54 = vadd.f32 %v6905_v60, %v2893_v21  ;;  %v2896_v49 = vadd.f32 %v2526_v52, %v6883_v2  ;;  %v3183_v19 = vmax.f32 %v3047_v29, 0.0  ;;  %v2528_v46 = vpop.f32.mrf.mxu0  ;;  %v8247_v29 = vld [vmem:[#allocation53_spill] sm:$0xff] }
 0x238   : > { %8243 = vst [vmem:[#allocation22_spill] sm:$0xff] %v7189_v55  ;;  %v3053_v45 = vadd.f32 %v6907_v9, %v2895_v41  ;;  %v2898_v56 = vadd.f32 %v2729_v61, %v6887_v3  ;;  %v3185_v59 = vmax.f32 %v3049_v57, 0.0  ;;  %v3186_v4 = vmax.f32 %v3050_v51, 0.0  ;;  %v8248_v57 = vld [vmem:[#allocation164_spill] sm:$0xff]  ;;  %v8250_v61 = vld [vmem:[#allocation165_spill] sm:$0xff] }
 0x239   : > { %8246 = vst [vmem:[#allocation133_spill] sm:$0xff] %v7193_v8  ;;  %v3188_v62 = vmax.f32 %v3052_v58, 0.0  ;;  %v2731_v25 = vpop.f32.mrf.mxu1  ;;  %v3187_v35 = vmax.f32 %v3051_v54, 0.0  ;;  %v3054_v42 = vadd.f32 %v6889_v33, %v2896_v49  ;;  %v2897_v41 = vadd.f32 %v2528_v46, %v6895_v7  ;;  %v2530_v52 = vpop.f32.mrf.mxu0  ;;  %v8249_v58 = vld [vmem:[#allocation54_spill] sm:$0xff] }
 0x23a   : > { %v3189_v63 = vmax.f32 %v3053_v45, 0.0  ;;  %v3056_v8 = vadd.f32 %v6891_v6, %v2898_v56  ;;  %v3318_v55 = vpack.c.bf16 %v3186_v4, %v3182_v14  ;;  %v2899_v2 = vadd.f32 %v2731_v25, %v6899_v18 }
 0x23b   : > { %v3320_v21 = vpack.c.bf16 %v3188_v62, %v3184_v47  ;;  %v2733_v3 = vpop.f32.mrf.mxu1  ;;  %v7209_v51 = vadd.f32 %v8248_v57, %v8247_v29  ;;  %v7213_v54 = vadd.f32 %v8250_v61, %v8249_v58  ;;  %v2900_v45 = vadd.f32 %v2530_v52, %v6911_v1  ;;  %v2532_v47 = vpop.f32.mrf.mxu0  ;;  %v8251_v57 = vld [vmem:[#allocation55_spill] sm:$0xff]  ;;  %v8252_v1 = vld [vmem:[#allocation166_spill] sm:$0xff] }
 0x23c   : > { %v2902_v49 = vadd.f32 %v2733_v3, %v6915_v12  ;;  %v3055_v14 = vadd.f32 %v6905_v60, %v2897_v41  ;;  %v3057_v7 = vadd.f32 %v6907_v9, %v2899_v2  ;;  %v3319_v56 = vpack.c.bf16 %v3187_v35, %v3183_v19  ;;  %v8253_v12 = vld [vmem:[#allocation56_spill] sm:$0xff]  ;;  %v8254_v41 = vld [vmem:[#allocation167_spill] sm:$0xff] }
 0x23d   : > { %v2735_v18 = vpop.f32.mrf.mxu1  ;;  %v3321_v4 = vpack.c.bf16 %v3189_v63, %v3185_v59  ;;  %v3058_v62 = vadd.f32 %v6889_v33, %v2900_v45  ;;  %v2901_v25 = vadd.f32 %v2532_v47, %v6919_v13  ;;  %v7225_v52 = vadd.f32 %v8252_v1, %v8251_v57  ;;  %v2536_v19 = vpop.f32.mrf.mxu0  ;;  %v8255_v1 = vld [vmem:[#allocation57_spill] sm:$0xff] }
 0x23e   : > { %v3060_v46 = vadd.f32 %v6891_v6, %v2902_v49  ;;  %v2903_v29 = vadd.f32 %v2735_v18, %v6923_v44  ;;  %v7229_v3 = vadd.f32 %v8254_v41, %v8253_v12  ;;  %v3190_v2 = vmax.f32 %v3054_v42, 0.0  ;;  %3681 = vmatprep.mubr.bf16.mxu0 %v3319_v56  ;;  %v8256_v12 = vld [vmem:[#allocation168_spill] sm:$0xff] }
 0x23f   : > { %v3192_v58 = vmax.f32 %v3056_v8, 0.0  ;;  %3850 = vmatprep.mubr.bf16.mxu1 %v3321_v4  ;;  %v2739_v59 = vpop.f32.mrf.mxu1  ;;  %v3194_v35 = vmax.f32 %v3058_v62, 0.0  ;;  %v3059_v13 = vadd.f32 %v6905_v60, %v2901_v25  ;;  %3682 = vmatmul.mubr.bf16.vlgmr.msra.gmra.mxu0 %v3318_v55  ;;  %v3191_v61 = vmax.f32 %v3055_v14, 0.0  ;;  %v2538_v42 = vpop.f32.mrf.mxu0 }
 0x240   : > { %v3196_v63 = vmax.f32 %v3060_v46, 0.0  ;;  %v3061_v44 = vadd.f32 %v6907_v9, %v2903_v29  ;;  %3851 = vmatmul.mubr.bf16.vlgmr.msra.gmra.mxu1 %v3320_v21  ;;  %v3193_v45 = vmax.f32 %v3057_v7, 0.0  ;;  %v2904_v49 = vadd.f32 %v2536_v19, %v6927_v38 }
 0x241   : > { %v2906_v47 = vadd.f32 %v2739_v59, %v6931_v16  ;;  %v2741_v8 = vpop.f32.mrf.mxu1  ;;  %v3322_v18 = vpack.c.bf16 %v3194_v35, %v3190_v2  ;;  %v3195_v4 = vmax.f32 %v3059_v13, 0.0  ;;  %v2905_v25 = vadd.f32 %v2538_v42, %v6935_v17  ;;  %v2540_v21 = vpop.f32.mrf.mxu0  ;;  %v8257_v2 = vld [vmem:[#allocation58_spill] sm:$0xff] }
 0x242   : > { %v3324_v56 = vpack.c.bf16 %v3196_v63, %v3192_v58  ;;  %v3197_v57 = vmax.f32 %v3061_v44, 0.0  ;;  %v3062_v62 = vadd.f32 %v6889_v33, %v2904_v49  ;;  %v2907_v55 = vadd.f32 %v2741_v8, %v6939_v20  ;;  %v8258_v58 = vld [vmem:[#allocation169_spill] sm:$0xff]  ;;  %v8259_v44 = vld [vmem:[#allocation59_spill] sm:$0xff]  ;;  %v8261_v49 = vld [vmem:[#allocation60_spill] sm:$0xff] }
 0x243   : > { %v3064_v46 = vadd.f32 %v6891_v6, %v2906_v47  ;;  %v2743_v14 = vpop.f32.mrf.mxu1  ;;  %v2908_v38 = vadd.f32 %v2540_v21, %v6947_v22  ;;  %v3323_v7 = vpack.c.bf16 %v3195_v4, %v3191_v61  ;;  %v7243_v41 = vadd.f32 %v8256_v12, %v8255_v1  ;;  %v2542_v59 = vpop.f32.mrf.mxu0  ;;  %v8260_v61 = vld [vmem:[#allocation170_spill] sm:$0xff]  ;;  %v8262_v47 = vld [vmem:[#allocation171_spill] sm:$0xff] }
 0x244   : > { %v2910_v16 = vadd.f32 %v2743_v14, %v6951_v23  ;;  %v3325_v29 = vpack.c.bf16 %v3197_v57, %v3193_v45  ;;  %v7247_v19 = vadd.f32 %v8258_v58, %v8257_v2  ;;  %v3063_v17 = vadd.f32 %v6905_v60, %v2905_v25 }
 0x245   : > { %v3065_v20 = vadd.f32 %v6907_v9, %v2907_v55  ;;  %v2745_v35 = vpop.f32.mrf.mxu1  ;;  %v3066_v22 = vadd.f32 %v6889_v33, %v2908_v38  ;;  %v2909_v63 = vadd.f32 %v2542_v59, %v6955_v26  ;;  %3689 = vmatprep.mubr.bf16.mxu0 %v3323_v7  ;;  %v7257_v45 = vadd.f32 %v8260_v61, %v8259_v44  ;;  %v2546_v57 = vpop.f32.mrf.mxu0  ;;  %v8265_v44 = vld [vmem:[#allocation62_spill] sm:$0xff]  ;;  %v8266_v61 = vld [vmem:[#allocation173_spill] sm:$0xff] }
 0x246   : > { %v3068_v23 = vadd.f32 %v6891_v6, %v2910_v16  ;;  %v2911_v13 = vadd.f32 %v2745_v35, %v6959_v27  ;;  %v7261_v42 = vadd.f32 %v8262_v47, %v8261_v49  ;;  %v3198_v8 = vmax.f32 %v3062_v62, 0.0  ;;  %3858 = vmatprep.mubr.bf16.mxu1 %v3325_v29 }
 0x247   : > { %v3200_v4 = vmax.f32 %v3064_v46, 0.0  ;;  %v2749_v25 = vpop.f32.mrf.mxu1  ;;  %v3202_v55 = vmax.f32 %v3066_v22, 0.0  ;;  %v3067_v26 = vadd.f32 %v6905_v60, %v2909_v63  ;;  %3690 = vmatmul.mubr.bf16.gmra.mxu0 %v3322_v18  ;;  %v3199_v14 = vmax.f32 %v3063_v17, 0.0  ;;  %v2548_v1 = vpop.f32.mrf.mxu0  ;;  %v8264_v63 = vld [vmem:[#allocation172_spill] sm:$0xff] }
 0x248   : > { %v3204_v21 = vmax.f32 %v3068_v23, 0.0  ;;  %v3069_v27 = vadd.f32 %v6907_v9, %v2911_v13  ;;  %3859 = vmatmul.mubr.bf16.gmra.mxu1 %v3324_v56  ;;  %v3201_v38 = vmax.f32 %v3065_v20, 0.0  ;;  %v2912_v16 = vadd.f32 %v2546_v57, %v6963_v5  ;;  %v8263_v23 = vld [vmem:[#allocation61_spill] sm:$0xff] }
 0x249   : > { %v2914_v7 = vadd.f32 %v2749_v25, %v6967_v30  ;;  %v2751_v62 = vpop.f32.mrf.mxu1  ;;  %v3326_v46 = vpack.c.bf16 %v3202_v55, %v3198_v8  ;;  %v3203_v12 = vmax.f32 %v3067_v26, 0.0  ;;  %v2913_v35 = vadd.f32 %v2548_v1, %v6971_v31  ;;  %v2550_v56 = vpop.f32.mrf.mxu0  ;;  %v8267_v25 = vld [vmem:[#allocation63_spill] sm:$0xff]  ;;  %v8268_v55 = vld [vmem:[#allocation174_spill] sm:$0xff]  ;;  %v8269_v26 = vld [vmem:[#allocation64_spill] sm:$0xff] }
 0x24a   : > { %v3328_v29 = vpack.c.bf16 %v3204_v21, %v3200_v4  ;;  %v3205_v2 = vmax.f32 %v3069_v27, 0.0  ;;  %v3070_v58 = vadd.f32 %v6889_v33, %v2912_v16  ;;  %v2915_v18 = vadd.f32 %v2751_v62, %v6975_v34  ;;  %v8270_v27 = vld [vmem:[#allocation175_spill] sm:$0xff] }
 0x24b   : > { %v3072_v59 = vadd.f32 %v6891_v6, %v2914_v7  ;;  %v2753_v17 = vpop.f32.mrf.mxu1  ;;  %v2916_v5 = vadd.f32 %v2550_v56, %v6983_v36  ;;  %v3327_v20 = vpack.c.bf16 %v3203_v12, %v3199_v14  ;;  %v7275_v13 = vadd.f32 %v8264_v63, %v8263_v23  ;;  %v2552_v47 = vpop.f32.mrf.mxu0 }
 0x24c   : > { %v2918_v30 = vadd.f32 %v2753_v17, %v6987_v37  ;;  %v3329_v22 = vpack.c.bf16 %v3205_v2, %v3201_v38  ;;  %v7279_v49 = vadd.f32 %v8266_v61, %v8265_v44  ;;  %v3071_v31 = vadd.f32 %v6905_v60, %v2913_v35 }
 0x24d   : > { %v3073_v34 = vadd.f32 %v6907_v9, %v2915_v18  ;;  %v2755_v8 = vpop.f32.mrf.mxu1  ;;  %v3074_v36 = vadd.f32 %v6889_v33, %v2916_v5  ;;  %v2917_v4 = vadd.f32 %v2552_v47, %v6991_v48  ;;  %3697 = vmatprep.mubr.bf16.mxu0 %v3327_v20  ;;  %v7289_v21 = vadd.f32 %v8268_v55, %v8267_v25  ;;  %v2556_v7 = vpop.f32.mrf.mxu0  ;;  %v8272_v47 = vld [vmem:[#allocation176_spill] sm:$0xff] }
 0x24e   : > { %v3076_v37 = vadd.f32 %v6891_v6, %v2918_v30  ;;  %v2919_v57 = vadd.f32 %v2755_v8, %v6995_v0  ;;  %v7293_v14 = vadd.f32 %v8270_v27, %v8269_v26  ;;  %v3206_v38 = vmax.f32 %v3070_v58, 0.0  ;;  %3866 = vmatprep.mubr.bf16.mxu1 %v3329_v22  ;;  %v8275_v27 = vld [vmem:[#allocation67_spill] sm:$0xff] }
 0x24f   : > { %v3208_v16 = vmax.f32 %v3072_v59, 0.0  ;;  %v2759_v1 = vpop.f32.mrf.mxu1  ;;  %v3210_v62 = vmax.f32 %v3074_v36, 0.0  ;;  %v3075_v48 = vadd.f32 %v6905_v60, %v2917_v4  ;;  %3698 = vmatmul.mubr.bf16.gmra.mxu0 %v3326_v46  ;;  %v3207_v2 = vmax.f32 %v3071_v31, 0.0  ;;  %v2558_v17 = vpop.f32.mrf.mxu0  ;;  %v8273_v36 = vld [vmem:[#allocation66_spill] sm:$0xff] }
 0x250   : > { %v3212_v12 = vmax.f32 %v3076_v37, 0.0  ;;  %v3077_v0 = vadd.f32 %v6907_v9, %v2919_v57  ;;  %3867 = vmatmul.mubr.bf16.gmra.mxu1 %v3328_v29  ;;  %v3209_v35 = vmax.f32 %v3073_v34, 0.0  ;;  %v2920_v18 = vadd.f32 %v2556_v7, %v6999_v50  ;;  %v8271_v34 = vld [vmem:[#allocation65_spill] sm:$0xff]  ;;  %v8277_v7 = vld [vmem:[#allocation68_spill] sm:$0xff] }
 0x251   : > { %v2922_v56 = vadd.f32 %v2759_v1, %v7003_v10  ;;  %v2761_v58 = vpop.f32.mrf.mxu1  ;;  %v3330_v59 = vpack.c.bf16 %v3210_v62, %v3206_v38  ;;  %v3211_v30 = vmax.f32 %v3075_v48, 0.0  ;;  %v2921_v63 = vadd.f32 %v2558_v17, %v7007_v24  ;;  %v2560_v29 = vpop.f32.mrf.mxu0  ;;  %v8274_v37 = vld [vmem:[#allocation177_spill] sm:$0xff]  ;;  %v8276_v38 = vld [vmem:[#allocation178_spill] sm:$0xff]  ;;  %v8278_v1 = vld [vmem:[#allocation179_spill] sm:$0xff] }
 0x252   : > { %v3332_v5 = vpack.c.bf16 %v3212_v12, %v3208_v16  ;;  %v3213_v20 = vmax.f32 %v3077_v0, 0.0  ;;  %v3078_v22 = vadd.f32 %v6889_v33, %v2920_v18  ;;  %v2923_v46 = vadd.f32 %v2761_v58, %v7011_v28 }
 0x253   : > { %v3080_v23 = vadd.f32 %v6891_v6, %v2922_v56  ;;  %v2763_v44 = vpop.f32.mrf.mxu1  ;;  %v2924_v50 = vadd.f32 %v2560_v29, %v7019_v32  ;;  %v3331_v61 = vpack.c.bf16 %v3211_v30, %v3207_v2  ;;  %v7307_v8 = vadd.f32 %v8272_v47, %v8271_v34  ;;  %v2562_v57 = vpop.f32.mrf.mxu0  ;;  %v8281_v47 = vld [vmem:[#allocation117_spill] sm:$0xff] }
 0x254   : > { %v2926_v10 = vadd.f32 %v2763_v44, %v7023_v53  ;;  %v3333_v31 = vpack.c.bf16 %v3213_v20, %v3209_v35  ;;  %v7311_v4 = vadd.f32 %v8274_v37, %v8273_v36  ;;  %v3079_v24 = vadd.f32 %v6905_v60, %v2921_v63  ;;  %v8282_v36 = vld [vmem:[#allocation7_spill] sm:$0xff] }
 0x255   : > { %v3081_v28 = vadd.f32 %v6907_v9, %v2923_v46  ;;  %v2765_v25 = vpop.f32.mrf.mxu1  ;;  %v3082_v32 = vadd.f32 %v6889_v33, %v2924_v50  ;;  %v2925_v55 = vadd.f32 %v2562_v57, %v7027_v11  ;;  %3705 = vmatprep.mubr.bf16.mxu0 %v3331_v61  ;;  %v7321_v16 = vadd.f32 %v8276_v38, %v8275_v27  ;;  %v2566_v0 = vpop.f32.mrf.mxu0  ;;  %v8284_v57 = vld [vmem:[#allocation180_spill] sm:$0xff] }
 0x256   : > { %v3084_v53 = vadd.f32 %v6891_v6, %v2926_v10  ;;  %v2927_v26 = vadd.f32 %v2765_v25, %v7031_v40  ;;  %v7325_v62 = vadd.f32 %v8278_v1, %v8277_v7  ;;  %v3214_v12 = vmax.f32 %v3078_v22, 0.0  ;;  %3874 = vmatprep.mubr.bf16.mxu1 %v3333_v31  ;;  %v8279_v10 = vld [vmem:[#allocation115_spill] sm:$0xff] }
 0x257   : > { %v3216_v48 = vmax.f32 %v3080_v23, 0.0  ;;  %v2769_v2 = vpop.f32.mrf.mxu1  ;;  %v3218_v35 = vmax.f32 %v3082_v32, 0.0  ;;  %v3083_v11 = vadd.f32 %v6905_v60, %v2925_v55  ;;  %3706 = vmatmul.mubr.bf16.gmra.mxu0 %v3330_v59  ;;  %v3215_v56 = vmax.f32 %v3079_v24, 0.0  ;;  %v2568_v20 = vpop.f32.mrf.mxu0  ;;  %v8280_v59 = vld [vmem:[#allocation5_spill] sm:$0xff]  ;;  %v8285_v32 = vld [vmem:[#allocation70_spill] sm:$0xff] }
 0x258   : > { %v3220_v18 = vmax.f32 %v3084_v53, 0.0  ;;  %v3085_v40 = vadd.f32 %v6907_v9, %v2927_v26  ;;  %3875 = vmatmul.mubr.bf16.gmra.mxu1 %v3332_v5  ;;  %v3217_v17 = vmax.f32 %v3081_v28, 0.0  ;;  %v2928_v58 = vadd.f32 %v2566_v0, %v7035_v43  ;;  %v8283_v28 = vld [vmem:[#allocation69_spill] sm:$0xff] }
 0x259   : > { %v2930_v30 = vadd.f32 %v2769_v2, %v7039_v15  ;;  %v2771_v22 = vpop.f32.mrf.mxu1  ;;  %v3334_v23 = vpack.c.bf16 %v3218_v35, %v3214_v12  ;;  %v3219_v46 = vmax.f32 %v3083_v11, 0.0  ;;  %v2929_v61 = vadd.f32 %v2568_v20, %v8279_v10  ;;  %v2570_v31 = vpop.f32.mrf.mxu0  ;;  %v8286_v53 = vld [vmem:[#allocation181_spill] sm:$0xff]  ;;  %v8288_v2 = vld [vmem:[#allocation8_spill] sm:$0xff]  ;;  %v8290_v11 = vld [vmem:[#allocation182_spill] sm:$0xff] }
 0x25a   : > { %v3336_v63 = vpack.c.bf16 %v3220_v18, %v3216_v48  ;;  %v3221_v29 = vmax.f32 %v3085_v40, 0.0  ;;  %v3086_v44 = vadd.f32 %v6889_v33, %v2928_v58  ;;  %v2931_v5 = vadd.f32 %v2771_v22, %v8280_v59  ;;  %v8287_v48 = vld [vmem:[#allocation118_spill] sm:$0xff]  ;;  %v8289_v18 = vld [vmem:[#allocation71_spill] sm:$0xff] }
 0x25b   : > { %v3088_v50 = vadd.f32 %v6891_v6, %v2930_v30  ;;  %v2773_v34 = vpop.f32.mrf.mxu1  ;;  %v2932_v43 = vadd.f32 %v2570_v31, %v8281_v47  ;;  %v3335_v37 = vpack.c.bf16 %v3219_v46, %v3215_v56  ;;  %v7339_v25 = vadd.f32 %v8284_v57, %v8283_v28  ;;  %v2572_v38 = vpop.f32.mrf.mxu0  ;;  %v8291_v56 = vld [vmem:[#allocation72_spill] sm:$0xff] }
 0x25c   : > { %v2934_v15 = vadd.f32 %v2773_v34, %v8282_v36  ;;  %v3337_v24 = vpack.c.bf16 %v3221_v29, %v3217_v17  ;;  %v7343_v55 = vadd.f32 %v8286_v53, %v8285_v32  ;;  %v3087_v26 = vadd.f32 %v6905_v60, %v2929_v61  ;;  %v8292_v17 = vld [vmem:[#allocation183_spill] sm:$0xff]  ;;  %v8295_v53 = vld [vmem:[#allocation120_spill] sm:$0xff] }
 0x25d   : > { %v3089_v27 = vadd.f32 %v6907_v9, %v2931_v5  ;;  %v2775_v7 = vpop.f32.mrf.mxu1  ;;  %v3090_v1 = vadd.f32 %v6889_v33, %v2932_v43  ;;  %v2933_v0 = vadd.f32 %v2572_v38, %v8287_v48  ;;  %3713 = vmatprep.mubr.bf16.mxu0 %v3335_v37  ;;  %v7353_v40 = vadd.f32 %v8290_v11, %v8289_v18  ;;  %v2576_v22 = vpop.f32.mrf.mxu0  ;;  %v8293_v34 = vld [vmem:[#allocation119_spill] sm:$0xff]  ;;  %v8294_v43 = vld [vmem:[#allocation9_spill] sm:$0xff]  ;;  %v8300_v18 = vld [vmem:[#allocation184_spill] sm:$0xff] }
 0x25e   : > { %v3092_v12 = vadd.f32 %v6891_v6, %v2934_v15  ;;  %v2935_v35 = vadd.f32 %v2775_v7, %v8288_v2  ;;  %v7357_v58 = vadd.f32 %v8292_v17, %v8291_v56  ;;  %v3222_v30 = vmax.f32 %v3086_v44, 0.0  ;;  %3882 = vmatprep.mubr.bf16.mxu1 %v3337_v24  ;;  %v8297_v7 = vld [vmem:[#allocation122_spill] sm:$0xff]  ;;  %v8302_v17 = vld [vmem:[#allocation185_spill] sm:$0xff] }
 0x25f   : > { %v3224_v20 = vmax.f32 %v3088_v50, 0.0  ;;  %v2779_v46 = vpop.f32.mrf.mxu1  ;;  %v3226_v29 = vmax.f32 %v3090_v1, 0.0  ;;  %v3091_v61 = vadd.f32 %v6905_v60, %v2933_v0  ;;  %3714 = vmatmul.mubr.bf16.gmra.mxu0 %v3334_v23  ;;  %v3223_v5 = vmax.f32 %v3087_v26, 0.0  ;;  %v2578_v15 = vpop.f32.mrf.mxu0  ;;  %v8296_v23 = vld [vmem:[#allocation10_spill] sm:$0xff] }
 0x260   : > { %v3228_v10 = vmax.f32 %v3092_v12, 0.0  ;;  %v3093_v59 = vadd.f32 %v6907_v9, %v2935_v35  ;;  %3883 = vmatmul.mubr.bf16.gmra.mxu1 %v3336_v63  ;;  %v3225_v31 = vmax.f32 %v3089_v27, 0.0  ;;  %v2936_v47 = vadd.f32 %v2576_v22, %v8293_v34  ;;  %v8298_v12 = vld [vmem:[#allocation12_spill] sm:$0xff]  ;;  %v8299_v35 = vld [vmem:[#allocation73_spill] sm:$0xff]  ;;  %v8301_v56 = vld [vmem:[#allocation74_spill] sm:$0xff] }
 0x261   : > { %v2938_v36 = vadd.f32 %v2779_v46, %v8294_v43  ;;  %v2781_v44 = vpop.f32.mrf.mxu1  ;;  %v3338_v50 = vpack.c.bf16 %v3226_v29, %v3222_v30  ;;  %v3227_v24 = vmax.f32 %v3091_v61, 0.0  ;;  %v2937_v38 = vadd.f32 %v2578_v15, %v8295_v53  ;;  %v2580_v26 = vpop.f32.mrf.mxu0  ;;  %v8306_v43 = vld [vmem:[#allocation186_spill] sm:$0xff]  ;;  %v8307_v15 = vld [vmem:[#allocation76_spill] sm:$0xff] }
 0x262   : > { %v3340_v37 = vpack.c.bf16 %v3228_v10, %v3224_v20  ;;  %v3229_v28 = vmax.f32 %v3093_v59, 0.0  ;;  %v3094_v57 = vadd.f32 %v6889_v33, %v2936_v47  ;;  %v2939_v63 = vadd.f32 %v2781_v44, %v8296_v23  ;;  %v8303_v59 = vld [vmem:[#allocation123_spill] sm:$0xff] }
 0x263   : > { %v3096_v32 = vadd.f32 %v6891_v6, %v2938_v36  ;;  %v2783_v27 = vpop.f32.mrf.mxu1  ;;  %v2940_v1 = vadd.f32 %v2580_v26, %v8297_v7  ;;  %v3339_v0 = vpack.c.bf16 %v3227_v24, %v3223_v5  ;;  %v7371_v11 = vadd.f32 %v8300_v18, %v8299_v35  ;;  %v2582_v46 = vpop.f32.mrf.mxu0  ;;  %v8305_v47 = vld [vmem:[#allocation75_spill] sm:$0xff]  ;;  %v8310_v35 = vld [vmem:[#allocation14_spill] sm:$0xff] }
 0x264   : > { %v2942_v48 = vadd.f32 %v2783_v27, %v8298_v12  ;;  %v3341_v2 = vpack.c.bf16 %v3229_v28, %v3225_v31  ;;  %v7375_v30 = vadd.f32 %v8302_v17, %v8301_v56  ;;  %v3095_v20 = vadd.f32 %v6905_v60, %v2937_v38  ;;  %v8304_v31 = vld [vmem:[#allocation13_spill] sm:$0xff]  ;;  %v8308_v44 = vld [vmem:[#allocation187_spill] sm:$0xff] }
 0x265   : > { %v3097_v22 = vadd.f32 %v6907_v9, %v2939_v63  ;;  %v2785_v29 = vpop.f32.mrf.mxu1  ;;  %v3098_v10 = vadd.f32 %v6889_v33, %v2940_v1  ;;  %v2941_v5 = vadd.f32 %v2582_v46, %v8303_v59  ;;  %3721 = vmatprep.mubr.bf16.mxu0 %v3339_v0  ;;  %v7385_v36 = vadd.f32 %v8306_v43, %v8305_v47  ;;  %v2586_v38 = vpop.f32.mrf.mxu0 }
 0x266   : > { %v3100_v61 = vadd.f32 %v6891_v6, %v2942_v48  ;;  %v2943_v34 = vadd.f32 %v2785_v29, %v8304_v31  ;;  %v7389_v24 = vadd.f32 %v8308_v44, %v8307_v15  ;;  %v3230_v28 = vmax.f32 %v3094_v57, 0.0  ;;  %3890 = vmatprep.mubr.bf16.mxu1 %v3341_v2  ;;  %v8309_v48 = vld [vmem:[#allocation124_spill] sm:$0xff]  ;;  %v8314_v15 = vld [vmem:[#allocation77_spill] sm:$0xff] }
 0x267   : > { %v3232_v53 = vmax.f32 %v3096_v32, 0.0  ;;  %v2789_v23 = vpop.f32.mrf.mxu1  ;;  %v3234_v63 = vmax.f32 %v3098_v10, 0.0  ;;  %v3099_v27 = vadd.f32 %v6905_v60, %v2941_v5  ;;  %3722 = vmatmul.mubr.bf16.gmra.mxu0 %v3338_v50  ;;  %v3231_v1 = vmax.f32 %v3095_v20, 0.0  ;;  %v2588_v56 = vpop.f32.mrf.mxu0  ;;  %v8312_v50 = vld [vmem:[#allocation15_spill] sm:$0xff]  ;;  %v8313_v5 = vld [vmem:[#allocation126_spill] sm:$0xff]  ;;  %v8315_v44 = vld [vmem:[#allocation188_spill] sm:$0xff] }
 0x268   : > { %v3236_v26 = vmax.f32 %v3100_v61, 0.0  ;;  %v3101_v7 = vadd.f32 %v6907_v9, %v2943_v34  ;;  %3891 = vmatmul.mubr.bf16.gmra.mxu1 %v3340_v37  ;;  %v3233_v12 = vmax.f32 %v3097_v22, 0.0  ;;  %v2944_v0 = vadd.f32 %v2586_v38, %v8309_v48  ;;  %v8311_v61 = vld [vmem:[#allocation125_spill] sm:$0xff] }
 0x269   : > { %v2946_v18 = vadd.f32 %v2789_v23, %v8310_v35  ;;  %v2791_v57 = vpop.f32.mrf.mxu1  ;;  %v3342_v32 = vpack.c.bf16 %v3234_v63, %v3230_v28  ;;  %v3235_v17 = vmax.f32 %v3099_v27, 0.0  ;;  %v2945_v59 = vadd.f32 %v2588_v56, %v8311_v61  ;;  %v2590_v20 = vpop.f32.mrf.mxu0  ;;  %v8317_v38 = vld [vmem:[#allocation189_spill] sm:$0xff]  ;;  %v8321_v56 = vld [vmem:[#allocation190_spill] sm:$0xff] }
 0x26a   : > { %v3344_v2 = vpack.c.bf16 %v3236_v26, %v3232_v53  ;;  %v3237_v46 = vmax.f32 %v3101_v7, 0.0  ;;  %v3102_v29 = vadd.f32 %v6889_v33, %v2944_v0  ;;  %v2947_v37 = vadd.f32 %v2791_v57, %v8312_v50  ;;  %v8316_v53 = vld [vmem:[#allocation78_spill] sm:$0xff]  ;;  %v8319_v0 = vld [vmem:[#allocation127_spill] sm:$0xff] }
 0x26b   : > { %v3104_v10 = vadd.f32 %v6891_v6, %v2946_v18  ;;  %v2793_v22 = vpop.f32.mrf.mxu1  ;;  %v2948_v31 = vadd.f32 %v2590_v20, %v8313_v5  ;;  %v3343_v47 = vpack.c.bf16 %v3235_v17, %v3231_v1  ;;  %v7403_v28 = vadd.f32 %v8315_v44, %v8314_v15  ;;  %v2592_v27 = vpop.f32.mrf.mxu0  ;;  %v8318_v1 = vld [vmem:[#allocation16_spill] sm:$0xff]  ;;  %v8320_v18 = vld [vmem:[#allocation79_spill] sm:$0xff]  ;;  %v8324_v44 = vld [vmem:[#allocation17_spill] sm:$0xff] }
 0x26c   : > { %v2950_v34 = vadd.f32 %v2793_v22, %v7127_v39  ;;  %v3345_v43 = vpack.c.bf16 %v3237_v46, %v3233_v12  ;;  %v7407_v23 = vadd.f32 %v8317_v38, %v8316_v53  ;;  %v3103_v63 = vadd.f32 %v6905_v60, %v2945_v59  ;;  %v8322_v17 = vld [vmem:[#allocation80_spill] sm:$0xff]  ;;  %v8323_v46 = vld [vmem:[#allocation191_spill] sm:$0xff] }
 0x26d   : > { %v3105_v26 = vadd.f32 %v6907_v9, %v2947_v37  ;;  %v2795_v7 = vpop.f32.mrf.mxu1  ;;  %v3106_v48 = vadd.f32 %v6889_v33, %v2948_v31  ;;  %v2949_v12 = vadd.f32 %v2592_v27, %v8318_v1  ;;  %3729 = vmatprep.mubr.bf16.mxu0 %v3343_v47  ;;  %v7417_v57 = vadd.f32 %v8321_v56, %v8320_v18  ;;  %v2596_v37 = vpop.f32.mrf.mxu0  ;;  %v8325_v38 = vld [vmem:[#allocation128_spill] sm:$0xff]  ;;  %v8328_v18 = vld [vmem:[#allocation19_spill] sm:$0xff] }
 0x26e   : > { %v3108_v39 = vadd.f32 %v6891_v6, %v2950_v34  ;;  %v2951_v35 = vadd.f32 %v2795_v7, %v8319_v0  ;;  %v7421_v61 = vadd.f32 %v8323_v46, %v8322_v17  ;;  %v3238_v59 = vmax.f32 %v3102_v29, 0.0  ;;  %3898 = vmatprep.mubr.bf16.mxu1 %v3345_v43  ;;  %v8329_v17 = vld [vmem:[#allocation130_spill] sm:$0xff] }
 0x26f   : > { %v3240_v50 = vmax.f32 %v3104_v10, 0.0  ;;  %v2799_v20 = vpop.f32.mrf.mxu1  ;;  %v3242_v22 = vmax.f32 %v3106_v48, 0.0  ;;  %v3107_v31 = vadd.f32 %v6905_v60, %v2949_v12  ;;  %3730 = vmatmul.mubr.bf16.gmra.mxu0 %v3342_v32  ;;  %v3239_v47 = vmax.f32 %v3103_v63, 0.0  ;;  %v2598_v7 = vpop.f32.mrf.mxu0  ;;  %v8326_v12 = vld [vmem:[#allocation18_spill] sm:$0xff]  ;;  %v8327_v32 = vld [vmem:[#allocation129_spill] sm:$0xff] }
 0x270   : > { %v3244_v5 = vmax.f32 %v3108_v39, 0.0  ;;  %v3109_v34 = vadd.f32 %v6907_v9, %v2951_v35  ;;  %3899 = vmatmul.mubr.bf16.gmra.mxu1 %v3344_v2  ;;  %v3241_v15 = vmax.f32 %v3105_v26, 0.0  ;;  %v2952_v53 = vadd.f32 %v2596_v37, %v8324_v44 }
 0x271   : > { %v2954_v27 = vadd.f32 %v2799_v20, %v8325_v38  ;;  %v2801_v29 = vpop.f32.mrf.mxu1  ;;  %v3346_v10 = vpack.c.bf16 %v3242_v22, %v3238_v59  ;;  %v3243_v1 = vmax.f32 %v3107_v31, 0.0  ;;  %v2953_v35 = vadd.f32 %v2598_v7, %v8326_v12  ;;  %v2600_v63 = vpop.f32.mrf.mxu0  ;;  %v8330_v59 = vld [vmem:[#allocation81_spill] sm:$0xff]  ;;  %v8336_v12 = vld [vmem:[#allocation83_spill] sm:$0xff] }
 0x272   : > { %v3348_v43 = vpack.c.bf16 %v3244_v5, %v3240_v50  ;;  %v3245_v0 = vmax.f32 %v3109_v34, 0.0  ;;  %v3110_v48 = vadd.f32 %v6889_v33, %v2952_v53  ;;  %v2955_v2 = vadd.f32 %v2801_v29, %v8327_v32  ;;  %v8331_v50 = vld [vmem:[#allocation192_spill] sm:$0xff]  ;;  %v8332_v5 = vld [vmem:[#allocation82_spill] sm:$0xff]  ;;  %v8333_v31 = vld [vmem:[#allocation193_spill] sm:$0xff] }
 0x273   : > { %v3112_v39 = vadd.f32 %v6891_v6, %v2954_v27  ;;  %v2803_v26 = vpop.f32.mrf.mxu1  ;;  %v2956_v56 = vadd.f32 %v2600_v63, %v8328_v18  ;;  %v3347_v37 = vpack.c.bf16 %v3243_v1, %v3239_v47  ;;  %v7435_v22 = vadd.f32 %v8331_v50, %v8330_v59  ;;  %v2602_v38 = vpop.f32.mrf.mxu0  ;;  %v8334_v47 = vld [vmem:[#allocation20_spill] sm:$0xff]  ;;  %v8335_v1 = vld [vmem:[#allocation131_spill] sm:$0xff]  ;;  %v8337_v32 = vld [vmem:[#allocation194_spill] sm:$0xff] }
 0x274   : > { %v2958_v46 = vadd.f32 %v2803_v26, %v8329_v17  ;;  %v3349_v20 = vpack.c.bf16 %v3245_v0, %v3241_v15  ;;  %v7439_v34 = vadd.f32 %v8333_v31, %v8332_v5  ;;  %v3111_v44 = vadd.f32 %v6905_v60, %v2953_v35  ;;  %v8338_v26 = vld [vmem:[#allocation84_spill] sm:$0xff]  ;;  %v8339_v18 = vld [vmem:[#allocation195_spill] sm:$0xff] }
 0x275   : > { %v3113_v53 = vadd.f32 %v6907_v9, %v2955_v2  ;;  %v2805_v27 = vpop.f32.mrf.mxu1  ;;  %v3114_v7 = vadd.f32 %v6889_v33, %v2956_v56  ;;  %v2957_v15 = vadd.f32 %v2602_v38, %v8334_v47  ;;  %3737 = vmatprep.mubr.bf16.mxu0 %v3347_v37  ;;  %v7449_v63 = vadd.f32 %v8337_v32, %v8336_v12  ;;  %v2606_v59 = vpop.f32.mrf.mxu0 }
 0x276   : > { %v3116_v29 = vadd.f32 %v6891_v6, %v2958_v46  ;;  %v2959_v0 = vadd.f32 %v2805_v27, %v8335_v1  ;;  %v7453_v35 = vadd.f32 %v8339_v18, %v8338_v26  ;;  %v3246_v2 = vmax.f32 %v3110_v48, 0.0  ;;  %3906 = vmatprep.mubr.bf16.mxu1 %v3349_v20  ;;  %v8340_v27 = vld [vmem:[#allocation21_spill] sm:$0xff]  ;;  %v8341_v1 = vld [vmem:[#allocation132_spill] sm:$0xff] }
 0x277   : > { %v3248_v17 = vmax.f32 %v3112_v39, 0.0  ;;  %v2809_v56 = vpop.f32.mrf.mxu1  ;;  %v3250_v50 = vmax.f32 %v3114_v7, 0.0  ;;  %v3115_v5 = vadd.f32 %v6905_v60, %v2957_v15  ;;  %3738 = vmatmul.mubr.bf16.gmra.mxu0 %v3346_v10  ;;  %v3247_v37 = vmax.f32 %v3111_v44, 0.0  ;;  %v2608_v32 = vpop.f32.mrf.mxu0  ;;  %v8342_v15 = vld [vmem:[#allocation22_spill] sm:$0xff]  ;;  %v8343_v10 = vld [vmem:[#allocation133_spill] sm:$0xff] }
 0x278   : > { %v3252_v46 = vmax.f32 %v3116_v29, 0.0  ;;  %v3117_v31 = vadd.f32 %v6907_v9, %v2959_v0  ;;  %3907 = vmatmul.mubr.bf16.gmra.mxu1 %v3348_v43  ;;  %v3249_v38 = vmax.f32 %v3113_v53, 0.0  ;;  %v2960_v47 = vadd.f32 %v2606_v59, %v8340_v27 }
 0x279   : > { %v2962_v12 = vadd.f32 %v2809_v56, %v8341_v1  ;;  %v2811_v48 = vpop.f32.mrf.mxu1  ;;  %v3350_v39 = vpack.c.bf16 %v3250_v50, %v3246_v2  ;;  %v3251_v26 = vmax.f32 %v3115_v5, 0.0  ;;  %v2961_v0 = vadd.f32 %v2608_v32, %v8342_v15  ;;  %v2610_v44 = vpop.f32.mrf.mxu0  ;;  %v8344_v2 = vld [vmem:[#allocation85_spill] sm:$0xff] }
 0x27a   : > { %v3352_v20 = vpack.c.bf16 %v3252_v46, %v3248_v17  ;;  %v3253_v18 = vmax.f32 %v3117_v31, 0.0  ;;  %v3118_v7 = vadd.f32 %v6889_v33, %v2960_v47  ;;  %v2963_v43 = vadd.f32 %v2811_v48, %v8343_v10  ;;  %v8345_v17 = vld [vmem:[#allocation196_spill] sm:$0xff]  ;;  %v8346_v46 = vld [vmem:[#allocation86_spill] sm:$0xff]  ;;  %v8347_v5 = vld [vmem:[#allocation197_spill] sm:$0xff] }
 0x27b   : > { %v3120_v29 = vadd.f32 %v6891_v6, %v2962_v12  ;;  %v2813_v53 = vpop.f32.mrf.mxu1  ;;  %v2964_v59 = vadd.f32 %v2610_v44, %v7209_v51  ;;  %v3351_v27 = vpack.c.bf16 %v3251_v26, %v3247_v37  ;;  %v7467_v50 = vadd.f32 %v8345_v17, %v8344_v2  ;;  %v2612_v32 = vpop.f32.mrf.mxu0  ;;  %v8348_v26 = vld [vmem:[#allocation87_spill] sm:$0xff]  ;;  %v8350_v10 = vld [vmem:[#allocation88_spill] sm:$0xff] }
 0x27c   : > { %v2966_v56 = vadd.f32 %v2813_v53, %v7213_v54  ;;  %v3353_v1 = vpack.c.bf16 %v3253_v18, %v3249_v38  ;;  %v7471_v31 = vadd.f32 %v8347_v5, %v8346_v46  ;;  %v3119_v47 = vadd.f32 %v6905_v60, %v2961_v0  ;;  %v8349_v18 = vld [vmem:[#allocation198_spill] sm:$0xff]  ;;  %v8351_v44 = vld [vmem:[#allocation199_spill] sm:$0xff] }
 0x27d   : > { %v3121_v12 = vadd.f32 %v6907_v9, %v2963_v43  ;;  %v2815_v48 = vpop.f32.mrf.mxu1  ;;  %v3122_v51 = vadd.f32 %v6889_v33, %v2964_v59  ;;  %v2965_v37 = vadd.f32 %v2612_v32, %v7225_v52  ;;  %3745 = vmatprep.mubr.bf16.mxu0 %v3351_v27  ;;  %v7481_v15 = vadd.f32 %v8349_v18, %v8348_v26  ;;  %v2616_v2 = vpop.f32.mrf.mxu0 }
 0x27e   : > { %v3124_v54 = vadd.f32 %v6891_v6, %v2966_v56  ;;  %v2967_v38 = vadd.f32 %v2815_v48, %v7229_v3  ;;  %v7485_v0 = vadd.f32 %v8351_v44, %v8350_v10  ;;  %v3254_v43 = vmax.f32 %v3118_v7, 0.0  ;;  %3914 = vmatprep.mubr.bf16.mxu1 %v3353_v1  ;;  %v8352_v10 = vld [vmem:[#allocation89_spill] sm:$0xff]  ;;  %v8353_v44 = vld [vmem:[#allocation200_spill] sm:$0xff] }
 0x27f   : > { %v3256_v53 = vmax.f32 %v3120_v29, 0.0  ;;  %v2819_v59 = vpop.f32.mrf.mxu1  ;;  %v3258_v17 = vmax.f32 %v3122_v51, 0.0  ;;  %v3123_v52 = vadd.f32 %v6905_v60, %v2965_v37  ;;  %3746 = vmatmul.mubr.bf16.gmra.mxu0 %v3350_v39  ;;  %v3255_v27 = vmax.f32 %v3119_v47, 0.0  ;;  %v2618_v48 = vpop.f32.mrf.mxu0 }
 0x280   : > { %v3260_v56 = vmax.f32 %v3124_v54, 0.0  ;;  %v3125_v3 = vadd.f32 %v6907_v9, %v2967_v38  ;;  %3915 = vmatmul.mubr.bf16.gmra.mxu1 %v3352_v20  ;;  %v3257_v46 = vmax.f32 %v3121_v12, 0.0  ;;  %v2968_v5 = vadd.f32 %v2616_v2, %v7243_v41  ;;  %v8355_v2 = vld [vmem:[#allocation201_spill] sm:$0xff] }
 0x281   : > { %v2970_v32 = vadd.f32 %v2819_v59, %v7247_v19  ;;  %v2821_v7 = vpop.f32.mrf.mxu1  ;;  %v3354_v29 = vpack.c.bf16 %v3258_v17, %v3254_v43  ;;  %v3259_v26 = vmax.f32 %v3123_v52, 0.0  ;;  %v2969_v37 = vadd.f32 %v2618_v48, %v7257_v45  ;;  %v2620_v20 = vpop.f32.mrf.mxu0  ;;  %v8359_v48 = vld [vmem:[#allocation203_spill] sm:$0xff] }
 0x282   : > { %v3356_v1 = vpack.c.bf16 %v3260_v56, %v3256_v53  ;;  %v3261_v18 = vmax.f32 %v3125_v3, 0.0  ;;  %v3126_v51 = vadd.f32 %v6889_v33, %v2968_v5  ;;  %v2971_v39 = vadd.f32 %v2821_v7, %v7261_v42  ;;  %v8354_v53 = vld [vmem:[#allocation90_spill] sm:$0xff] }
 0x283   : > { %v3128_v54 = vadd.f32 %v6891_v6, %v2970_v32  ;;  %v2823_v47 = vpop.f32.mrf.mxu1  ;;  %v2972_v41 = vadd.f32 %v2620_v20, %v7275_v13  ;;  %v3355_v12 = vpack.c.bf16 %v3259_v26, %v3255_v27  ;;  %v7499_v43 = vadd.f32 %v8353_v44, %v8352_v10  ;;  %v2622_v17 = vpop.f32.mrf.mxu0  ;;  %v8356_v27 = vld [vmem:[#allocation91_spill] sm:$0xff]  ;;  %v8358_v32 = vld [vmem:[#allocation92_spill] sm:$0xff] }
 0x284   : > { %v2974_v19 = vadd.f32 %v2823_v47, %v7279_v49  ;;  %v3357_v38 = vpack.c.bf16 %v3261_v18, %v3257_v46  ;;  %v7503_v59 = vadd.f32 %v8355_v2, %v8354_v53  ;;  %v3127_v45 = vadd.f32 %v6905_v60, %v2969_v37  ;;  %v8357_v46 = vld [vmem:[#allocation202_spill] sm:$0xff] }
 0x285   : > { %v3129_v42 = vadd.f32 %v6907_v9, %v2971_v39  ;;  %v2825_v56 = vpop.f32.mrf.mxu1  ;;  %v3130_v13 = vadd.f32 %v6889_v33, %v2972_v41  ;;  %v2973_v52 = vadd.f32 %v2622_v17, %v7289_v21  ;;  %3753 = vmatprep.mubr.bf16.mxu0 %v3355_v12  ;;  %v7513_v5 = vadd.f32 %v8357_v46, %v8356_v27  ;;  %v2626_v37 = vpop.f32.mrf.mxu0  ;;  %v8362_v46 = vld [vmem:[#allocation94_spill] sm:$0xff] }
 0x286   : > { %v3132_v49 = vadd.f32 %v6891_v6, %v2974_v19  ;;  %v2975_v3 = vadd.f32 %v2825_v56, %v7293_v14  ;;  %v7517_v7 = vadd.f32 %v8359_v48, %v8358_v32  ;;  %v3262_v26 = vmax.f32 %v3126_v51, 0.0  ;;  %3922 = vmatprep.mubr.bf16.mxu1 %v3357_v38  ;;  %v8363_v32 = vld [vmem:[#allocation205_spill] sm:$0xff] }
 0x287   : > { %v3264_v18 = vmax.f32 %v3128_v54, 0.0  ;;  %v2829_v39 = vpop.f32.mrf.mxu1  ;;  %v3266_v20 = vmax.f32 %v3130_v13, 0.0  ;;  %v3131_v21 = vadd.f32 %v6905_v60, %v2973_v52  ;;  %3754 = vmatmul.mubr.bf16.gmra.mxu0 %v3354_v29  ;;  %v3263_v41 = vmax.f32 %v3127_v45, 0.0  ;;  %v2628_v44 = vpop.f32.mrf.mxu0  ;;  %v8360_v52 = vld [vmem:[#allocation93_spill] sm:$0xff] }
 0x288   : > { %v3268_v47 = vmax.f32 %v3132_v49, 0.0  ;;  %v3133_v14 = vadd.f32 %v6907_v9, %v2975_v3  ;;  %3923 = vmatmul.mubr.bf16.gmra.mxu1 %v3356_v1  ;;  %v3265_v19 = vmax.f32 %v3129_v42, 0.0  ;;  %v2976_v12 = vadd.f32 %v2626_v37, %v7307_v8  ;;  %v8361_v3 = vld [vmem:[#allocation204_spill] sm:$0xff] }
 0x289   : > { %v2978_v10 = vadd.f32 %v2829_v39, %v7311_v4  ;;  %v2831_v51 = vpop.f32.mrf.mxu1  ;;  %v3358_v54 = vpack.c.bf16 %v3266_v20, %v3262_v26  ;;  %v3267_v53 = vmax.f32 %v3131_v21, 0.0  ;;  %v2977_v13 = vadd.f32 %v2628_v44, %v7321_v16  ;;  %v2630_v1 = vpop.f32.mrf.mxu0  ;;  %v8364_v20 = vld [vmem:[#allocation95_spill] sm:$0xff] }
 0x28a   : > { %v3360_v38 = vpack.c.bf16 %v3268_v47, %v3264_v18  ;;  %v3269_v2 = vmax.f32 %v3133_v14, 0.0  ;;  %v3134_v17 = vadd.f32 %v6889_v33, %v2976_v12  ;;  %v2979_v29 = vadd.f32 %v2831_v51, %v7325_v62  ;;  %v8365_v47 = vld [vmem:[#allocation206_spill] sm:$0xff]  ;;  %v8366_v14 = vld [vmem:[#allocation96_spill] sm:$0xff] }
 0x28b   : > { %v3136_v56 = vadd.f32 %v6891_v6, %v2978_v10  ;;  %v2833_v45 = vpop.f32.mrf.mxu1  ;;  %v2980_v8 = vadd.f32 %v2630_v1, %v7339_v25  ;;  %v3359_v42 = vpack.c.bf16 %v3267_v53, %v3263_v41  ;;  %v7531_v27 = vadd.f32 %v8361_v3, %v8360_v52  ;;  %v2632_v26 = vpop.f32.mrf.mxu0  ;;  %v8367_v41 = vld [vmem:[#allocation207_spill] sm:$0xff] }
 0x28c   : > { %v2982_v4 = vadd.f32 %v2833_v45, %v7343_v55  ;;  %v3361_v49 = vpack.c.bf16 %v3269_v2, %v3265_v19  ;;  %v7535_v48 = vadd.f32 %v8363_v32, %v8362_v46  ;;  %v3135_v16 = vadd.f32 %v6905_v60, %v2977_v13 }
 0x28d   : > { %v3137_v62 = vadd.f32 %v6907_v9, %v2979_v29  ;;  %v2835_v18 = vpop.f32.mrf.mxu1  ;;  %v3138_v25 = vadd.f32 %v6889_v33, %v2980_v8  ;;  %v2981_v37 = vadd.f32 %v2632_v26, %v7353_v40  ;;  %3761 = vmatprep.mubr.bf16.mxu0 %v3359_v42  ;;  %v7545_v21 = vadd.f32 %v8365_v47, %v8364_v20  ;;  %v2636_v44 = vpop.f32.mrf.mxu0  ;;  %v8368_v26 = vld [vmem:[#allocation97_spill] sm:$0xff] }
 0x28e   : > { %v3140_v55 = vadd.f32 %v6891_v6, %v2982_v4  ;;  %v2983_v39 = vadd.f32 %v2835_v18, %v7357_v58  ;;  %v7549_v19 = vadd.f32 %v8367_v41, %v8366_v14  ;;  %v3270_v12 = vmax.f32 %v3134_v17, 0.0  ;;  %3930 = vmatprep.mubr.bf16.mxu1 %v3361_v49  ;;  %v8369_v18 = vld [vmem:[#allocation208_spill] sm:$0xff] }
 0x28f   : > { %v3272_v10 = vmax.f32 %v3136_v56, 0.0  ;;  %v2839_v51 = vpop.f32.mrf.mxu1  ;;  %v3274_v53 = vmax.f32 %v3138_v25, 0.0  ;;  %v3139_v40 = vadd.f32 %v6905_v60, %v2981_v37  ;;  %3762 = vmatmul.mubr.bf16.gmra.mxu0 %v3358_v54  ;;  %v3271_v13 = vmax.f32 %v3135_v16, 0.0  ;;  %v2638_v8 = vpop.f32.mrf.mxu0  ;;  %v8371_v37 = vld [vmem:[#allocation209_spill] sm:$0xff] }
 0x290   : > { %v3276_v2 = vmax.f32 %v3140_v55, 0.0  ;;  %v3141_v58 = vadd.f32 %v6907_v9, %v2983_v39  ;;  %3931 = vmatmul.mubr.bf16.gmra.mxu1 %v3360_v38  ;;  %v3273_v29 = vmax.f32 %v3137_v62, 0.0  ;;  %v2984_v1 = vadd.f32 %v2636_v44, %v7371_v11  ;;  %v8370_v55 = vld [vmem:[#allocation98_spill] sm:$0xff] }
 0x291   : > { %v2986_v45 = vadd.f32 %v2839_v51, %v7375_v30  ;;  %v2841_v17 = vpop.f32.mrf.mxu1  ;;  %v3362_v56 = vpack.c.bf16 %v3274_v53, %v3270_v12  ;;  %v3275_v42 = vmax.f32 %v3139_v40, 0.0  ;;  %v2985_v46 = vadd.f32 %v2638_v8, %v7385_v36  ;;  %v2640_v38 = vpop.f32.mrf.mxu0  ;;  %v8372_v12 = vld [vmem:[#allocation99_spill] sm:$0xff]  ;;  %v8374_v51 = vld [vmem:[#allocation100_spill] sm:$0xff] }
 0x292   : > { %v3364_v4 = vpack.c.bf16 %v3276_v2, %v3272_v10  ;;  %v3277_v49 = vmax.f32 %v3141_v58, 0.0  ;;  %v3142_v52 = vadd.f32 %v6889_v33, %v2984_v1  ;;  %v2987_v54 = vadd.f32 %v2841_v17, %v7389_v24  ;;  %v8373_v10 = vld [vmem:[#allocation210_spill] sm:$0xff]  ;;  %v8375_v53 = vld [vmem:[#allocation211_spill] sm:$0xff] }
 0x293   : > { %v3144_v3 = vadd.f32 %v6891_v6, %v2986_v45  ;;  %v2843_v32 = vpop.f32.mrf.mxu1  ;;  %v2988_v11 = vadd.f32 %v2640_v38, %v7403_v28  ;;  %v3363_v16 = vpack.c.bf16 %v3275_v42, %v3271_v13  ;;  %v7563_v25 = vadd.f32 %v8369_v18, %v8368_v26  ;;  %v2642_v20 = vpop.f32.mrf.mxu0 }
 0x294   : > { %v2990_v30 = vadd.f32 %v2843_v32, %v7407_v23  ;;  %v3365_v62 = vpack.c.bf16 %v3277_v49, %v3273_v29  ;;  %v7567_v39 = vadd.f32 %v8371_v37, %v8370_v55  ;;  %v3143_v36 = vadd.f32 %v6905_v60, %v2985_v46  ;;  %v8376_v55 = vld [vmem:[#allocation101_spill] sm:$0xff]  ;;  %v8377_v37 = vld [vmem:[#allocation212_spill] sm:$0xff] }
 0x295   : > { %v3145_v24 = vadd.f32 %v6907_v9, %v2987_v54  ;;  %v2845_v47 = vpop.f32.mrf.mxu1  ;;  %v3146_v28 = vadd.f32 %v6889_v33, %v2988_v11  ;;  %v2989_v14 = vadd.f32 %v2642_v20, %v7417_v57  ;;  %3769 = vmatprep.mubr.bf16.mxu0 %v3363_v16  ;;  %v7577_v44 = vadd.f32 %v8373_v10, %v8372_v12  ;;  %v2646_v13 = vpop.f32.mrf.mxu0  ;;  %v8379_v20 = vld [vmem:[#allocation213_spill] sm:$0xff]  ;;  %v8380_v12 = vld [vmem:[#allocation103_spill] sm:$0xff]  ;;  %v8381_v10 = vld [vmem:[#allocation214_spill] sm:$0xff] }
 0x296   : > { %v3148_v23 = vadd.f32 %v6891_v6, %v2990_v30  ;;  %v2991_v41 = vadd.f32 %v2845_v47, %v7421_v61  ;;  %v7581_v2 = vadd.f32 %v8375_v53, %v8374_v51  ;;  %v3278_v40 = vmax.f32 %v3142_v52, 0.0  ;;  %3938 = vmatprep.mubr.bf16.mxu1 %v3365_v62  ;;  %v8382_v53 = vld [vmem:[#allocation104_spill] sm:$0xff] }
 0x297   : > { %v3280_v58 = vmax.f32 %v3144_v3, 0.0  ;;  %v2849_v29 = vpop.f32.mrf.mxu1  ;;  %v3282_v1 = vmax.f32 %v3146_v28, 0.0  ;;  %v3147_v57 = vadd.f32 %v6905_v60, %v2989_v14  ;;  %3770 = vmatmul.mubr.bf16.gmra.mxu0 %v3362_v56  ;;  %v3279_v8 = vmax.f32 %v3143_v36, 0.0  ;;  %v2648_v46 = vpop.f32.mrf.mxu0 }
 0x298   : > { %v3284_v45 = vmax.f32 %v3148_v23, 0.0  ;;  %v3149_v61 = vadd.f32 %v6907_v9, %v2991_v41  ;;  %3939 = vmatmul.mubr.bf16.gmra.mxu1 %v3364_v4  ;;  %v3281_v17 = vmax.f32 %v3145_v24, 0.0  ;;  %v2992_v42 = vadd.f32 %v2646_v13, %v7435_v22  ;;  %v8378_v24 = vld [vmem:[#allocation102_spill] sm:$0xff] }
 0x299   : > { %v2994_v49 = vadd.f32 %v2849_v29, %v7439_v34  ;;  %v2851_v52 = vpop.f32.mrf.mxu1  ;;  %v3366_v3 = vpack.c.bf16 %v3282_v1, %v3278_v40  ;;  %v3283_v38 = vmax.f32 %v3147_v57, 0.0  ;;  %v2993_v16 = vadd.f32 %v2648_v46, %v7449_v63  ;;  %v2650_v4 = vpop.f32.mrf.mxu0  ;;  %v8383_v40 = vld [vmem:[#allocation215_spill] sm:$0xff] }
 0x29a   : > { %v3368_v54 = vpack.c.bf16 %v3284_v45, %v3280_v58  ;;  %v3285_v32 = vmax.f32 %v3149_v61, 0.0  ;;  %v3150_v11 = vadd.f32 %v6889_v33, %v2992_v42  ;;  %v2995_v56 = vadd.f32 %v2851_v52, %v7453_v35 }
 0x29b   : > { %v3152_v30 = vadd.f32 %v6891_v6, %v2994_v49  ;;  %v2853_v62 = vpop.f32.mrf.mxu1  ;;  %v2996_v22 = vadd.f32 %v2650_v4, %v7467_v50  ;;  %v3367_v26 = vpack.c.bf16 %v3283_v38, %v3279_v8  ;;  %v7595_v36 = vadd.f32 %v8377_v37, %v8376_v55  ;;  %v2652_v28 = vpop.f32.mrf.mxu0  ;;  %v8386_v37 = vld [vmem:[#allocation106_spill] sm:$0xff] }
 0x29c   : > { %v2998_v34 = vadd.f32 %v2853_v62, %v7471_v31  ;;  %v3369_v18 = vpack.c.bf16 %v3285_v32, %v3281_v17  ;;  %v7599_v47 = vadd.f32 %v8379_v20, %v8378_v24  ;;  %v3151_v63 = vadd.f32 %v6905_v60, %v2993_v16  ;;  %v8387_v24 = vld [vmem:[#allocation3_spill] sm:$0xff] }
 0x29d   : > { %v3153_v35 = vadd.f32 %v6907_v9, %v2995_v56  ;;  %v2855_v23 = vpop.f32.mrf.mxu1  ;;  %v3154_v50 = vadd.f32 %v6889_v33, %v2996_v22  ;;  %v2997_v14 = vadd.f32 %v2652_v28, %v7481_v15  ;;  %3777 = vmatprep.mubr.bf16.mxu0 %v3367_v26  ;;  %v7609_v51 = vadd.f32 %v8381_v10, %v8380_v12  ;;  %v2656_v1 = vpop.f32.mrf.mxu0  ;;  %v8384_v26 = vld [vmem:[#allocation105_spill] sm:$0xff]  ;;  %v8391_v12 = vld [vmem:[#allocation4_spill] sm:$0xff] }
 0x29e   : > { %v3156_v31 = vadd.f32 %v6891_v6, %v2998_v34  ;;  %v2999_v41 = vadd.f32 %v2855_v23, %v7485_v0  ;;  %v7613_v58 = vadd.f32 %v8383_v40, %v8382_v53  ;;  %v3286_v13 = vmax.f32 %v3150_v11, 0.0  ;;  %3946 = vmatprep.mubr.bf16.mxu1 %v3369_v18  ;;  %v8385_v18 = vld [vmem:[#allocation113_spill] sm:$0xff] }
 0x29f   : > { %v3288_v29 = vmax.f32 %v3152_v30, 0.0  ;;  %v2859_v45 = vpop.f32.mrf.mxu1  ;;  %v3290_v57 = vmax.f32 %v3154_v50, 0.0  ;;  %v3155_v15 = vadd.f32 %v6905_v60, %v2997_v14  ;;  %3778 = vmatmul.mubr.bf16.gmra.mxu0 %v3366_v3  ;;  %v3287_v8 = vmax.f32 %v3151_v63, 0.0  ;;  %v2658_v46 = vpop.f32.mrf.mxu0  ;;  %v8388_v50 = vld [vmem:[#allocation107_spill] sm:$0xff] }
 0x2a0   : > { %v3292_v61 = vmax.f32 %v3156_v31, 0.0  ;;  %v3157_v0 = vadd.f32 %v6907_v9, %v2999_v41  ;;  %3947 = vmatmul.mubr.bf16.gmra.mxu1 %v3368_v54  ;;  %v3289_v17 = vmax.f32 %v3153_v35, 0.0  ;;  %v3000_v42 = vadd.f32 %v2656_v1, %v7499_v43  ;;  %v8389_v31 = vld [vmem:[#allocation114_spill] sm:$0xff]  ;;  %v8390_v41 = vld [vmem:[#allocation108_spill] sm:$0xff] }
 0x2a1   : > { %v3002_v49 = vadd.f32 %v2859_v45, %v7503_v59  ;;  %v2861_v52 = vpop.f32.mrf.mxu1  ;;  %v3370_v38 = vpack.c.bf16 %v3290_v57, %v3286_v13  ;;  %v3291_v11 = vmax.f32 %v3155_v15, 0.0  ;;  %v3001_v4 = vadd.f32 %v2658_v46, %v7513_v5  ;;  %v2660_v54 = vpop.f32.mrf.mxu0 }
 0x2a2   : > { %v3372_v32 = vpack.c.bf16 %v3292_v61, %v3288_v29  ;;  %v3293_v30 = vmax.f32 %v3157_v0, 0.0  ;;  %v3158_v16 = vadd.f32 %v6889_v33, %v3000_v42  ;;  %v3003_v3 = vadd.f32 %v2861_v52, %v7517_v7 }
 0x2a3   : > { %v3160_v56 = vadd.f32 %v6891_v6, %v3002_v49  ;;  %v2863_v62 = vpop.f32.mrf.mxu1  ;;  %v3004_v43 = vadd.f32 %v2660_v54, %v7531_v27  ;;  %v3371_v22 = vpack.c.bf16 %v3291_v11, %v3287_v8  ;;  %v7627_v55 = vadd.f32 %v8385_v18, %v8384_v26  ;;  %v2662_v63 = vpop.f32.mrf.mxu0  ;;  %v8392_v54 = vld [vmem:[#allocation109_spill] sm:$0xff] }
 0x2a4   : > { %v3006_v59 = vadd.f32 %v2863_v62, %v7535_v48  ;;  %v3373_v34 = vpack.c.bf16 %v3293_v30, %v3289_v17  ;;  %v7631_v20 = vadd.f32 %v8387_v24, %v8386_v37  ;;  %v3159_v5 = vadd.f32 %v6905_v60, %v3001_v4  ;;  %v8393_v62 = vld [vmem:[#allocation116_spill] sm:$0xff] }
 0x2a5   : > { %v3161_v7 = vadd.f32 %v6907_v9, %v3003_v3  ;;  %v2865_v35 = vpop.f32.mrf.mxu1  ;;  %v3162_v27 = vadd.f32 %v6889_v33, %v3004_v43  ;;  %v3005_v28 = vadd.f32 %v2662_v63, %v7545_v21  ;;  %3785 = vmatprep.mubr.bf16.mxu0 %v3371_v22  ;;  %v7641_v14 = vadd.f32 %v8389_v31, %v8388_v50  ;;  %v2666_v13 = vpop.f32.mrf.mxu0  ;;  %v8395_v22 = vld [vmem:[#allocation6_spill] sm:$0xff] }
 0x2a6   : > { %v3164_v48 = vadd.f32 %v6891_v6, %v3006_v59  ;;  %v3007_v23 = vadd.f32 %v2865_v35, %v7549_v19  ;;  %v7645_v10 = vadd.f32 %v8391_v12, %v8390_v41  ;;  %v3294_v53 = vmax.f32 %v3158_v16, 0.0  ;;  %3954 = vmatprep.mubr.bf16.mxu1 %v3373_v34  ;;  %v8394_v59 = vld [vmem:[#allocation110_spill] sm:$0xff]  ;;  %v8398_v35 = vld [vmem:[#allocation112_spill] sm:$0xff] }
 0x2a7   : > { %v3296_v40 = vmax.f32 %v3160_v56, 0.0  ;;  %v2869_v29 = vpop.f32.mrf.mxu1  ;;  %v3298_v1 = vmax.f32 %v3162_v27, 0.0  ;;  %v3163_v21 = vadd.f32 %v6905_v60, %v3005_v28  ;;  %3786 = vmatmul.mubr.bf16.gmra.mxu0 %v3370_v38  ;;  %v3295_v57 = vmax.f32 %v3159_v5, 0.0  ;;  %v2668_v8 = vpop.f32.mrf.mxu0  ;;  %v8396_v5 = vld [vmem:[#allocation111_spill] sm:$0xff] }
 0x2a8   : > { %v3300_v45 = vmax.f32 %v3164_v48, 0.0  ;;  %v3165_v19 = vadd.f32 %v6907_v9, %v3007_v23  ;;  %3955 = vmatmul.mubr.bf16.gmra.mxu1 %v3372_v32  ;;  %v3297_v61 = vmax.f32 %v3161_v7, 0.0  ;;  %v3008_v15 = vadd.f32 %v2666_v13, %v7563_v25  ;;  %v8397_v7 = vld [vmem:[#allocation121_spill] sm:$0xff]  ;;  %v8399_v27 = vld [vmem:[#allocation11_spill] sm:$0xff] }
 0x2a9   : > { %v3010_v0 = vadd.f32 %v2869_v29, %v7567_v39  ;;  %v2871_v17 = vpop.f32.mrf.mxu1  ;;  %v3374_v42 = vpack.c.bf16 %v3298_v1, %v3294_v53  ;;  %v3299_v46 = vmax.f32 %v3163_v21, 0.0  ;;  %v3009_v16 = vadd.f32 %v2668_v8, %v7577_v44  ;;  %v2670_v32 = vpop.f32.mrf.mxu0 }
 0x2aa   : > { %v3376_v49 = vpack.c.bf16 %v3300_v45, %v3296_v40  ;;  %v3301_v52 = vmax.f32 %v3165_v19, 0.0  ;;  %v3166_v11 = vadd.f32 %v6889_v33, %v3008_v15  ;;  %v3011_v38 = vadd.f32 %v2871_v17, %v7581_v2 }
 0x2ab   : > { %v3168_v30 = vadd.f32 %v6891_v6, %v3010_v0  ;;  %v2873_v56 = vpop.f32.mrf.mxu1  ;;  %v3012_v25 = vadd.f32 %v2670_v32, %v7595_v36  ;;  %v3375_v4 = vpack.c.bf16 %v3299_v46, %v3295_v57  ;;  %v2032_v43 = vadd.f32 %v8393_v62, %v8392_v54  ;;  %v2672_v18 = vpop.f32.mrf.mxu0 }
 0x2ac   : > { %v3014_v39 = vadd.f32 %v2873_v56, %v7599_v47  ;;  %v3377_v3 = vpack.c.bf16 %v3301_v52, %v3297_v61  ;;  %v2235_v34 = vadd.f32 %v8395_v22, %v8394_v59  ;;  %v3167_v26 = vadd.f32 %v6905_v60, %v3009_v16 }
 0x2ad   : > { %v3169_v44 = vadd.f32 %v6907_v9, %v3011_v38  ;;  %v2875_v2 = vpop.f32.mrf.mxu1  ;;  %v3170_v37 = vadd.f32 %v6889_v33, %v3012_v25  ;;  %v3013_v47 = vadd.f32 %v2672_v18, %v7609_v51  ;;  %3793 = vmatprep.mubr.bf16.mxu0 %v3375_v4  ;;  %v2034_v63 = vadd.f32 %v8397_v7, %v8396_v5  ;;  %v2676_v50 = vpop.f32.mrf.mxu0 }
 0x2ae   : > { %v3172_v36 = vadd.f32 %v6891_v6, %v3014_v39  ;;  %v3015_v24 = vadd.f32 %v2875_v2, %v7613_v58  ;;  %v2237_v48 = vadd.f32 %v8399_v27, %v8398_v35  ;;  %v3302_v28 = vmax.f32 %v3166_v11, 0.0  ;;  %3962 = vmatprep.mubr.bf16.mxu1 %v3377_v3 }
 0x2af   : > { %v3304_v23 = vmax.f32 %v3168_v30, 0.0  ;;  %v2879_v31 = vpop.f32.mrf.mxu1  ;;  %v3306_v41 = vmax.f32 %v3170_v37, 0.0  ;;  %v3171_v53 = vadd.f32 %v6905_v60, %v3013_v47  ;;  %3794 = vmatmul.mubr.bf16.gmra.mxu0 %v3374_v42  ;;  %v3303_v58 = vmax.f32 %v3167_v26, 0.0  ;;  %v2678_v1 = vpop.f32.mrf.mxu0 }
 0x2b0   : > { %v3308_v12 = vmax.f32 %v3172_v36, 0.0  ;;  %v3173_v51 = vadd.f32 %v6907_v9, %v3015_v24  ;;  %3963 = vmatmul.mubr.bf16.gmra.mxu1 %v3376_v49  ;;  %v3305_v40 = vmax.f32 %v3169_v44, 0.0  ;;  %v3016_v13 = vadd.f32 %v2676_v50, %v7627_v55 }
 0x2b1   : > { %v3018_v29 = vadd.f32 %v2879_v31, %v7631_v20  ;;  %v2881_v45 = vpop.f32.mrf.mxu1  ;;  %v3378_v21 = vpack.c.bf16 %v3306_v41, %v3302_v28  ;;  %v3307_v57 = vmax.f32 %v3171_v53, 0.0  ;;  %v3017_v8 = vadd.f32 %v2678_v1, %v7641_v14  ;;  %v2680_v42 = vpop.f32.mrf.mxu0 }
 0x2b2   : > { %v3380_v19 = vpack.c.bf16 %v3308_v12, %v3304_v23  ;;  %v3309_v61 = vmax.f32 %v3173_v51, 0.0  ;;  %v3174_v15 = vadd.f32 %v6889_v33, %v3016_v13  ;;  %v3019_v17 = vadd.f32 %v2881_v45, %v7645_v10 }
 0x2b3   : > { %v3176_v0 = vadd.f32 %v6891_v6, %v3018_v29  ;;  %v2883_v49 = vpop.f32.mrf.mxu1  ;;  %v3020_v46 = vadd.f32 %v2680_v42, %v2032_v43  ;;  %v3379_v52 = vpack.c.bf16 %v3307_v57, %v3303_v58  ;;  %v3175_v11 = vadd.f32 %v6905_v60, %v3017_v8  ;;  %v2682_v16 = vpop.f32.mrf.mxu0 }
 0x2b4   : > { %v3022_v55 = vadd.f32 %v2883_v49, %v2235_v34  ;;  %v3381_v20 = vpack.c.bf16 %v3309_v61, %v3305_v40  ;;  %v3177_v30 = vadd.f32 %v6907_v9, %v3019_v17  ;;  %v3021_v25 = vadd.f32 %v2682_v16, %v2034_v63 }
 0x2b5   : > { %v2885_v38 = vpop.f32.mrf.mxu1  ;;  %v3178_v32 = vadd.f32 %v6889_v33, %v3020_v46  ;;  %3801 = vmatprep.mubr.bf16.mxu0 %v3379_v52  ;;  %v3310_v10 = vmax.f32 %v3174_v15, 0.0  ;;  %v3312_v39 = vmax.f32 %v3176_v0, 0.0  ;;  %v3311_v43 = vmax.f32 %v3175_v11, 0.0 }
 0x2b6   : > { %v3180_v56 = vadd.f32 %v6891_v6, %v3022_v55  ;;  %v3023_v14 = vadd.f32 %v2885_v38, %v2237_v48  ;;  %3970 = vmatprep.mubr.bf16.mxu1 %v3381_v20  ;;  %v3179_v54 = vadd.f32 %v6905_v60, %v3021_v25  ;;  %v3313_v59 = vmax.f32 %v3177_v30, 0.0  ;;  %v7688_v60 = vld [vmem:[%s7886_s8] ss:$0 sm:$0xff] }
 0x2b7   : > { %v3314_v4 = vmax.f32 %v3178_v32, 0.0  ;;  %3802 = vmatmul.mubr.bf16.gmra.mxu0 %v3378_v21 }
 0x2b8   : > { %v3316_v3 = vmax.f32 %v3180_v56, 0.0  ;;  %v3181_v62 = vadd.f32 %v6907_v9, %v3023_v14  ;;  %3971 = vmatmul.mubr.bf16.gmra.mxu1 %v3380_v19  ;;  %v3315_v6 = vmax.f32 %v3179_v54, 0.0 }
 0x2b9   : > { %v3382_v22 = vpack.c.bf16 %v3314_v4, %v3310_v10 }
 0x2ba   : > { %v3384_v33 = vpack.c.bf16 %v3316_v3, %v3312_v39  ;;  %v3317_v34 = vmax.f32 %v3181_v62, 0.0  ;;  %v3383_v26 = vpack.c.bf16 %v3315_v6, %v3311_v43 }
 0x2bc   : > { %v3385_v44 = vpack.c.bf16 %v3317_v34, %v3313_v59  ;;  %3809 = vmatprep.mubr.bf16.mxu0 %v3383_v26 }
 0x2be   : > { %3978 = vmatprep.mubr.bf16.mxu1 %v3385_v44 }
 0x2bf   : > { %3810 = vmatmul.mubr.bf16.gmra.mxu0 %v3382_v22 }
 0x2c0   : > { %3979 = vmatmul.mubr.bf16.gmra.mxu1 %v3384_v33 }
 0x2ff   : > { %v3683_v9 = vpop.f32.mrf.mxu0 }
 0x300   : > { %v3852_v18 = vpop.f32.mrf.mxu1  ;;  %v3684_v2 = vadd.f32 %v7688_v60, %v3683_v9 }
 0x301   : > { %v3685_v37 = vpop.f32.mrf.mxu0 }
 0x302   : > { %v3854_v36 = vpop.f32.mrf.mxu1  ;;  %v3853_v5 = vadd.f32 %v3852_v18, %v3684_v2 }
 0x303   : > { %v3686_v47 = vpop.f32.mrf.mxu0 }
 0x304   : > { %v3855_v24 = vpop.f32.mrf.mxu1  ;;  %v3687_v7 = vadd.f32 %v7688_v60, %v3686_v47  ;;  %v3987_v23 = vmax.f32 %v3853_v5, 0.0 }
 0x305   : > { %v3688_v63 = vpop.f32.mrf.mxu0 }
 0x306   : > { %v3857_v35 = vpop.f32.mrf.mxu1  ;;  %v3856_v27 = vadd.f32 %v3855_v24, %v3687_v7 }
 0x307   : > { %v3691_v48 = vpop.f32.mrf.mxu0 }
 0x308   : > { %v3860_v28 = vpop.f32.mrf.mxu1  ;;  %v3988_v50 = vmax.f32 %v3856_v27, 0.0  ;;  %v3692_v31 = vadd.f32 %v7688_v60, %v3691_v48 }
 0x309   : > { %v3693_v41 = vpop.f32.mrf.mxu0 }
 0x30a   : > { %v3862_v12 = vpop.f32.mrf.mxu1  ;;  %v4853_v53 = vpack.c.bf16 %v3988_v50, %v3987_v23  ;;  %v3861_v40 = vadd.f32 %v3860_v28, %v3692_v31 }
 0x30b   : > { %v3694_v51 = vpop.f32.mrf.mxu0 }
 0x30c   : > { %v3863_v58 = vpop.f32.mrf.mxu1  ;;  %4854 = vst [vmem:[%s7694_s30] sm:$0xff] %v4853_v53   ;;  %v3695_v13 = vadd.f32 %v7688_v60, %v3694_v51  ;;  %v3989_v57 = vmax.f32 %v3861_v40, 0.0 }
 0x30d   : > { %v3696_v29 = vpop.f32.mrf.mxu0 }
 0x30e   : > { %v3865_v1 = vpop.f32.mrf.mxu1  ;;  %v3864_v45 = vadd.f32 %v3863_v58, %v3695_v13 }
 0x30f   : > { %v3699_v21 = vpop.f32.mrf.mxu0 }
 0x310   : > { %v3868_v19 = vpop.f32.mrf.mxu1  ;;  %v3990_v61 = vmax.f32 %v3864_v45, 0.0  ;;  %v3700_v15 = vadd.f32 %v7688_v60, %v3699_v21 }
 0x311   : > { %v3701_v0 = vpop.f32.mrf.mxu0 }
 0x312   : > { %v3870_v8 = vpop.f32.mrf.mxu1  ;;  %v4858_v17 = vpack.c.bf16 %v3990_v61, %v3989_v57  ;;  %v3869_v46 = vadd.f32 %v3868_v19, %v3700_v15 }
 0x313   : > { %v3702_v42 = vpop.f32.mrf.mxu0 }
 0x314   : > { %v3871_v49 = vpop.f32.mrf.mxu1  ;;  %4935 = vst [vmem:[%s7694_s30 + $0x8] sm:$0xff] %v4858_v17   ;;  %v3703_v55 = vadd.f32 %v7688_v60, %v3702_v42  ;;  %v3991_v38 = vmax.f32 %v3869_v46, 0.0 }
 0x315   : > { %v3704_v52 = vpop.f32.mrf.mxu0 }
 0x316   : > { %v3873_v20 = vpop.f32.mrf.mxu1  ;;  %v3872_v11 = vadd.f32 %v3871_v49, %v3703_v55 }
 0x317   : > { %v3707_v30 = vpop.f32.mrf.mxu0 }
 0x318   : > { %v3876_v16 = vpop.f32.mrf.mxu1  ;;  %v3992_v32 = vmax.f32 %v3872_v11, 0.0  ;;  %v3708_v56 = vadd.f32 %v7688_v60, %v3707_v30 }
 0x319   : > { %v3709_v25 = vpop.f32.mrf.mxu0 }
 0x31a   : > { %v3878_v14 = vpop.f32.mrf.mxu1  ;;  %v4863_v10 = vpack.c.bf16 %v3992_v32, %v3991_v38  ;;  %v3877_v3 = vadd.f32 %v3876_v16, %v3708_v56 }
 0x31b   : > { %v3710_v39 = vpop.f32.mrf.mxu0 }
 0x31c   : > { %v3879_v4 = vpop.f32.mrf.mxu1  ;;  %4936 = vst [vmem:[%s7694_s30 + $0x10] sm:$0xff] %v4863_v10   ;;  %v3711_v54 = vadd.f32 %v7688_v60, %v3710_v39  ;;  %v3993_v6 = vmax.f32 %v3877_v3, 0.0 }
 0x31d   : > { %v3712_v62 = vpop.f32.mrf.mxu0 }
 0x31e   : > { %v3881_v43 = vpop.f32.mrf.mxu1  ;;  %v3880_v59 = vadd.f32 %v3879_v4, %v3711_v54 }
 0x31f   : > { %v3715_v22 = vpop.f32.mrf.mxu0 }
 0x320   : > { %v3884_v33 = vpop.f32.mrf.mxu1  ;;  %v3994_v34 = vmax.f32 %v3880_v59, 0.0  ;;  %v3716_v26 = vadd.f32 %v7688_v60, %v3715_v22 }
 0x321   : > { %v3717_v44 = vpop.f32.mrf.mxu0 }
 0x322   : > { %v3886_v9 = vpop.f32.mrf.mxu1  ;;  %v4868_v18 = vpack.c.bf16 %v3994_v34, %v3993_v6  ;;  %v3885_v36 = vadd.f32 %v3884_v33, %v3716_v26 }
 0x323   : > { %v3718_v2 = vpop.f32.mrf.mxu0 }
 0x324   : > { %v3887_v37 = vpop.f32.mrf.mxu1  ;;  %4937 = vst [vmem:[%s7694_s30 + $0x18] sm:$0xff] %v4868_v18   ;;  %v3719_v47 = vadd.f32 %v7688_v60, %v3718_v2  ;;  %v3995_v27 = vmax.f32 %v3885_v36, 0.0 }
 0x325   : > { %v3720_v24 = vpop.f32.mrf.mxu0 }
 0x326   : > { %v3889_v5 = vpop.f32.mrf.mxu1  ;;  %v3888_v7 = vadd.f32 %v3887_v37, %v3719_v47 }
 0x327   : > { %v3723_v63 = vpop.f32.mrf.mxu0 }
 0x328   : > { %v3892_v35 = vpop.f32.mrf.mxu1  ;;  %v3996_v48 = vmax.f32 %v3888_v7, 0.0  ;;  %v3724_v28 = vadd.f32 %v7688_v60, %v3723_v63 }
 0x329   : > { %v3725_v23 = vpop.f32.mrf.mxu0 }
 0x32a   : > { %v3894_v50 = vpop.f32.mrf.mxu1  ;;  %v4873_v31 = vpack.c.bf16 %v3996_v48, %v3995_v27  ;;  %v3893_v53 = vadd.f32 %v3892_v35, %v3724_v28 }
 0x32b   : > { %v3726_v41 = vpop.f32.mrf.mxu0 }
 0x32c   : > { %v3895_v12 = vpop.f32.mrf.mxu1  ;;  %4938 = vst [vmem:[%s7694_s30 + $0x20] sm:$0xff] %v4873_v31   ;;  %v3727_v51 = vadd.f32 %v7688_v60, %v3726_v41  ;;  %v3997_v45 = vmax.f32 %v3893_v53, 0.0 }
 0x32d   : > { %v3728_v58 = vpop.f32.mrf.mxu0 }
 0x32e   : > { %v3897_v40 = vpop.f32.mrf.mxu1  ;;  %v3896_v13 = vadd.f32 %v3895_v12, %v3727_v51 }
 0x32f   : > { %v3731_v29 = vpop.f32.mrf.mxu0 }
 0x330   : > { %v3900_v1 = vpop.f32.mrf.mxu1  ;;  %v3998_v21 = vmax.f32 %v3896_v13, 0.0  ;;  %v3732_v19 = vadd.f32 %v7688_v60, %v3731_v29 }
 0x331   : > { %v3733_v57 = vpop.f32.mrf.mxu0 }
 0x332   : > { %v3902_v61 = vpop.f32.mrf.mxu1  ;;  %v4878_v15 = vpack.c.bf16 %v3998_v21, %v3997_v45  ;;  %v3901_v17 = vadd.f32 %v3900_v1, %v3732_v19 }
 0x333   : > { %v3734_v0 = vpop.f32.mrf.mxu0 }
 0x334   : > { %v3903_v8 = vpop.f32.mrf.mxu1  ;;  %4939 = vst [vmem:[%s7694_s30 + $0x28] sm:$0xff] %v4878_v15   ;;  %v3735_v42 = vadd.f32 %v7688_v60, %v3734_v0  ;;  %v3999_v11 = vmax.f32 %v3901_v17, 0.0 }
 0x335   : > { %v3736_v49 = vpop.f32.mrf.mxu0 }
 0x336   : > { %v3905_v46 = vpop.f32.mrf.mxu1  ;;  %v3904_v55 = vadd.f32 %v3903_v8, %v3735_v42 }
 0x337   : > { %v3739_v52 = vpop.f32.mrf.mxu0 }
 0x338   : > { %v3908_v20 = vpop.f32.mrf.mxu1  ;;  %v4000_v30 = vmax.f32 %v3904_v55, 0.0  ;;  %v3740_v16 = vadd.f32 %v7688_v60, %v3739_v52 }
 0x339   : > { %v3741_v38 = vpop.f32.mrf.mxu0 }
 0x33a   : > { %v3910_v32 = vpop.f32.mrf.mxu1  ;;  %v4883_v56 = vpack.c.bf16 %v4000_v30, %v3999_v11  ;;  %v3909_v10 = vadd.f32 %v3908_v20, %v3740_v16 }
 0x33b   : > { %v3742_v25 = vpop.f32.mrf.mxu0 }
 0x33c   : > { %v3911_v14 = vpop.f32.mrf.mxu1  ;;  %4940 = vst [vmem:[%s7694_s30 + $0x30] sm:$0xff] %v4883_v56   ;;  %v3743_v39 = vadd.f32 %v7688_v60, %v3742_v25  ;;  %v4001_v59 = vmax.f32 %v3909_v10, 0.0 }
 0x33d   : > { %v3744_v4 = vpop.f32.mrf.mxu0 }
 0x33e   : > { %v3913_v3 = vpop.f32.mrf.mxu1  ;;  %v3912_v54 = vadd.f32 %v3911_v14, %v3743_v39 }
 0x33f   : > { %v3747_v62 = vpop.f32.mrf.mxu0 }
 0x340   : > { %v3916_v43 = vpop.f32.mrf.mxu1  ;;  %v4002_v22 = vmax.f32 %v3912_v54, 0.0  ;;  %v3748_v33 = vadd.f32 %v7688_v60, %v3747_v62 }
 0x341   : > { %v3749_v6 = vpop.f32.mrf.mxu0 }
 0x342   : > { %v3918_v34 = vpop.f32.mrf.mxu1  ;;  %v4888_v26 = vpack.c.bf16 %v4002_v22, %v4001_v59  ;;  %v3917_v18 = vadd.f32 %v3916_v43, %v3748_v33 }
 0x343   : > { %v3750_v44 = vpop.f32.mrf.mxu0 }
 0x344   : > { %v3919_v9 = vpop.f32.mrf.mxu1  ;;  %4941 = vst [vmem:[%s7694_s30 + $0x38] sm:$0xff] %v4888_v26   ;;  %v3751_v2 = vadd.f32 %v7688_v60, %v3750_v44  ;;  %v4003_v7 = vmax.f32 %v3917_v18, 0.0 }
 0x345   : > { %v3752_v37 = vpop.f32.mrf.mxu0 }
 0x346   : > { %v3921_v36 = vpop.f32.mrf.mxu1  ;;  %v3920_v47 = vadd.f32 %v3919_v9, %v3751_v2 }
 0x347   : > { %v3755_v24 = vpop.f32.mrf.mxu0 }
 0x348   : > { %v3924_v5 = vpop.f32.mrf.mxu1  ;;  %v4004_v63 = vmax.f32 %v3920_v47, 0.0  ;;  %v3756_v35 = vadd.f32 %v7688_v60, %v3755_v24 }
 0x349   : > { %v3757_v27 = vpop.f32.mrf.mxu0 }
 0x34a   : > { %v3926_v48 = vpop.f32.mrf.mxu1  ;;  %v4893_v28 = vpack.c.bf16 %v4004_v63, %v4003_v7  ;;  %v3925_v31 = vadd.f32 %v3924_v5, %v3756_v35 }
 0x34b   : > { %v3758_v23 = vpop.f32.mrf.mxu0 }
 0x34c   : > { %v3927_v50 = vpop.f32.mrf.mxu1  ;;  %4942 = vst [vmem:[%s7694_s30 + $0x40] sm:$0xff] %v4893_v28   ;;  %v3759_v41 = vadd.f32 %v7688_v60, %v3758_v23  ;;  %v4005_v13 = vmax.f32 %v3925_v31, 0.0 }
 0x34d   : > { %v3760_v12 = vpop.f32.mrf.mxu0 }
 0x34e   : > { %v3929_v53 = vpop.f32.mrf.mxu1  ;;  %v3928_v51 = vadd.f32 %v3927_v50, %v3759_v41 }
 0x34f   : > { %v3763_v58 = vpop.f32.mrf.mxu0 }
 0x350   : > { %v3932_v40 = vpop.f32.mrf.mxu1  ;;  %v4006_v29 = vmax.f32 %v3928_v51, 0.0  ;;  %v3764_v1 = vadd.f32 %v7688_v60, %v3763_v58 }
 0x351   : > { %v3765_v45 = vpop.f32.mrf.mxu0 }
 0x352   : > { %v3934_v21 = vpop.f32.mrf.mxu1  ;;  %v4898_v19 = vpack.c.bf16 %v4006_v29, %v4005_v13  ;;  %v3933_v15 = vadd.f32 %v3932_v40, %v3764_v1 }
 0x353   : > { %v3766_v57 = vpop.f32.mrf.mxu0 }
 0x354   : > { %v3935_v61 = vpop.f32.mrf.mxu1  ;;  %4943 = vst [vmem:[%s7694_s30 + $0x48] sm:$0xff] %v4898_v19   ;;  %v3767_v0 = vadd.f32 %v7688_v60, %v3766_v57  ;;  %v4007_v55 = vmax.f32 %v3933_v15, 0.0 }
 0x355   : > { %v3768_v8 = vpop.f32.mrf.mxu0 }
 0x356   : > { %v3937_v17 = vpop.f32.mrf.mxu1  ;;  %v3936_v42 = vadd.f32 %v3935_v61, %v3767_v0 }
 0x357   : > { %v3771_v49 = vpop.f32.mrf.mxu0 }
 0x358   : > { %v3940_v46 = vpop.f32.mrf.mxu1  ;;  %v4008_v52 = vmax.f32 %v3936_v42, 0.0  ;;  %v3772_v20 = vadd.f32 %v7688_v60, %v3771_v49 }
 0x359   : > { %v3773_v11 = vpop.f32.mrf.mxu0 }
 0x35a   : > { %v3942_v30 = vpop.f32.mrf.mxu1  ;;  %v4903_v16 = vpack.c.bf16 %v4008_v52, %v4007_v55  ;;  %v3941_v56 = vadd.f32 %v3940_v46, %v3772_v20 }
 0x35b   : > { %v3774_v38 = vpop.f32.mrf.mxu0 }
 0x35c   : > { %v3943_v32 = vpop.f32.mrf.mxu1  ;;  %4944 = vst [vmem:[%s7694_s30 + $0x50] sm:$0xff] %v4903_v16   ;;  %v3775_v25 = vadd.f32 %v7688_v60, %v3774_v38  ;;  %v4009_v54 = vmax.f32 %v3941_v56, 0.0 }
 0x35d   : > { %v3776_v14 = vpop.f32.mrf.mxu0 }
 0x35e   : > { %v3945_v10 = vpop.f32.mrf.mxu1  ;;  %v3944_v39 = vadd.f32 %v3943_v32, %v3775_v25 }
 0x35f   : > { %v3779_v4 = vpop.f32.mrf.mxu0 }
 0x360   : > { %v3948_v3 = vpop.f32.mrf.mxu1  ;;  %v4010_v62 = vmax.f32 %v3944_v39, 0.0  ;;  %v3780_v43 = vadd.f32 %v7688_v60, %v3779_v4 }
 0x361   : > { %v3781_v59 = vpop.f32.mrf.mxu0 }
 0x362   : > { %v3950_v22 = vpop.f32.mrf.mxu1  ;;  %v4908_v33 = vpack.c.bf16 %v4010_v62, %v4009_v54  ;;  %v3949_v26 = vadd.f32 %v3948_v3, %v3780_v43 }
 0x363   : > { %v3782_v6 = vpop.f32.mrf.mxu0 }
 0x364   : > { %v3951_v34 = vpop.f32.mrf.mxu1  ;;  %4945 = vst [vmem:[%s7694_s30 + $0x58] sm:$0xff] %v4908_v33   ;;  %v3783_v44 = vadd.f32 %v7688_v60, %v3782_v6  ;;  %v4011_v47 = vmax.f32 %v3949_v26, 0.0 }
 0x365   : > { %v3784_v9 = vpop.f32.mrf.mxu0 }
 0x366   : > { %v3953_v18 = vpop.f32.mrf.mxu1  ;;  %v3952_v2 = vadd.f32 %v3951_v34, %v3783_v44 }
 0x367   : > { %v3787_v37 = vpop.f32.mrf.mxu0 }
 0x368   : > { %v3956_v36 = vpop.f32.mrf.mxu1  ;;  %v4012_v24 = vmax.f32 %v3952_v2, 0.0  ;;  %v3788_v5 = vadd.f32 %v7688_v60, %v3787_v37 }
 0x369   : > { %v3789_v7 = vpop.f32.mrf.mxu0 }
 0x36a   : > { %v3958_v63 = vpop.f32.mrf.mxu1  ;;  %v4913_v35 = vpack.c.bf16 %v4012_v24, %v4011_v47  ;;  %v3957_v28 = vadd.f32 %v3956_v36, %v3788_v5 }
 0x36b   : > { %v3790_v27 = vpop.f32.mrf.mxu0 }
 0x36c   : > { %v3959_v48 = vpop.f32.mrf.mxu1  ;;  %4946 = vst [vmem:[%s7694_s30 + $0x60] sm:$0xff] %v4913_v35   ;;  %v3791_v23 = vadd.f32 %v7688_v60, %v3790_v27  ;;  %v4013_v51 = vmax.f32 %v3957_v28, 0.0 }
 0x36d   : > { %v3792_v50 = vpop.f32.mrf.mxu0 }
 0x36e   : > { %v3961_v31 = vpop.f32.mrf.mxu1  ;;  %v3960_v41 = vadd.f32 %v3959_v48, %v3791_v23 }
 0x36f   : > { %v3795_v12 = vpop.f32.mrf.mxu0 }
 0x370   : > { %v3964_v53 = vpop.f32.mrf.mxu1  ;;  %v4014_v58 = vmax.f32 %v3960_v41, 0.0  ;;  %v3796_v40 = vadd.f32 %v7688_v60, %v3795_v12 }
 0x371   : > { %v3797_v13 = vpop.f32.mrf.mxu0 }
 0x372   : > { %v3966_v29 = vpop.f32.mrf.mxu1  ;;  %v4918_v1 = vpack.c.bf16 %v4014_v58, %v4013_v51  ;;  %v3965_v19 = vadd.f32 %v3964_v53, %v3796_v40 }
 0x373   : > { %v3798_v45 = vpop.f32.mrf.mxu0 }
 0x374   : > { %v3967_v21 = vpop.f32.mrf.mxu1  ;;  %4947 = vst [vmem:[%s7694_s30 + $0x68] sm:$0xff] %v4918_v1   ;;  %v3799_v57 = vadd.f32 %v7688_v60, %v3798_v45  ;;  %v4015_v42 = vmax.f32 %v3965_v19, 0.0 }
 0x375   : > { %v3800_v61 = vpop.f32.mrf.mxu0 }
 0x376   : > { %v3969_v15 = vpop.f32.mrf.mxu1  ;;  %v3968_v0 = vadd.f32 %v3967_v21, %v3799_v57 }
 0x377   : > { %v3803_v8 = vpop.f32.mrf.mxu0 }
 0x378   : > { %v3972_v17 = vpop.f32.mrf.mxu1  ;;  %v4016_v49 = vmax.f32 %v3968_v0, 0.0  ;;  %v3804_v46 = vadd.f32 %v7688_v60, %v3803_v8 }
 0x379   : > { %v3805_v55 = vpop.f32.mrf.mxu0 }
 0x37a   : > { %v3974_v52 = vpop.f32.mrf.mxu1  ;;  %v4923_v20 = vpack.c.bf16 %v4016_v49, %v4015_v42  ;;  %v3973_v16 = vadd.f32 %v3972_v17, %v3804_v46 }
 0x37b   : > { %v3806_v11 = vpop.f32.mrf.mxu0 }
 0x37c   : > { %v3975_v30 = vpop.f32.mrf.mxu1  ;;  %4948 = vst [vmem:[%s7694_s30 + $0x70] sm:$0xff] %v4923_v20   ;;  %v3807_v38 = vadd.f32 %v7688_v60, %v3806_v11  ;;  %v4017_v39 = vmax.f32 %v3973_v16, 0.0 }
 0x37d   : > { %v3808_v32 = vpop.f32.mrf.mxu0 }
 0x37e   : > { %v3977_v56 = vpop.f32.mrf.mxu1  ;;  %v3976_v25 = vadd.f32 %v3975_v30, %v3807_v38 }
 0x37f   : > { %v3811_v14 = vpop.f32.mrf.mxu0 }
 0x380   : > { %v3980_v10 = vpop.f32.mrf.mxu1  ;;  %v4018_v4 = vmax.f32 %v3976_v25, 0.0  ;;  %v3812_v3 = vadd.f32 %v7688_v60, %v3811_v14 }
 0x381   : > { %v3813_v54 = vpop.f32.mrf.mxu0 }
 0x382   : > { %v3982_v62 = vpop.f32.mrf.mxu1  ;;  %v4928_v43 = vpack.c.bf16 %v4018_v4, %v4017_v39  ;;  %v3981_v33 = vadd.f32 %v3980_v10, %v3812_v3 }
 0x383   : > { %v3814_v59 = vpop.f32.mrf.mxu0 }
 0x384   : > { %v3983_v22 = vpop.f32.mrf.mxu1  ;;  %4949 = vst [vmem:[%s7694_s30 + $0x78] sm:$0xff] %v4928_v43   ;;  %v3815_v6 = vadd.f32 %v7688_v60, %v3814_v59  ;;  %v4019_v9 = vmax.f32 %v3981_v33, 0.0 }
 0x385   : > { %v3816_v34 = vpop.f32.mrf.mxu0 }
 0x386   : > { %v3985_v26 = vpop.f32.mrf.mxu1  ;;  %v3984_v44 = vadd.f32 %v3983_v22, %v3815_v6 }
 0x388   : > { %v4020_v18 = vmax.f32 %v3984_v44, 0.0  ;;  %4197 = sbr.rel (!%p5482_p4) target bundleno = 985 (0x3d9), region = 60 }
 0x38a   : > { %v4933_v2 = vpack.c.bf16 %v4020_v18, %v4019_v9 }
 0x38c   : > { %4950 = vst [vmem:[%s7694_s30 + $0x80] sm:$0xff] %v4933_v2  }
 0x38d   : > { %s8407_s29 = smov (!%p4200_p8, %s4199_s29), 34 }
 0x38e   : > { %s4801_s21 = sshll.u32 %s8407_s29, 6 }
 0x38f   : > { %p4804_p9 = scmp.eq.s32.totalorder %s4801_s21, 0 }
 0x390   : > { %5314 = sdivrem.u32 (!%p4804_p9), %s8407_s29, 34 }
 0x391   : > { %4208 = sbr.rel (%p4804_p9) target bundleno = 985 (0x3d9), region = 64 }
 0x399   : > { %s7757_s17 = spop.drf %5314 }
 0x39a   : > { %p4805_p10 = scmp.le.s32.totalorder %s7757_s17, 0 }
 0x39b   : > { %s8400_s12 = smov (!%p4805_p10), %s7751_s20  ;;  %s8401_s14 = smov (!%p4805_p10), %s7694_s30 }
 0x39c   : > { %4509 = sbr.rel (%p4805_p10) target bundleno = 960 (0x3c0), region = 142  ;;  %s7766_s28 = smov (!%p4805_p10), 0  }
 0x39d   : > { %s7768_s23 = smov (!%p4805_p10), 0  }
 0x3a1 LB: >> { %v4226_v60 = vld [vmem:[%s5380_s14] sm:$0xf]  ;;  %v4228_v37 = vld [vmem:[%s5380_s14 + $0x4] sm:$0xf]  ;;  %v4230_v36 = vld [vmem:[%s5380_s14 + $0x8] sm:$0xf]  ;;  %s5388_s23 = sphi %s7768_s23, %s4220_s23   ;;  %s5384_s28 = sphi %s7766_s28, %s8402_s28   ;;  %s5380_s14 = sphi %s8401_s14, %s4299_s14   ;;  %s5376_s12 = sphi %s8400_s12, %s4300_s12  }
 0x3a2   : >> { %4227 = vst [vmem:[%s5376_s12] sm:$0xf] %v4226_v60  ;;  %4229 = vst [vmem:[%s5376_s12 + $0x4] sm:$0xf] %v4228_v37  ;;  %v4232_v47 = vld [vmem:[%s5380_s14 + $0xc] sm:$0xf]  ;;  %s4294_s25 = sadd.s32 1, %s5384_s28 }
 0x3a3   : >> { %4231 = vst [vmem:[%s5376_s12 + $0x8] sm:$0xf] %v4230_v36  ;;  %v4234_v24 = vld [vmem:[%s5380_s14 + $0x10] sm:$0xf]  ;;  %v4236_v5 = vld [vmem:[%s5380_s14 + $0x14] sm:$0xf]  ;;  %p4295_p11 = scmp.ge.s32.totalorder %s4294_s25, %s7757_s17 }
 0x3a4   : >> { %4233 = vst [vmem:[%s5376_s12 + $0xc] sm:$0xf] %v4232_v47  ;;  %4235 = vst [vmem:[%s5376_s12 + $0x10] sm:$0xf] %v4234_v24  ;;  %v4238_v7 = vld [vmem:[%s5380_s14 + $0x18] sm:$0xf] }
 0x3a5   : >> { %4237 = vst [vmem:[%s5376_s12 + $0x14] sm:$0xf] %v4236_v5  ;;  %v4240_v63 = vld [vmem:[%s5380_s14 + $0x1c] sm:$0xf]  ;;  %v4242_v35 = vld [vmem:[%s5380_s14 + $0x20] sm:$0xf] }
 0x3a6   : >> { %4239 = vst [vmem:[%s5376_s12 + $0x18] sm:$0xf] %v4238_v7  ;;  %4241 = vst [vmem:[%s5376_s12 + $0x1c] sm:$0xf] %v4240_v63  ;;  %v4244_v27 = vld [vmem:[%s5380_s14 + $0x24] sm:$0xf] }
 0x3a7   : >> { %4243 = vst [vmem:[%s5376_s12 + $0x20] sm:$0xf] %v4242_v35  ;;  %v4246_v48 = vld [vmem:[%s5380_s14 + $0x28] sm:$0xf]  ;;  %v4248_v28 = vld [vmem:[%s5380_s14 + $0x2c] sm:$0xf] }
 0x3a8   : >> { %4245 = vst [vmem:[%s5376_s12 + $0x24] sm:$0xf] %v4244_v27  ;;  %4247 = vst [vmem:[%s5376_s12 + $0x28] sm:$0xf] %v4246_v48  ;;  %v4250_v23 = vld [vmem:[%s5380_s14 + $0x30] sm:$0xf] }
 0x3a9   : >> { %4249 = vst [vmem:[%s5376_s12 + $0x2c] sm:$0xf] %v4248_v28  ;;  %v4252_v50 = vld [vmem:[%s5380_s14 + $0x34] sm:$0xf]  ;;  %v4254_v31 = vld [vmem:[%s5380_s14 + $0x38] sm:$0xf] }
 0x3aa   : >> { %4251 = vst [vmem:[%s5376_s12 + $0x30] sm:$0xf] %v4250_v23  ;;  %4253 = vst [vmem:[%s5376_s12 + $0x34] sm:$0xf] %v4252_v50  ;;  %v4256_v41 = vld [vmem:[%s5380_s14 + $0x3c] sm:$0xf] }
 0x3ab   : >> { %4255 = vst [vmem:[%s5376_s12 + $0x38] sm:$0xf] %v4254_v31  ;;  %v4258_v12 = vld [vmem:[%s5380_s14 + $0x40] sm:$0xf]  ;;  %v4260_v53 = vld [vmem:[%s5380_s14 + $0x44] sm:$0xf] }
 0x3ac   : >> { %4257 = vst [vmem:[%s5376_s12 + $0x3c] sm:$0xf] %v4256_v41  ;;  %4259 = vst [vmem:[%s5376_s12 + $0x40] sm:$0xf] %v4258_v12  ;;  %v4262_v51 = vld [vmem:[%s5380_s14 + $0x48] sm:$0xf] }
 0x3ad   : >> { %4261 = vst [vmem:[%s5376_s12 + $0x44] sm:$0xf] %v4260_v53  ;;  %v4264_v58 = vld [vmem:[%s5380_s14 + $0x4c] sm:$0xf]  ;;  %v4266_v40 = vld [vmem:[%s5380_s14 + $0x50] sm:$0xf] }
 0x3ae   : >> { %4263 = vst [vmem:[%s5376_s12 + $0x48] sm:$0xf] %v4262_v51  ;;  %4265 = vst [vmem:[%s5376_s12 + $0x4c] sm:$0xf] %v4264_v58  ;;  %v4268_v13 = vld [vmem:[%s5380_s14 + $0x54] sm:$0xf] }
 0x3af   : >> { %4267 = vst [vmem:[%s5376_s12 + $0x50] sm:$0xf] %v4266_v40  ;;  %v4270_v29 = vld [vmem:[%s5380_s14 + $0x58] sm:$0xf]  ;;  %v4272_v1 = vld [vmem:[%s5380_s14 + $0x5c] sm:$0xf] }
 0x3b0   : >> { %4269 = vst [vmem:[%s5376_s12 + $0x54] sm:$0xf] %v4268_v13  ;;  %4271 = vst [vmem:[%s5376_s12 + $0x58] sm:$0xf] %v4270_v29  ;;  %v4274_v45 = vld [vmem:[%s5380_s14 + $0x60] sm:$0xf] }
 0x3b1   : >> { %4273 = vst [vmem:[%s5376_s12 + $0x5c] sm:$0xf] %v4272_v1  ;;  %v4276_v21 = vld [vmem:[%s5380_s14 + $0x64] sm:$0xf]  ;;  %v4278_v19 = vld [vmem:[%s5380_s14 + $0x68] sm:$0xf] }
 0x3b2   : >> { %4275 = vst [vmem:[%s5376_s12 + $0x60] sm:$0xf] %v4274_v45  ;;  %4277 = vst [vmem:[%s5376_s12 + $0x64] sm:$0xf] %v4276_v21  ;;  %v4280_v57 = vld [vmem:[%s5380_s14 + $0x6c] sm:$0xf] }
 0x3b3   : >> { %4279 = vst [vmem:[%s5376_s12 + $0x68] sm:$0xf] %v4278_v19  ;;  %v4282_v61 = vld [vmem:[%s5380_s14 + $0x70] sm:$0xf]  ;;  %v4284_v15 = vld [vmem:[%s5380_s14 + $0x74] sm:$0xf] }
 0x3b4   : >> { %4281 = vst [vmem:[%s5376_s12 + $0x6c] sm:$0xf] %v4280_v57  ;;  %4283 = vst [vmem:[%s5376_s12 + $0x70] sm:$0xf] %v4282_v61  ;;  %v4286_v0 = vld [vmem:[%s5380_s14 + $0x78] sm:$0xf] }
 0x3b5   : >> { %4285 = vst [vmem:[%s5376_s12 + $0x74] sm:$0xf] %v4284_v15  ;;  %v4288_v8 = vld [vmem:[%s5380_s14 + $0x7c] sm:$0xf]  ;;  %v4290_v17 = vld [vmem:[%s5380_s14 + $0x80] sm:$0xf] }
 0x3b6   : >> { %4287 = vst [vmem:[%s5376_s12 + $0x78] sm:$0xf] %v4286_v0  ;;  %4289 = vst [vmem:[%s5376_s12 + $0x7c] sm:$0xf] %v4288_v8  ;;  %v4292_v42 = vld [vmem:[%s5380_s14 + $0x84] sm:$0xf] }
 0x3b7   : >> { %4291 = vst [vmem:[%s5376_s12 + $0x80] sm:$0xf] %v4290_v17  ;;  %4293 = vst [vmem:[%s5376_s12 + $0x84] sm:$0xf] %v4292_v42  ;;  %s8409_s25 = smov (%p4295_p11, %s4294_s25), 0  ;;  %s4220_s23 = sadd.s32 1, %s5388_s23  }
 0x3b8   : >> { %s4297_s24 = smul.u32 136, %s8409_s25  ;;  %p4219_p12 = scmp.ge.s32.totalorder %s4220_s23, %s7757_s17 }
 0x3b9   : >> { %s8402_s28 = smov %s8409_s25 }
 0x3ba   : >> { %s4299_s14 = scalar_lea.vmem %s7694_s30, %s4297_s24 [#allocation2]   ;;  %s4300_s12 = scalar_lea.vmem %s7751_s20, %s4297_s24  }
 0x3bb   : > { %4222 = sbr.rel (!%p4219_p12) target bundleno = 929 (0x3a1), region = 148 }
 0x3c0 PF: > { %5316 = sdivrem.u32 %s8407_s29, 34 }
 0x3c1   : > { %s4806_s19 = smul.u32 136, %s7757_s17 }
 0x3c3   : > { %s4305_s22 = scalar_lea.vmem %s7694_s30, %s4806_s19 [#allocation2]   ;;  %s4307_s26 = scalar_lea.vmem %s7751_s20, %s4806_s19  }
 0x3c9   : > { %s5317_s27 = spop.drf %5316 }
 0x3ca   : > { %p4808_p13 = scmp.le.s32.totalorder %s5317_s27, 0 }
 0x3cb   : > { %s5390_s11 = smov (!%p4808_p13), %s4307_s26   ;;  %s5394_s15 = smov (!%p4808_p13), %s4305_s22  }
 0x3cc   : > { %4523 = sbr.rel (%p4808_p13) target bundleno = 985 (0x3d9), region = 153  ;;  %s5398_s18 = smov (!%p4808_p13), 0  }
 0x3cd   : > { %s5402_s21 = smov (!%p4808_p13), 0  }
 0x3d1 LB: >> { %v4317_v49 = vld [vmem:[%s5396_s15] sm:$0xf]  ;;  %s4319_s12 = sadd.s32 1, %s5400_s18  ;;  %s4311_s21 = sadd.s32 1, %s5404_s21   ;;  %s5404_s21 = sphi %s5402_s21, %s4311_s21   ;;  %s5400_s18 = sphi %s5398_s18, %s5399_s18   ;;  %s5396_s15 = sphi %s5394_s15, %s4324_s15   ;;  %s5392_s11 = sphi %s5390_s11, %s4325_s11  }
 0x3d2   : >> { %4318 = vst [vmem:[%s5392_s11] sm:$0xf] %v4317_v49  ;;  %p4320_p0 = scmp.ge.s32.totalorder %s4319_s12, %s5317_s27  ;;  %p4310_p1 = scmp.ge.s32.totalorder %s4311_s21, %s5317_s27 }
 0x3d4   : >> { %s8411_s12 = smov (%p4320_p0, %s4319_s12), 0  ;;  %4313 = sbr.rel (!%p4310_p1) target bundleno = 977 (0x3d1), region = 159 }
 0x3d5   : >> { %s4809_s30 = sshll.u32 %s8411_s12, 2  ;;  %s5399_s18 = smov %s8411_s12  }
 0x3d6   : >> { %s4324_s15 = scalar_lea.vmem %s4305_s22, %s4809_s30 [#allocation2]   ;;  %s4325_s11 = scalar_lea.vmem %s4307_s26, %s4809_s30  }
 0x3d9 PF: > { %p16_p2 = scmp.ge.s32.totalorder %s5472_s13, 6   ;;  %s8403_s30 = smov %s5368_s10 }
 0x3da   : > { %s8404_s10 = smov %s5480_s16  ;;  %s8405_s11 = smov %s5472_s13 }
 0x3db   :  { %18 = sbr.rel (!%p16_p2) target bundleno = 2 (0x2), region = 170 }

</bundles_post_ra>
